<compile_context>
chip_gen: v7x
topology: tpu7x:2x2x1
jax: 0.10.0
libtpu: 0.0.40
codegen_flags: <defaults>
</compile_context>

<pallas_src>
import jax
import jax.numpy as jnp
from jax import lax
from jax.experimental import pallas as pl
from jax.experimental.pallas import tpu as pltpu

EPS = 1e-5                      # PyTorch BatchNorm2d default
_VMEM_LIMIT = 32 * 1024 * 1024  # safe on v5e/v6e/v7x (raise to 64-96 MiB on
                                # v5e/v6e for huge tiles; keep <=32 MiB on v7x)


def _round_up(x, m):
    return (x + m - 1) // m * m


def _pick_hw_tile(hw, cout, budget_bytes=12 << 20):
    """Largest H*W tile for the BN+ReLU pass whose double-buffered streams
    (bf16 in + f32 out) fit the per-kernel VMEM budget."""
    per_elem = 2 * (2 + 4) * cout          # 2 buffers * (bf16 in + f32 out)
    if hw * per_elem <= budget_bytes:
        return hw
    tm = max(128, (budget_bytes // per_elem) // 128 * 128)
    while tm > 128 and hw % tm:
        tm -= 128
    return tm if hw % tm == 0 else hw


# ---------------------------------------------------------------------------
# Wrapper: NCHW in / NCHW out, matching nn.Conv2d(3x3,s1,p1,bias) +
# nn.BatchNorm2d (training-mode batch statistics) + ReLU.
# ---------------------------------------------------------------------------
def conv_block_forward(x_nchw, weight_oihw, bias, gamma, beta):
    del bias  # with BN right after the conv, the conv bias cancels exactly
    N, Cin, H, W = x_nchw.shape
    Cout = weight_oihw.shape[0]
    HW = H * W
    Cop = _round_up(Cout, 128)            # padded channels live only in VMEM

    # NHWC + spatial pad=1, bf16 for the MXU (one extra small XLA copy of the
    # input; the 9x im2col materialization of the previous version is gone).
    x = jnp.transpose(x_nchw, (0, 2, 3, 1)).astype(jnp.bfloat16)
    x_pad = jnp.pad(x, ((0, 0), (1, 1), (1, 1), (0, 0)))          # (N,H+2,W+2,Cin)

    # (Cout, Cin, 3, 3) -> (3, 3, Cin, Cop), zero-padded channels, bf16.
    w = jnp.transpose(weight_oihw, (2, 3, 1, 0))                  # (3,3,Cin,Cout)
    w = jnp.pad(w, ((0, 0), (0, 0), (0, 0), (0, Cop - Cout))).astype(jnp.bfloat16)

    # ---- kernel 1: conv (in-kernel 3x3 halo) + per-image partial BN stats ---
    def conv_stats_kernel(x_ref, w_ref, y_ref, stats_ref):
        # x_ref: (1, H+2, W+2, Cin) bf16   w_ref: (3, 3, Cin, Cop) bf16
        # y_ref: (1, Cout, HW) bf16        stats_ref: (1, 2, Cop) f32
        acc = jnp.zeros((HW, Cop), jnp.float32)
        for kh in range(3):
            for kw in range(3):
                lhs = x_ref[0, pl.ds(kh, H), pl.ds(kw, W), :].reshape(HW, Cin)
                acc = acc + jnp.dot(lhs, w_ref[kh, kw],
                                    preferred_element_type=jnp.float32)
        # Partial BN stats of the PRE-bias conv output; padded channels are 0.
        stats_ref[0, pl.ds(0, 1), :] = jnp.sum(acc, axis=0, keepdims=True)
        stats_ref[0, pl.ds(1, 1), :] = jnp.sum(acc * acc, axis=0, keepdims=True)
        # Tile-aligned (HW, Cop)->(Cop, HW) transpose, then store only the real
        # channels -> channel-major bf16 intermediate, lane-dense on HW.
        acc_t = acc.T
        y_ref[0] = acc_t[:Cout, :].astype(jnp.bfloat16)

    y, stats = pl.pallas_call(
        conv_stats_kernel,
        out_shape=(
            jax.ShapeDtypeStruct((N, Cout, HW), jnp.bfloat16),
            jax.ShapeDtypeStruct((N, 2, Cop), jnp.float32),
        ),
        grid_spec=pltpu.PrefetchScalarGridSpec(
            num_scalar_prefetch=0,
            grid=(N,),
            in_specs=[
                pl.BlockSpec((1, H + 2, W + 2, Cin), lambda n: (n, 0, 0, 0)),
                # grid-invariant weights (tiny here; single-buffering them is a
                # v7x VMEM optimization left as a follow-up)
                pl.BlockSpec((3, 3, Cin, Cop), lambda n: (0, 0, 0, 0)),
            ],
            out_specs=[
                pl.BlockSpec((1, Cout, HW), lambda n: (n, 0, 0)),
                pl.BlockSpec((1, 2, Cop), lambda n: (n, 0, 0)),
            ],
        ),
        compiler_params=pltpu.CompilerParams(
            dimension_semantics=("parallel",),     # disjoint per-image outputs
            vmem_limit_bytes=_VMEM_LIMIT,
        ),
    )(x_pad, w)

    # ---- BatchNorm batch statistics (training mode, biased variance) --------
    # TODO(synk): PyTorch BatchNorm2d also updates running_mean/running_var in
    # training mode; that stateful side effect is not reproduced here.
    count = float(N * HW)
    s = jnp.sum(stats[:, 0, :Cout], axis=0)
    sq = jnp.sum(stats[:, 1, :Cout], axis=0)
    mean_a = s / count                                   # mean of pre-bias conv
    var = jnp.maximum(sq / count - mean_a * mean_a, 0.0)
    scale = gamma.astype(jnp.float32) / jnp.sqrt(var + EPS)
    shift = beta.astype(jnp.float32) - mean_a * scale    # conv bias cancels
    scale_c = scale.reshape(Cout, 1)
    shift_c = shift.reshape(Cout, 1)

    # ---- kernel 2: affine batch-norm + ReLU, NCHW-layout output -------------
    def bn_relu_kernel(y_ref, sc_ref, sh_ref, o_ref):
        yv = y_ref[0].astype(jnp.float32)                # (Cout, TM)
        o_ref[0] = jnp.maximum(yv * sc_ref[...] + sh_ref[...], 0.0)

    TM = _pick_hw_tile(HW, Cout)
    out = pl.pallas_call(
        bn_relu_kernel,
        out_shape=jax.ShapeDtypeStruct((N, Cout, HW), jnp.float32),
        grid_spec=pltpu.PrefetchScalarGridSpec(
            num_scalar_prefetch=0,
            grid=(N, HW // TM),
            in_specs=[
                pl.BlockSpec((1, Cout, TM), lambda n, t: (n, 0, t)),
                pl.BlockSpec((Cout, 1), lambda n, t: (0, 0)),
                pl.BlockSpec((Cout, 1), lambda n, t: (0, 0)),
            ],
            out_specs=pl.BlockSpec((1, Cout, TM), lambda n, t: (n, 0, t)),
        ),
        compiler_params=pltpu.CompilerParams(
            dimension_semantics=("parallel", "parallel"),
            vmem_limit_bytes=_VMEM_LIMIT,
        ),
    )(y, scale_c, shift_c)

    # Already channel-major -> final NCHW needs only a free reshape.
    return out.reshape(N, Cout, H, W)


# ---------------------------------------------------------------------------
# Pure-JAX reference (matches PyTorch conv_block forward in training mode).
# ---------------------------------------------------------------------------
def reference_forward(x, weight, bias, gamma, beta):
    dn = lax.conv_dimension_numbers(x.shape, weight.shape, ("NCHW", "OIHW", "NCHW"))
    y = lax.conv_general_dilated(
        x, weight, window_strides=(1, 1), padding=((1, 1), (1, 1)),
        dimension_numbers=dn, precision=lax.Precision.HIGHEST,
    )
    y = y + bias.reshape(1, -1, 1, 1)
    mean = jnp.mean(y, axis=(0, 2, 3), keepdims=True)
    var = jnp.var(y, axis=(0, 2, 3), keepdims=True)
    y = (y - mean) / jnp.sqrt(var + EPS)
    y = y * gamma.reshape(1, -1, 1, 1) + beta.reshape(1, -1, 1, 1)
    return jnp.maximum(y, 0.0)


if __name__ == "__main__":
    key = jax.random.PRNGKey(0)
    k1, k2, k3, k4, k5 = jax.random.split(key, 5)

    N, Cin, Cout, H, W = 2, 4, 8, 16, 16

    x = jax.random.normal(k1, (N, Cin, H, W), dtype=jnp.float32)
    weight = jax.random.normal(k2, (Cout, Cin, 3, 3), dtype=jnp.float32) * 0.1
    bias = jax.random.normal(k3, (Cout,), dtype=jnp.float32) * 0.1
    gamma = 1.0 + 0.1 * jax.random.normal(k4, (Cout,), dtype=jnp.float32)
    beta = 0.1 * jax.random.normal(k5, (Cout,), dtype=jnp.float32)

    fwd = jax.jit(conv_block_forward)
    out = jax.block_until_ready(fwd(x, weight, bias, gamma, beta))

    ref = reference_forward(x, weight, bias, gamma, beta)
    assert out.shape == (N, Cout, H, W)
    # bf16 MXU inputs + bf16 intermediate (deliberate perf trade) vs f32-HIGHEST ref.
    assert jnp.allclose(out, ref, rtol=2e-2, atol=2e-2), (
        f"max abs diff = {jnp.max(jnp.abs(out - ref))}"
    )

    print("KERNEL_OK")
</pallas_src>

<mosaic_0001>
module attributes {stable_mosaic.version = 11 : i64} {
  func.func @conv_stats_kernel(%arg0: i32, %arg1: memref<1x18x18x4xbf16, #tpu.memory_space<vmem>>, %arg2: memref<3x3x4x128xbf16, #tpu.memory_space<vmem>>, %arg3: memref<1x8x256xbf16, #tpu.memory_space<vmem>>, %arg4: memref<1x2x128xf32, #tpu.memory_space<vmem>>) attributes {dimension_semantics = [#tpu.dimension_semantics<parallel>], iteration_bounds = array<i64: 2>, scalar_prefetch = 0 : i64, scratch_operands = 0 : i64, tpu.core_type = #tpu.core_type<tc>, window_params = [{transform_indices = @transform_0, window_bounds = array<i64: 1, 18, 18, 4>}, {pipeline_mode = #tpu.pipeline_mode<synchronous>, transform_indices = @transform_1, window_bounds = array<i64: 3, 3, 4, 128>}, {transform_indices = @transform_2, window_bounds = array<i64: 1, 8, 256>}, {transform_indices = @transform_3, window_bounds = array<i64: 1, 2, 128>}]} {
    %cst = arith.constant 0.000000e+00 : f32
    %0 = vector.broadcast %cst : f32 to vector<256x128xf32>
    %c0 = arith.constant 0 : index
    %c0_0 = arith.constant 0 : index
    %c0_1 = arith.constant 0 : index
    %c0_2 = arith.constant 0 : index
    %1 = vector.load %arg1[%c0, %c0_0, %c0_1, %c0_2] : memref<1x18x18x4xbf16, #tpu.memory_space<vmem>>, vector<1x16x16x4xbf16>
    %2 = vector.shape_cast %1 : vector<1x16x16x4xbf16> to vector<16x16x4xbf16>
    %3 = vector.shape_cast %2 : vector<16x16x4xbf16> to vector<256x4xbf16>
    %c0_3 = arith.constant 0 : index
    %c0_4 = arith.constant 0 : index
    %c0_5 = arith.constant 0 : index
    %c0_6 = arith.constant 0 : index
    %4 = vector.load %arg2[%c0_3, %c0_4, %c0_5, %c0_6] : memref<3x3x4x128xbf16, #tpu.memory_space<vmem>>, vector<1x1x4x128xbf16>
    %5 = vector.shape_cast %4 : vector<1x1x4x128xbf16> to vector<4x128xbf16>
    %cst_7 = arith.constant dense<0.000000e+00> : vector<256x128xf32>
    %6 = tpu.matmul %3, %5, %cst_7 {dimension_numbers = #tpu.dot_dimension_numbers<[1], [0], [0], [1], [0, 0, 1, 1], [], []>} : vector<256x4xbf16>, vector<4x128xbf16>, vector<256x128xf32> -> vector<256x128xf32>
    %7 = arith.addf %0, %6 : vector<256x128xf32>
    %c0_8 = arith.constant 0 : index
    %c0_9 = arith.constant 0 : index
    %c1 = arith.constant 1 : index
    %c0_10 = arith.constant 0 : index
    %8 = vector.load %arg1[%c0_8, %c0_9, %c1, %c0_10] : memref<1x18x18x4xbf16, #tpu.memory_space<vmem>>, vector<1x16x16x4xbf16>
    %9 = vector.shape_cast %8 : vector<1x16x16x4xbf16> to vector<16x16x4xbf16>
    %10 = vector.shape_cast %9 : vector<16x16x4xbf16> to vector<256x4xbf16>
    %c0_11 = arith.constant 0 : index
    %c1_12 = arith.constant 1 : index
    %c0_13 = arith.constant 0 : index
    %c0_14 = arith.constant 0 : index
    %11 = vector.load %arg2[%c0_11, %c1_12, %c0_13, %c0_14] : memref<3x3x4x128xbf16, #tpu.memory_space<vmem>>, vector<1x1x4x128xbf16>
    %12 = vector.shape_cast %11 : vector<1x1x4x128xbf16> to vector<4x128xbf16>
    %cst_15 = arith.constant dense<0.000000e+00> : vector<256x128xf32>
    %13 = tpu.matmul %10, %12, %cst_15 {dimension_numbers = #tpu.dot_dimension_numbers<[1], [0], [0], [1], [0, 0, 1, 1], [], []>} : vector<256x4xbf16>, vector<4x128xbf16>, vector<256x128xf32> -> vector<256x128xf32>
    %14 = arith.addf %7, %13 : vector<256x128xf32>
    %c0_16 = arith.constant 0 : index
    %c0_17 = arith.constant 0 : index
    %c2 = arith.constant 2 : index
    %c0_18 = arith.constant 0 : index
    %15 = vector.load %arg1[%c0_16, %c0_17, %c2, %c0_18] : memref<1x18x18x4xbf16, #tpu.memory_space<vmem>>, vector<1x16x16x4xbf16>
    %16 = vector.shape_cast %15 : vector<1x16x16x4xbf16> to vector<16x16x4xbf16>
    %17 = vector.shape_cast %16 : vector<16x16x4xbf16> to vector<256x4xbf16>
    %c0_19 = arith.constant 0 : index
    %c2_20 = arith.constant 2 : index
    %c0_21 = arith.constant 0 : index
    %c0_22 = arith.constant 0 : index
    %18 = vector.load %arg2[%c0_19, %c2_20, %c0_21, %c0_22] : memref<3x3x4x128xbf16, #tpu.memory_space<vmem>>, vector<1x1x4x128xbf16>
    %19 = vector.shape_cast %18 : vector<1x1x4x128xbf16> to vector<4x128xbf16>
    %cst_23 = arith.constant dense<0.000000e+00> : vector<256x128xf32>
    %20 = tpu.matmul %17, %19, %cst_23 {dimension_numbers = #tpu.dot_dimension_numbers<[1], [0], [0], [1], [0, 0, 1, 1], [], []>} : vector<256x4xbf16>, vector<4x128xbf16>, vector<256x128xf32> -> vector<256x128xf32>
    %21 = arith.addf %14, %20 : vector<256x128xf32>
    %c0_24 = arith.constant 0 : index
    %c1_25 = arith.constant 1 : index
    %c0_26 = arith.constant 0 : index
    %c0_27 = arith.constant 0 : index
    %22 = vector.load %arg1[%c0_24, %c1_25, %c0_26, %c0_27] : memref<1x18x18x4xbf16, #tpu.memory_space<vmem>>, vector<1x16x16x4xbf16>
    %23 = vector.shape_cast %22 : vector<1x16x16x4xbf16> to vector<16x16x4xbf16>
    %24 = vector.shape_cast %23 : vector<16x16x4xbf16> to vector<256x4xbf16>
    %c1_28 = arith.constant 1 : index
    %c0_29 = arith.constant 0 : index
    %c0_30 = arith.constant 0 : index
    %c0_31 = arith.constant 0 : index
    %25 = vector.load %arg2[%c1_28, %c0_29, %c0_30, %c0_31] : memref<3x3x4x128xbf16, #tpu.memory_space<vmem>>, vector<1x1x4x128xbf16>
    %26 = vector.shape_cast %25 : vector<1x1x4x128xbf16> to vector<4x128xbf16>
    %cst_32 = arith.constant dense<0.000000e+00> : vector<256x128xf32>
    %27 = tpu.matmul %24, %26, %cst_32 {dimension_numbers = #tpu.dot_dimension_numbers<[1], [0], [0], [1], [0, 0, 1, 1], [], []>} : vector<256x4xbf16>, vector<4x128xbf16>, vector<256x128xf32> -> vector<256x128xf32>
    %28 = arith.addf %21, %27 : vector<256x128xf32>
    %c0_33 = arith.constant 0 : index
    %c1_34 = arith.constant 1 : index
    %c1_35 = arith.constant 1 : index
    %c0_36 = arith.constant 0 : index
    %29 = vector.load %arg1[%c0_33, %c1_34, %c1_35, %c0_36] : memref<1x18x18x4xbf16, #tpu.memory_space<vmem>>, vector<1x16x16x4xbf16>
    %30 = vector.shape_cast %29 : vector<1x16x16x4xbf16> to vector<16x16x4xbf16>
    %31 = vector.shape_cast %30 : vector<16x16x4xbf16> to vector<256x4xbf16>
    %c1_37 = arith.constant 1 : index
    %c1_38 = arith.constant 1 : index
    %c0_39 = arith.constant 0 : index
    %c0_40 = arith.constant 0 : index
    %32 = vector.load %arg2[%c1_37, %c1_38, %c0_39, %c0_40] : memref<3x3x4x128xbf16, #tpu.memory_space<vmem>>, vector<1x1x4x128xbf16>
    %33 = vector.shape_cast %32 : vector<1x1x4x128xbf16> to vector<4x128xbf16>
    %cst_41 = arith.constant dense<0.000000e+00> : vector<256x128xf32>
    %34 = tpu.matmul %31, %33, %cst_41 {dimension_numbers = #tpu.dot_dimension_numbers<[1], [0], [0], [1], [0, 0, 1, 1], [], []>} : vector<256x4xbf16>, vector<4x128xbf16>, vector<256x128xf32> -> vector<256x128xf32>
    %35 = arith.addf %28, %34 : vector<256x128xf32>
    %c0_42 = arith.constant 0 : index
    %c1_43 = arith.constant 1 : index
    %c2_44 = arith.constant 2 : index
    %c0_45 = arith.constant 0 : index
    %36 = vector.load %arg1[%c0_42, %c1_43, %c2_44, %c0_45] : memref<1x18x18x4xbf16, #tpu.memory_space<vmem>>, vector<1x16x16x4xbf16>
    %37 = vector.shape_cast %36 : vector<1x16x16x4xbf16> to vector<16x16x4xbf16>
    %38 = vector.shape_cast %37 : vector<16x16x4xbf16> to vector<256x4xbf16>
    %c1_46 = arith.constant 1 : index
    %c2_47 = arith.constant 2 : index
    %c0_48 = arith.constant 0 : index
    %c0_49 = arith.constant 0 : index
    %39 = vector.load %arg2[%c1_46, %c2_47, %c0_48, %c0_49] : memref<3x3x4x128xbf16, #tpu.memory_space<vmem>>, vector<1x1x4x128xbf16>
    %40 = vector.shape_cast %39 : vector<1x1x4x128xbf16> to vector<4x128xbf16>
    %cst_50 = arith.constant dense<0.000000e+00> : vector<256x128xf32>
    %41 = tpu.matmul %38, %40, %cst_50 {dimension_numbers = #tpu.dot_dimension_numbers<[1], [0], [0], [1], [0, 0, 1, 1], [], []>} : vector<256x4xbf16>, vector<4x128xbf16>, vector<256x128xf32> -> vector<256x128xf32>
    %42 = arith.addf %35, %41 : vector<256x128xf32>
    %c0_51 = arith.constant 0 : index
    %c2_52 = arith.constant 2 : index
    %c0_53 = arith.constant 0 : index
    %c0_54 = arith.constant 0 : index
    %43 = vector.load %arg1[%c0_51, %c2_52, %c0_53, %c0_54] : memref<1x18x18x4xbf16, #tpu.memory_space<vmem>>, vector<1x16x16x4xbf16>
    %44 = vector.shape_cast %43 : vector<1x16x16x4xbf16> to vector<16x16x4xbf16>
    %45 = vector.shape_cast %44 : vector<16x16x4xbf16> to vector<256x4xbf16>
    %c2_55 = arith.constant 2 : index
    %c0_56 = arith.constant 0 : index
    %c0_57 = arith.constant 0 : index
    %c0_58 = arith.constant 0 : index
    %46 = vector.load %arg2[%c2_55, %c0_56, %c0_57, %c0_58] : memref<3x3x4x128xbf16, #tpu.memory_space<vmem>>, vector<1x1x4x128xbf16>
    %47 = vector.shape_cast %46 : vector<1x1x4x128xbf16> to vector<4x128xbf16>
    %cst_59 = arith.constant dense<0.000000e+00> : vector<256x128xf32>
    %48 = tpu.matmul %45, %47, %cst_59 {dimension_numbers = #tpu.dot_dimension_numbers<[1], [0], [0], [1], [0, 0, 1, 1], [], []>} : vector<256x4xbf16>, vector<4x128xbf16>, vector<256x128xf32> -> vector<256x128xf32>
    %49 = arith.addf %42, %48 : vector<256x128xf32>
    %c0_60 = arith.constant 0 : index
    %c2_61 = arith.constant 2 : index
    %c1_62 = arith.constant 1 : index
    %c0_63 = arith.constant 0 : index
    %50 = vector.load %arg1[%c0_60, %c2_61, %c1_62, %c0_63] : memref<1x18x18x4xbf16, #tpu.memory_space<vmem>>, vector<1x16x16x4xbf16>
    %51 = vector.shape_cast %50 : vector<1x16x16x4xbf16> to vector<16x16x4xbf16>
    %52 = vector.shape_cast %51 : vector<16x16x4xbf16> to vector<256x4xbf16>
    %c2_64 = arith.constant 2 : index
    %c1_65 = arith.constant 1 : index
    %c0_66 = arith.constant 0 : index
    %c0_67 = arith.constant 0 : index
    %53 = vector.load %arg2[%c2_64, %c1_65, %c0_66, %c0_67] : memref<3x3x4x128xbf16, #tpu.memory_space<vmem>>, vector<1x1x4x128xbf16>
    %54 = vector.shape_cast %53 : vector<1x1x4x128xbf16> to vector<4x128xbf16>
    %cst_68 = arith.constant dense<0.000000e+00> : vector<256x128xf32>
    %55 = tpu.matmul %52, %54, %cst_68 {dimension_numbers = #tpu.dot_dimension_numbers<[1], [0], [0], [1], [0, 0, 1, 1], [], []>} : vector<256x4xbf16>, vector<4x128xbf16>, vector<256x128xf32> -> vector<256x128xf32>
    %56 = arith.addf %49, %55 : vector<256x128xf32>
    %c0_69 = arith.constant 0 : index
    %c2_70 = arith.constant 2 : index
    %c2_71 = arith.constant 2 : index
    %c0_72 = arith.constant 0 : index
    %57 = vector.load %arg1[%c0_69, %c2_70, %c2_71, %c0_72] : memref<1x18x18x4xbf16, #tpu.memory_space<vmem>>, vector<1x16x16x4xbf16>
    %58 = vector.shape_cast %57 : vector<1x16x16x4xbf16> to vector<16x16x4xbf16>
    %59 = vector.shape_cast %58 : vector<16x16x4xbf16> to vector<256x4xbf16>
    %c2_73 = arith.constant 2 : index
    %c2_74 = arith.constant 2 : index
    %c0_75 = arith.constant 0 : index
    %c0_76 = arith.constant 0 : index
    %60 = vector.load %arg2[%c2_73, %c2_74, %c0_75, %c0_76] : memref<3x3x4x128xbf16, #tpu.memory_space<vmem>>, vector<1x1x4x128xbf16>
    %61 = vector.shape_cast %60 : vector<1x1x4x128xbf16> to vector<4x128xbf16>
    %cst_77 = arith.constant dense<0.000000e+00> : vector<256x128xf32>
    %62 = tpu.matmul %59, %61, %cst_77 {dimension_numbers = #tpu.dot_dimension_numbers<[1], [0], [0], [1], [0, 0, 1, 1], [], []>} : vector<256x4xbf16>, vector<4x128xbf16>, vector<256x128xf32> -> vector<256x128xf32>
    %63 = arith.addf %56, %62 : vector<256x128xf32>
    %cst_78 = arith.constant dense<0.000000e+00> : vector<128xf32>
    %64 = vector.multi_reduction <add>, %63, %cst_78 [0] : vector<256x128xf32> to vector<128xf32>
    %65 = vector.shape_cast %64 : vector<128xf32> to vector<1x128xf32>
    %c0_79 = arith.constant 0 : index
    %c0_80 = arith.constant 0 : index
    %c0_81 = arith.constant 0 : index
    %66 = vector.load %arg4[%c0_79, %c0_80, %c0_81] : memref<1x2x128xf32, #tpu.memory_space<vmem>>, vector<1x1x128xf32>
    %67 = vector.shape_cast %66 : vector<1x1x128xf32> to vector<1x128xf32>
    %68 = vector.shape_cast %65 : vector<1x128xf32> to vector<1x1x128xf32>
    tpu.vector_store %arg4[%c0_79, %c0_80, %c0_81], %68 {strides = array<i32>} : memref<1x2x128xf32, #tpu.memory_space<vmem>>, vector<1x1x128xf32>,
    %69 = arith.mulf %63, %63 : vector<256x128xf32>
    %cst_82 = arith.constant dense<0.000000e+00> : vector<128xf32>
    %70 = vector.multi_reduction <add>, %69, %cst_82 [0] : vector<256x128xf32> to vector<128xf32>
    %71 = vector.shape_cast %70 : vector<128xf32> to vector<1x128xf32>
    %c0_83 = arith.constant 0 : index
    %c1_84 = arith.constant 1 : index
    %c0_85 = arith.constant 0 : index
    %72 = vector.load %arg4[%c0_83, %c1_84, %c0_85] : memref<1x2x128xf32, #tpu.memory_space<vmem>>, vector<1x1x128xf32>
    %73 = vector.shape_cast %72 : vector<1x1x128xf32> to vector<1x128xf32>
    %74 = vector.shape_cast %71 : vector<1x128xf32> to vector<1x1x128xf32>
    tpu.vector_store %arg4[%c0_83, %c1_84, %c0_85], %74 {strides = array<i32>} : memref<1x2x128xf32, #tpu.memory_space<vmem>>, vector<1x1x128xf32>,
    %75 = tpu.transpose %63, [1, 0] : vector<256x128xf32> -> vector<128x256xf32>
    %76 = vector.extract_strided_slice %75 {offsets = [0, 0], sizes = [8, 256], strides = [1, 1]} : vector<128x256xf32> to vector<8x256xf32>
    %77 = arith.truncf %76 : vector<8x256xf32> to vector<8x256xbf16>
    %c0_86 = arith.constant 0 : index
    %c0_87 = arith.constant 0 : index
    %c0_88 = arith.constant 0 : index
    %78 = vector.load %arg3[%c0_86, %c0_87, %c0_88] : memref<1x8x256xbf16, #tpu.memory_space<vmem>>, vector<1x8x256xbf16>
    %79 = vector.shape_cast %78 : vector<1x8x256xbf16> to vector<8x256xbf16>
    %80 = vector.shape_cast %77 : vector<8x256xbf16> to vector<1x8x256xbf16>
    tpu.vector_store %arg3[%c0_86, %c0_87, %c0_88], %80 {strides = array<i32>} : memref<1x8x256xbf16, #tpu.memory_space<vmem>>, vector<1x8x256xbf16>,
    return
  }
  func.func @transform_0(%arg0: i32) -> (i32, i32, i32, i32) {
    %c0_i32 = arith.constant 0 : i32
    %c0_i32_0 = arith.constant 0 : i32
    %c0_i32_1 = arith.constant 0 : i32
    %c0_i32_2 = arith.constant 0 : i32
    return %arg0, %c0_i32, %c0_i32_0, %c0_i32_1 : i32, i32, i32, i32
  }
  func.func @transform_1(%arg0: i32) -> (i32, i32, i32, i32) {
    %c0_i32 = arith.constant 0 : i32
    %c0_i32_0 = arith.constant 0 : i32
    %c0_i32_1 = arith.constant 0 : i32
    %c0_i32_2 = arith.constant 0 : i32
    %c0_i32_3 = arith.constant 0 : i32
    return %c0_i32, %c0_i32_0, %c0_i32_1, %c0_i32_2 : i32, i32, i32, i32
  }
  func.func @transform_2(%arg0: i32) -> (i32, i32, i32) {
    %c0_i32 = arith.constant 0 : i32
    %c0_i32_0 = arith.constant 0 : i32
    %c0_i32_1 = arith.constant 0 : i32
    return %arg0, %c0_i32, %c0_i32_0 : i32, i32, i32
  }
  func.func @transform_3(%arg0: i32) -> (i32, i32, i32) {
    %c0_i32 = arith.constant 0 : i32
    %c0_i32_0 = arith.constant 0 : i32
    %c0_i32_1 = arith.constant 0 : i32
    return %arg0, %c0_i32, %c0_i32_0 : i32, i32, i32
  }
}

module attributes {stable_mosaic.version = 11 : i64} {
  func.func @bn_relu_kernel(%arg0: i32, %arg1: i32, %arg2: memref<1x8x256xbf16, #tpu.memory_space<vmem>>, %arg3: memref<8x1xf32, #tpu.memory_space<vmem>>, %arg4: memref<8x1xf32, #tpu.memory_space<vmem>>, %arg5: memref<1x8x256xf32, #tpu.memory_space<vmem>>) attributes {dimension_semantics = [#tpu.dimension_semantics<parallel>, #tpu.dimension_semantics<parallel>], iteration_bounds = array<i64: 2, 1>, scalar_prefetch = 0 : i64, scratch_operands = 0 : i64, tpu.core_type = #tpu.core_type<tc>, window_params = [{transform_indices = @transform_0, window_bounds = array<i64: 1, 8, 256>}, {pipeline_mode = #tpu.pipeline_mode<synchronous>, transform_indices = @transform_1, window_bounds = array<i64: 8, 1>}, {pipeline_mode = #tpu.pipeline_mode<synchronous>, transform_indices = @transform_2, window_bounds = array<i64: 8, 1>}, {transform_indices = @transform_3, window_bounds = array<i64: 1, 8, 256>}]} {
    %c0 = arith.constant 0 : index
    %c0_0 = arith.constant 0 : index
    %c0_1 = arith.constant 0 : index
    %0 = vector.load %arg2[%c0, %c0_0, %c0_1] : memref<1x8x256xbf16, #tpu.memory_space<vmem>>, vector<1x8x256xbf16>
    %1 = vector.shape_cast %0 : vector<1x8x256xbf16> to vector<8x256xbf16>
    %2 = arith.extf %1 : vector<8x256xbf16> to vector<8x256xf32>
    %c0_2 = arith.constant 0 : index
    %c0_3 = arith.constant 0 : index
    %3 = vector.load %arg3[%c0_2, %c0_3] : memref<8x1xf32, #tpu.memory_space<vmem>>, vector<8x1xf32>
    %4 = vector.broadcast %3 : vector<8x1xf32> to vector<8x256xf32>
    %5 = arith.mulf %2, %4 : vector<8x256xf32>
    %c0_4 = arith.constant 0 : index
    %c0_5 = arith.constant 0 : index
    %6 = vector.load %arg4[%c0_4, %c0_5] : memref<8x1xf32, #tpu.memory_space<vmem>>, vector<8x1xf32>
    %7 = vector.broadcast %6 : vector<8x1xf32> to vector<8x256xf32>
    %8 = arith.addf %5, %7 : vector<8x256xf32>
    %cst = arith.constant 0.000000e+00 : f32
    %9 = vector.broadcast %cst : f32 to vector<8x256xf32>
    %10 = arith.maximumf %8, %9 : vector<8x256xf32>
    %c0_6 = arith.constant 0 : index
    %c0_7 = arith.constant 0 : index
    %c0_8 = arith.constant 0 : index
    %11 = vector.load %arg5[%c0_6, %c0_7, %c0_8] : memref<1x8x256xf32, #tpu.memory_space<vmem>>, vector<1x8x256xf32>
    %12 = vector.shape_cast %11 : vector<1x8x256xf32> to vector<8x256xf32>
    %13 = vector.shape_cast %10 : vector<8x256xf32> to vector<1x8x256xf32>
    tpu.vector_store %arg5[%c0_6, %c0_7, %c0_8], %13 {strides = array<i32>} : memref<1x8x256xf32, #tpu.memory_space<vmem>>, vector<1x8x256xf32>,
    return
  }
  func.func @transform_0(%arg0: i32, %arg1: i32) -> (i32, i32, i32) {
    %c0_i32 = arith.constant 0 : i32
    %c0_i32_0 = arith.constant 0 : i32
    return %arg0, %c0_i32, %arg1 : i32, i32, i32
  }
  func.func @transform_1(%arg0: i32, %arg1: i32) -> (i32, i32) {
    %c0_i32 = arith.constant 0 : i32
    %c0_i32_0 = arith.constant 0 : i32
    %c0_i32_1 = arith.constant 0 : i32
    return %c0_i32, %c0_i32_0 : i32, i32
  }
  func.func @transform_2(%arg0: i32, %arg1: i32) -> (i32, i32) {
    %c0_i32 = arith.constant 0 : i32
    %c0_i32_0 = arith.constant 0 : i32
    %c0_i32_1 = arith.constant 0 : i32
    return %c0_i32, %c0_i32_0 : i32, i32
  }
  func.func @transform_3(%arg0: i32, %arg1: i32) -> (i32, i32, i32) {
    %c0_i32 = arith.constant 0 : i32
    %c0_i32_0 = arith.constant 0 : i32
    return %arg0, %c0_i32, %arg1 : i32, i32, i32
  }
}

</mosaic_0001>

<bundles_post_ra>
// kernel: conv_block_forward.3
= control target key start
LH: loop header
LB: loop body
LE: loop exit
PB: predicated region body
PF: predicated region fallthrough
CT: control target
= control target key end

     0   :  { %s404_s12 = smov 0   ;;  %s406_s13 = smov 0   ;;  %s443_s0 = inlined_call_operand.vmem [shape: bf16[2,8,256], index: 0, kind: input, shape index: {}]   ;;  %s444_s1 = inlined_call_operand.vmem [shape: f32[8,1], index: 1, kind: input, shape index: {}]   ;;  %s445_s2 = inlined_call_operand.vmem [shape: f32[8,1], index: 2, kind: input, shape index: {}]   ;;  %s446_s3 = inlined_call_operand.vmem [shape: f32[2,8,256], index: 3, kind: output, shape index: {}]  }
   0x1   :  { %s408_s14 = smov 0  }
   0x2 LB: > { %s25_s15 = sadd.s32 1, %s377_s13  ;;  %p324_p0 = scmp.ge.s32.totalorder %s381_s14, 1  ;;  %s381_s14 = sphi %s408_s14, %s13_s14   ;;  %s377_s13 = sphi %s406_s13, %s448_s13   ;;  %s373_s12 = sphi %s404_s12, %s447_s12  }
   0x3   : > { %p27_p1 = scmp.ge.s32.totalorder %s25_s15, 2  ;;  %p158_p2 = scmp.lt.s32.totalorder %s381_s14, 3 }
   0x5   : > { %s450_s15 = smov (%p27_p1, %s25_s15), 0  ;;  %p159_p3 = pnand %p324_p0, %p158_p2 }
   0x6   : > { %v213_v0 = vld [vmem:[%s444_s1] sm:$0xff] (!%p159_p3)  ;;  %v383_v1 = vmov (!%p159_p3), 0   ;;  %p191_p4 = scmp.lt.s32.totalorder (!%p159_p3), %s373_s12, 1 }
   0x7   : > { %162 = sbr.rel (%p159_p3) target bundleno = 145 (0x91), region = 32  ;;  %358 = vset.pattern.permute.xlu0 (!%p159_p3), %v383_v1  ;;  %v221_v2 = vld [vmem:[%s445_s2] sm:$0xff] (!%p159_p3) }
   0x8   : > { %216 = vperm.xlu0 (!%p159_p3), %358, %v213_v0  }
   0xc   : > { %224 = vperm.xlu0 (!%p159_p3), %358, %v221_v2  }
   0xe   : > { %s452_s12 = smov (!%p191_p4, %s373_s12), 1 }
   0xf   : > { %s331_s20 = sshll.u32 %s452_s12, 3  ;;  %s332_s24 = sshll.u32 %s452_s12, 4 }
  0x10   : > { %s198_s23 = scalar_lea.vmem %s443_s0, %s331_s20  ;;  %s208_s27 = scalar_lea.vmem %s446_s3, %s332_s24 }
  0x11   : > { %v210_v3 = vld [vmem:[%s198_s23] sm:$0xff] }
  0x12   : > { %v211_v4 = vunpack.c.l.bf16 %v210_v3  ;;  %v212_v5 = vunpack.c.h.bf16 %v210_v3 }
  0x87   : > { %v217_v6 = vpop.permute.xlu0 %216 }
  0x88   : > { %v219_v7 = vmul.f32 %v217_v6, %v211_v4  ;;  %v220_v8 = vmul.f32 %v217_v6, %v212_v5 }
  0x8b   : > { %v225_v9 = vpop.permute.xlu0 %224 }
  0x8c   : > { %v227_v10 = vadd.f32 %v225_v9, %v219_v7  ;;  %v228_v11 = vadd.f32 %v225_v9, %v220_v8 }
  0x8e   : > { %v229_v12 = vmax.f32 %v227_v10, 0.0  ;;  %v230_v13 = vmax.f32 %v228_v11, 0.0 }
  0x90   : > { %231 = vst [vmem:[%s208_s27] sm:$0xff] %v229_v12  ;;  %232 = vst [vmem:[%s208_s27 + $0x8] sm:$0xff] %v230_v13 }
  0x91 PF: > { %s13_s14 = sadd.s32 1, %s381_s14   ;;  %s447_s12 = smov %s377_s13 }
  0x92   : > { %p10_p5 = scmp.ge.s32.totalorder %s13_s14, 4   ;;  %s448_s13 = smov %s450_s15 }
  0x94   :  { %12 = sbr.rel (!%p10_p5) target bundleno = 2 (0x2), region = 62 }

// kernel: conv_block_forward.2
= control target key start
LH: loop header
LB: loop body
LE: loop exit
PB: predicated region body
PF: predicated region fallthrough
CT: control target
= control target key end

     0   :  { %s6465_s12 = smov 0   ;;  %s8322_s0 = inlined_call_operand.vmem [shape: bf16[2,18,18,4], index: 0, kind: input, shape index: {}]   ;;  %s8323_s1 = inlined_call_operand.vmem [shape: bf16[3,3,4,128], index: 1, kind: input, shape index: {}]   ;;  %s8324_s2 = inlined_call_operand.vmem [shape: bf16[2,8,256], index: 2, kind: output, shape index: {0}]   ;;  %s8325_s3 = inlined_call_operand.vmem [shape: f32[2,2,128], index: 3, kind: output, shape index: {1}]  }
   0x1 LB: > { %s5009_s13 = sadd.s32 4294967295, %s6443_s12   ;;  %p5013_p0 = scmp.ge.s32.totalorder %s6443_s12, 1  ;;  %s6443_s12 = sphi %s6465_s12, %s14_s12  }
   0x2   : > { %p140_p1 = scmp.lt.s32.totalorder %s6443_s12, 3 }
   0x4   : > { %p141_p2 = pnand %p5013_p0, %p140_p1 }
   0x6   : > { %144 = sbr.rel (%p141_p2) target bundleno = 692 (0x2b4), region = 28 }
   0xd   : > { %v5018_v0 = vld [vmem:[%s8323_s1 + $0x2] sm:$0x3]  ;;  %vm718_vm0 = vcmask 1041408   ;;  %v5245_v1 = vld [vmem:[%s8323_s1 + $0x8] sm:$0x3]  ;;  %p168_p3 = scmp.lt.s32.totalorder %s5009_s13, 1 }
   0xe   : > { %6276 = vmatprep.subr.msk.bf16.mxu1 %vm718_vm0, %v5018_v0  ;;  %6280 = vmatprep.subr.msk.bf16.mxu0 %vm718_vm0, %v5245_v1  ;;  %v720_v2 = vsel %vm718_vm0, %v5018_v0, 0  ;;  %v6483_v3 = vsel %vm718_vm0, %v5245_v1, 0  ;;  %v215_v4 = vld [vmem:[%s8323_s1] sm:$0x3]  ;;  %v5310_v5 = vld [vmem:[%s8323_s1 + $0xa] sm:$0x3] }
   0xf   : > { %8339 = vst [vmem:[#allocation2_spill] sm:$0xff] %v6483_v3  ;;  %5713 = vmatpush3.bf16.msra.mxu1 %v720_v2  ;;  %5849 = vmatpush3.bf16.msra.mxu0 %v6483_v3  ;;  %s8394_s13 = smov (!%p168_p3, %s5009_s13), 1  ;;  %vm232_vm1 = vsmask.f32 3328  ;;  %vm233_vm2 = vsmask.f32 7440 }
  0x10   : > { %6277 = vmatprep.subr.msk.bf16.mxu1 %vm718_vm0, %v215_v4  ;;  %6282 = vmatprep.subr.msk.bf16.mxu0 %vm718_vm0, %v5310_v5  ;;  %s6286_s22 = smul.u32 216, %s8394_s13  ;;  %vm669_vm3 = vcmask 31744   ;;  %v6513_v17 = vsel %vm718_vm0, %v215_v4, 0  ;;  %v6519_v26 = vld [vmem:[%s8323_s1 + $0xc] sm:$0x3]  ;;  %vm6526_vm4 = vmor %vm232_vm1, %vm233_vm2  ;;  %v6532_v37 = vsel %vm718_vm0, %v5310_v5, 0 }
  0x11   : > { %v6536_v41 = vsel %vm718_vm0, %v6519_v26, 0  ;;  %vm1223_vm5 = vcmask 1042432   ;;  %vm1224_vm6 = vcmask 1046532   ;;  %s5017_s15 = sshll.u32 %s8394_s13, 1  ;;  %s5557_s19 = sshll.u32 %s8394_s13, 3 }
  0x12   : > { %s6500_s25 = scalar_lea.vmem %s8322_s0, %s6286_s22  ;;  %vm6752_vm7 = vmor %vm1223_vm5, %vm1224_vm6  ;;  %s181_s18 = scalar_lea.vmem %s8325_s3, %s5017_s15 }
  0x13   : > { %v183_v6 = vld [vmem:[%s6500_s25] sm:$0xf]  ;;  %v184_v7 = vld [vmem:[%s6500_s25 + $0x4] sm:$0xf]  ;;  %v216_v8 = vld [vmem:[%s6500_s25 + $0x8] sm:$0x1]  ;;  %s177_s22 = scalar_lea.vmem %s8324_s2, %s5557_s19 }
  0x14   : > { %v236_v9 = vshrl.u32 %v183_v6, 16  ;;  %v239_v10 = vshll.u32 %v183_v6, 16  ;;  %v245_v11 = vshll.u32 %v184_v7, 16  ;;  %v249_v12 = vshrl.u32 %v184_v7, 16  ;;  %v5197_v13 = vld [vmem:[%s6500_s25 + $0xc] sm:$0xf] }
  0x15   : > { %v255_v14 = vshll.u32 %v216_v8, 16  ;;  %v6507_v15 = vld [vmem:[%s6500_s25 + $0x10] sm:$0xf]  ;;  %v6510_v16 = vld [vmem:[%s6500_s25 + $0x14] sm:$0x1]  ;;  %v2040_v23 = vshrl.u32 %v5197_v13, 16 }
  0x16   : > { %v238_v18 = vrot.slane %v236_v9, 4  ;;  %v241_v19 = vrot.slane %v239_v10, 5  ;;  %v247_v20 = vrot.slane %v245_v11, 5  ;;  %v251_v21 = vrot.slane %v249_v12, 4  ;;  %v185_v31 = vld [vmem:[%s6500_s25 + $0xc] sm:$0xf] }
  0x17   : > { %v257_v22 = vrot.slane %v255_v14, 5  ;;  %v2043_v24 = vshll.u32 %v5197_v13, 16  ;;  %v2049_v25 = vshll.u32 %v6507_v15, 16  ;;  %v2053_v29 = vshrl.u32 %v6507_v15, 16  ;;  %v186_v36 = vld [vmem:[%s6500_s25 + $0x10] sm:$0xf] }
  0x18   : > { %v242_v27 = vor.u32 %v241_v19, %v238_v18  ;;  %v252_v28 = vor.u32 %v251_v21, %v247_v20  ;;  %v2059_v30 = vshll.u32 %v6510_v16, 16  ;;  %v2042_v33 = vrot.slane %v2040_v23, 4  ;;  %v217_v44 = vld [vmem:[%s6500_s25 + $0x14] sm:$0x1]  ;;  %v5200_v55 = vld [vmem:[%s6500_s25 + $0x18] sm:$0xf] }
  0x19   : > { %v2045_v34 = vrot.slane %v2043_v24, 5  ;;  %v2051_v35 = vrot.slane %v2049_v25, 5  ;;  %v2055_v40 = vrot.slane %v2053_v29, 4  ;;  %v260_v45 = vshrl.u32 %v185_v31, 16  ;;  %v6545_v60 = vld [vmem:[%s6500_s25 + $0x1c] sm:$0xf] }
  0x1a   : > { %v243_v38 = vrot.slane %v242_v27, 4  ;;  %v253_v39 = vrot.slane %v252_v28, 4  ;;  %v2061_v43 = vrot.slane %v2059_v30, 5  ;;  %v263_v46 = vshll.u32 %v185_v31, 16  ;;  %v6553_v1 = vld [vmem:[%s6500_s25 + $0x20] sm:$0x1] }
  0x1b   : > { %v2046_v42 = vor.u32 %v2045_v34, %v2042_v33  ;;  %v2056_v49 = vor.u32 %v2055_v40, %v2051_v35  ;;  %v269_v50 = vshll.u32 %v186_v36, 16  ;;  %v262_v53 = vrot.slane %v260_v45, 4  ;;  %v187_v18 = vld [vmem:[%s6500_s25 + $0x18] sm:$0xf]  ;;  %v188_v23 = vld [vmem:[%s6500_s25 + $0x1c] sm:$0xf] }
  0x1c   : > { %v248_v47 = vsel %vm6526_vm4, %v243_v38, %v247_v20  ;;  %v258_v48 = vsel %vm6526_vm4, %v253_v39, %v257_v22  ;;  %v265_v54 = vrot.slane %v263_v46, 5  ;;  %v273_v58 = vshrl.u32 %v186_v36, 16  ;;  %v218_v31 = vld [vmem:[%s6500_s25 + $0x20] sm:$0x1]  ;;  %v5203_v40 = vld [vmem:[%s6500_s25 + $0x24] sm:$0xf] }
  0x1d   : > { %v5019_v51 = vcombine.low %v248_v47, %v258_v48  ;;  %v2047_v52 = vrot.slane %v2046_v42, 4  ;;  %v2057_v56 = vrot.slane %v2056_v49, 4  ;;  %v271_v57 = vrot.slane %v269_v50, 5  ;;  %v6576_v46 = vld [vmem:[%s6500_s25 + $0x28] sm:$0xf] }
  0x1e   : > { %v279_v59 = vshll.u32 %v217_v44, 16  ;;  %v2783_v62 = vrot.slane %v6507_v15, 5  ;;  %v2786_v63 = vrot.slane %v6510_v16, 5  ;;  %v266_v0 = vor.u32 %v265_v54, %v262_v53  ;;  %v6585_v54 = vld [vmem:[%s6500_s25 + $0x2c] sm:$0x1] }
  0x1f   : > { %5714 = vmatprep.mubr.msk.bf16.mxu1 %vm669_vm3, %v5019_v51  ;;  %v2052_v61 = vsel %vm6526_vm4, %v2047_v52, %v2051_v35  ;;  %v2062_v2 = vsel %vm6526_vm4, %v2057_v56, %v2061_v43  ;;  %v275_v4 = vrot.slane %v273_v58, 4  ;;  %v2064_v6 = vshrl.u32 %v5200_v55, 16  ;;  %v5099_v51 = vld [vmem:[%s8323_s1 + $0x4] sm:$0x3]  ;;  %v6785_v16 = vld [vmem:[%s6500_s25 + $0x7c] sm:$0xf] }
  0x20   : > { %v281_v5 = vrot.slane %v279_v59, 5  ;;  %v5246_v7 = vcombine.low %v2052_v61, %v2062_v2  ;;  %v267_v8 = vrot.slane %v266_v0, 4  ;;  %v2067_v9 = vshll.u32 %v5200_v55, 16  ;;  %v189_v0 = vld [vmem:[%s6500_s25 + $0x24] sm:$0xf] }
  0x21   : > { %v2073_v10 = vshll.u32 %v6545_v60, 16  ;;  %v276_v11 = vor.u32 %v275_v4, %v271_v57  ;;  %v2066_v12 = vrot.slane %v2064_v6, 4  ;;  %v2077_v13 = vshrl.u32 %v6545_v60, 16 }
  0x22   : > { %v2083_v14 = vshll.u32 %v6553_v1, 16  ;;  %5850 = vmatprep.mubr.msk.bf16.mxu0 %vm669_vm3, %v5246_v7  ;;  %v272_v19 = vsel %vm6526_vm4, %v267_v8, %v271_v57  ;;  %v2069_v20 = vrot.slane %v2067_v9, 5  ;;  %v2790_v22 = vrot.slane %v6545_v60, 5  ;;  %v190_v7 = vld [vmem:[%s6500_s25 + $0x28] sm:$0xf] }
  0x23   : > { %v2075_v21 = vrot.slane %v2073_v10, 5  ;;  %v277_v24 = vrot.slane %v276_v11, 4  ;;  %v2079_v25 = vrot.slane %v2077_v13, 4  ;;  %v2793_v28 = vrot.slane %v6553_v1, 5  ;;  %v219_v13 = vld [vmem:[%s6500_s25 + $0x2c] sm:$0x1] }
  0x24   : > { %v2085_v27 = vrot.slane %v2083_v14, 5  ;;  %v2070_v29 = vor.u32 %v2069_v20, %v2066_v12  ;;  %v6569_v30 = vrot.slane %v2790_v22, 4  ;;  %v284_v33 = vshrl.u32 %v187_v18, 16 }
  0x25   : > { %v287_v34 = vshll.u32 %v187_v18, 16  ;;  %v282_v35 = vsel %vm6526_vm4, %v277_v24, %v281_v5  ;;  %v2080_v36 = vor.u32 %v2079_v25, %v2075_v21  ;;  %v293_v38 = vshll.u32 %v188_v23, 16  ;;  %v5206_v24 = vld [vmem:[%s6500_s25 + $0x30] sm:$0xf] }
  0x26   : > { %v297_v39 = vshrl.u32 %v188_v23, 16  ;;  %v5020_v42 = vcombine.low %v272_v19, %v282_v35  ;;  %v2071_v43 = vrot.slane %v2070_v29, 4  ;;  %v286_v44 = vrot.slane %v284_v33, 4  ;;  %v6605_v33 = vld [vmem:[%s6500_s25 + $0x34] sm:$0xf] }
  0x27   : > { %v289_v45 = vrot.slane %v287_v34, 5  ;;  %v2081_v47 = vrot.slane %v2080_v36, 4  ;;  %v295_v48 = vrot.slane %v293_v38, 5  ;;  %v303_v50 = vshll.u32 %v218_v31, 16 }
  0x28   : > { %v299_v49 = vrot.slane %v297_v39, 4  ;;  %5715 = vmatmul.mubr.msk.bf16.vlgmr.msra.gmra.mrb[0].mxu1 %vm669_vm3, %v5020_v42  ;;  %v2076_v52 = vsel %vm6526_vm4, %v2071_v43, %v2075_v21  ;;  %v2088_v55 = vshrl.u32 %v5203_v40, 16  ;;  %v2091_v56 = vshll.u32 %v5203_v40, 16  ;;  %v6613_v40 = vld [vmem:[%s6500_s25 + $0x38] sm:$0x1] }
  0x29   : > { %v290_v53 = vor.u32 %v289_v45, %v286_v44  ;;  %5747 = vmatpush3.bf16.msra.mxu1 %v6513_v17  ;;  %v2086_v57 = vsel %vm6526_vm4, %v2081_v47, %v2085_v27  ;;  %v305_v59 = vrot.slane %v303_v50, 5  ;;  %v2097_v61 = vshll.u32 %v6576_v46, 16 }
  0x2a   : > { %v300_v58 = vor.u32 %v299_v49, %v295_v48  ;;  %v5247_v2 = vcombine.low %v2076_v52, %v2086_v57  ;;  %v2090_v5 = vrot.slane %v2088_v55, 4  ;;  %v2093_v6 = vrot.slane %v2091_v56, 5  ;;  %6278 = vmatprep.subr.msk.bf16.mxu1 %vm718_vm0, %v5099_v51  ;;  %v191_v52 = vld [vmem:[%s6500_s25 + $0x30] sm:$0xf] }
  0x2b   : > { %v291_v4 = vrot.slane %v290_v53, 4  ;;  %v2099_v9 = vrot.slane %v2097_v61, 5  ;;  %v2101_v17 = vshrl.u32 %v6576_v46, 16  ;;  %v2107_v10 = vshll.u32 %v6585_v54, 16 }
  0x2c   : > { %v301_v8 = vrot.slane %v300_v58, 4  ;;  %5851 = vmatmul.mubr.msk.bf16.vlgmr.msra.gmra.mrb[0].mxu0 %vm669_vm3, %v5247_v2  ;;  %v2094_v12 = vor.u32 %v2093_v6, %v2090_v5  ;;  %v308_v14 = vshrl.u32 %v189_v0, 16  ;;  %v311_v18 = vshll.u32 %v189_v0, 16  ;;  %v192_v58 = vld [vmem:[%s6500_s25 + $0x34] sm:$0xf] }
  0x2d   : > { %v296_v11 = vsel %vm6526_vm4, %v291_v4, %v295_v48  ;;  %5883 = vmatpush3.bf16.msra.mxu0 %v6532_v37  ;;  %v2103_v20 = vrot.slane %v2101_v17, 4  ;;  %v2109_v21 = vrot.slane %v2107_v10, 5  ;;  %v317_v23 = vshll.u32 %v190_v7, 16  ;;  %v220_v4 = vld [vmem:[%s6500_s25 + $0x38] sm:$0x1] }
  0x2e   : > { %v306_v19 = vsel %vm6526_vm4, %v301_v8, %v305_v59  ;;  %v2095_v27 = vrot.slane %v2094_v12, 4  ;;  %v310_v29 = vrot.slane %v308_v14, 4  ;;  %v313_v31 = vrot.slane %v311_v18, 5  ;;  %6283 = vmatprep.subr.msk.bf16.mxu0 %vm718_vm0, %v6519_v26  ;;  %v5209_v12 = vld [vmem:[%s6500_s25 + $0x3c] sm:$0xf] }
  0x2f   : > { %v5021_v25 = vcombine.low %v296_v11, %v306_v19  ;;  %v2104_v34 = vor.u32 %v2103_v20, %v2099_v9  ;;  %v319_v35 = vrot.slane %v317_v23, 5  ;;  %v321_v37 = vshrl.u32 %v190_v7, 16  ;;  %v6630_v20 = vld [vmem:[%s6500_s25 + $0x40] sm:$0xf] }
  0x30   : > { %v327_v36 = vshll.u32 %v219_v13, 16  ;;  %v2100_v38 = vsel %vm6526_vm4, %v2095_v27, %v2099_v9  ;;  %v314_v39 = vor.u32 %v313_v31, %v310_v29  ;;  %v2112_v42 = vshrl.u32 %v5206_v24, 16 }
  0x31   : > { %5718 = vmatprep.mubr.msk.bf16.mxu1 %vm669_vm3, %v5021_v25  ;;  %v2115_v43 = vshll.u32 %v5206_v24, 16  ;;  %v2105_v44 = vrot.slane %v2104_v34, 4  ;;  %v323_v45 = vrot.slane %v321_v37, 4  ;;  %v2121_v26 = vshll.u32 %v6605_v33, 16  ;;  %v6635_v34 = vld [vmem:[%s6500_s25 + $0x44] sm:$0x1] }
  0x32   : > { %v329_v47 = vrot.slane %v327_v36, 5  ;;  %v315_v48 = vrot.slane %v314_v39, 4  ;;  %v2114_v49 = vrot.slane %v2112_v42, 4  ;;  %v2125_v51 = vshrl.u32 %v6605_v33, 16  ;;  %v193_v42 = vld [vmem:[%s6500_s25 + $0x3c] sm:$0xf] }
  0x33   : > { %v2117_v50 = vrot.slane %v2115_v43, 5  ;;  %v2110_v53 = vsel %vm6526_vm4, %v2105_v44, %v2109_v21  ;;  %v324_v55 = vor.u32 %v323_v45, %v319_v35  ;;  %v2123_v56 = vrot.slane %v2121_v26, 5  ;;  %v194_v26 = vld [vmem:[%s6500_s25 + $0x40] sm:$0xf] }
  0x34   : > { %v2131_v57 = vshll.u32 %v6613_v40, 16  ;;  %v5248_v59 = vcombine.low %v2100_v38, %v2110_v53  ;;  %v320_v61 = vsel %vm6526_vm4, %v315_v48, %v319_v35  ;;  %v2127_v2 = vrot.slane %v2125_v51, 4 }
  0x35   : > { %v2118_v0 = vor.u32 %v2117_v50, %v2114_v49  ;;  %v325_v5 = vrot.slane %v324_v55, 4  ;;  %v332_v7 = vshrl.u32 %v191_v52, 16  ;;  %v335_v8 = vshll.u32 %v191_v52, 16 }
  0x36   : > { %v2133_v6 = vrot.slane %v2131_v57, 5  ;;  %5854 = vmatprep.mubr.msk.bf16.mxu0 %vm669_vm3, %v5248_v59  ;;  %v2128_v17 = vor.u32 %v2127_v2, %v2123_v56  ;;  %v341_v10 = vshll.u32 %v192_v58, 16  ;;  %v345_v11 = vshrl.u32 %v192_v58, 16  ;;  %v5212_v2 = vld [vmem:[%s6500_s25 + $0x48] sm:$0xf] }
  0x37   : > { %v2119_v9 = vrot.slane %v2118_v0, 4  ;;  %v330_v13 = vsel %vm6526_vm4, %v325_v5, %v329_v47  ;;  %v334_v14 = vrot.slane %v332_v7, 4  ;;  %v337_v18 = vrot.slane %v335_v8, 5  ;;  %v6653_v8 = vld [vmem:[%s6500_s25 + $0x4c] sm:$0xf] }
  0x38   : > { %v351_v19 = vshll.u32 %v220_v4, 16  ;;  %v5022_v21 = vcombine.low %v320_v61, %v330_v13  ;;  %v2129_v24 = vrot.slane %v2128_v17, 4  ;;  %v343_v25 = vrot.slane %v341_v10, 5  ;;  %v221_v61 = vld [vmem:[%s6500_s25 + $0x44] sm:$0x1] }
  0x39   : > { %v2124_v23 = vsel %vm6526_vm4, %v2119_v9, %v2123_v56  ;;  %v338_v27 = vor.u32 %v337_v18, %v334_v14  ;;  %v347_v29 = vrot.slane %v345_v11, 4  ;;  %v2136_v35 = vshrl.u32 %v5209_v12, 16 }
  0x3a   : > { %v353_v31 = vrot.slane %v351_v19, 5  ;;  %5719 = vmatmul.mubr.msk.bf16.gmra.mrb[4].mxu1 %vm669_vm3, %v5022_v21  ;;  %v2134_v37 = vsel %vm6526_vm4, %v2129_v24, %v2133_v6  ;;  %v2139_v36 = vshll.u32 %v5209_v12, 16  ;;  %v2145_v38 = vshll.u32 %v6630_v20, 16 }
  0x3b   : > { %v2149_v39 = vshrl.u32 %v6630_v20, 16  ;;  %v5249_v43 = vcombine.low %v2124_v23, %v2134_v37  ;;  %v339_v44 = vrot.slane %v338_v27, 4  ;;  %v348_v45 = vor.u32 %v347_v29, %v343_v25  ;;  %v6661_v23 = vld [vmem:[%s6500_s25 + $0x50] sm:$0x1]  ;;  %v6665_v27 = vld [vmem:[%s6500_s25 + $0x48] sm:$0xf] }
  0x3c   : > { %v2138_v47 = vrot.slane %v2136_v35, 4  ;;  %v2141_v48 = vrot.slane %v2139_v36, 5  ;;  %v2147_v49 = vrot.slane %v2145_v38, 5  ;;  %v2155_v51 = vshll.u32 %v6635_v34, 16  ;;  %v6668_v36 = vld [vmem:[%s6500_s25 + $0x4c] sm:$0xf] }
  0x3d   : > { %v2151_v50 = vrot.slane %v2149_v39, 4  ;;  %5855 = vmatmul.mubr.msk.bf16.gmra.mrb[4].mxu0 %vm669_vm3, %v5249_v43  ;;  %v344_v52 = vsel %vm6526_vm4, %v339_v44, %v343_v25  ;;  %v349_v53 = vrot.slane %v348_v45, 4  ;;  %v356_v55 = vshrl.u32 %v193_v42, 16 }
  0x3e   : > { %v359_v56 = vshll.u32 %v193_v42, 16  ;;  %v2142_v57 = vor.u32 %v2141_v48, %v2138_v47  ;;  %v2157_v59 = vrot.slane %v2155_v51, 5  ;;  %v365_v0 = vshll.u32 %v194_v26, 16 }
  0x3f   : > { %v2152_v58 = vor.u32 %v2151_v50, %v2147_v49  ;;  %v354_v4 = vsel %vm6526_vm4, %v349_v53, %v353_v31  ;;  %v358_v5 = vrot.slane %v356_v55, 4  ;;  %v369_v7 = vshrl.u32 %v194_v26, 16  ;;  %v222_v26 = vld [vmem:[%s6500_s25 + $0x50] sm:$0x1]  ;;  %v5215_v53 = vld [vmem:[%s6500_s25 + $0x54] sm:$0xf] }
  0x40   : > { %v361_v6 = vrot.slane %v359_v56, 5  ;;  %v5023_v9 = vcombine.low %v344_v52, %v354_v4  ;;  %v2143_v17 = vrot.slane %v2142_v57, 4  ;;  %v367_v11 = vrot.slane %v365_v0, 5  ;;  %v6684_v4 = vld [vmem:[%s6500_s25 + $0x58] sm:$0xf] }
  0x41   : > { %v2153_v10 = vrot.slane %v2152_v58, 4  ;;  %v371_v13 = vrot.slane %v369_v7, 4  ;;  %v375_v14 = vshll.u32 %v221_v61, 16  ;;  %v2160_v18 = vshrl.u32 %v5212_v2, 16 }
  0x42   : > { %v362_v12 = vor.u32 %v361_v6, %v358_v5  ;;  %5722 = vmatprep.mubr.msk.bf16.mxu1 %vm669_vm3, %v5023_v9  ;;  %v2148_v19 = vsel %vm6526_vm4, %v2143_v17, %v2147_v49  ;;  %v2163_v24 = vshll.u32 %v5212_v2, 16  ;;  %v2169_v25 = vshll.u32 %v6653_v8, 16 }
  0x43   : > { %v2158_v21 = vsel %vm6526_vm4, %v2153_v10, %v2157_v59  ;;  %v372_v35 = vor.u32 %v371_v13, %v367_v11  ;;  %v377_v37 = vrot.slane %v375_v14, 5  ;;  %v2162_v38 = vrot.slane %v2160_v18, 4 }
  0x44   : > { %v5250_v29 = vcombine.low %v2148_v19, %v2158_v21  ;;  %v363_v31 = vrot.slane %v362_v12, 4  ;;  %v2165_v39 = vrot.slane %v2163_v24, 5  ;;  %v2171_v42 = vrot.slane %v2169_v25, 5  ;;  %v6690_v12 = vld [vmem:[%s6500_s25 + $0x5c] sm:$0x1] }
  0x45   : > { %v2173_v43 = vshrl.u32 %v6653_v8, 16  ;;  %v373_v45 = vrot.slane %v372_v35, 4  ;;  %v2179_v47 = vshll.u32 %v6661_v23, 16  ;;  %v380_v48 = vshrl.u32 %v6665_v27, 16  ;;  %v6694_v24 = vld [vmem:[%s6500_s25 + $0x54] sm:$0xf] }
  0x46   : > { %5858 = vmatprep.mubr.msk.bf16.mxu0 %vm669_vm3, %v5250_v29  ;;  %v368_v44 = vsel %vm6526_vm4, %v363_v31, %v367_v11  ;;  %v2166_v49 = vor.u32 %v2165_v39, %v2162_v38  ;;  %v383_v51 = vshll.u32 %v6665_v27, 16  ;;  %v389_v52 = vshll.u32 %v6668_v36, 16 }
  0x47   : > { %v2175_v50 = vrot.slane %v2173_v43, 4  ;;  %v378_v55 = vsel %vm6526_vm4, %v373_v45, %v377_v37  ;;  %v2181_v56 = vrot.slane %v2179_v47, 5  ;;  %v382_v57 = vrot.slane %v380_v48, 4  ;;  %v6700_v37 = vld [vmem:[%s6500_s25 + $0x58] sm:$0xf] }
  0x48   : > { %v393_v58 = vshrl.u32 %v6668_v36, 16  ;;  %v5024_v59 = vcombine.low %v368_v44, %v378_v55  ;;  %v2167_v61 = vrot.slane %v2166_v49, 4  ;;  %v385_v2 = vrot.slane %v383_v51, 5 }
  0x49   : > { %v2176_v0 = vor.u32 %v2175_v50, %v2171_v42  ;;  %v391_v5 = vrot.slane %v389_v52, 5  ;;  %v399_v7 = vshll.u32 %v222_v26, 16  ;;  %v2184_v9 = vshrl.u32 %v5215_v53, 16  ;;  %v223_v26 = vld [vmem:[%s6500_s25 + $0x5c] sm:$0x1] }
  0x4a   : > { %v395_v6 = vrot.slane %v393_v58, 4  ;;  %5723 = vmatmul.mubr.msk.bf16.gmra.mrb[8].mxu1 %vm669_vm3, %v5024_v59  ;;  %v2172_v17 = vsel %vm6526_vm4, %v2167_v61, %v2171_v42  ;;  %v386_v11 = vor.u32 %v385_v2, %v382_v57  ;;  %v2187_v13 = vshll.u32 %v5215_v53, 16  ;;  %v5218_v53 = vld [vmem:[%s6500_s25 + $0x60] sm:$0xf]  ;;  %v6714_v59 = vld [vmem:[%s6500_s25 + $0x64] sm:$0xf] }
  0x4b   : > { %v2177_v10 = vrot.slane %v2176_v0, 4  ;;  %v401_v18 = vrot.slane %v399_v7, 5  ;;  %v2186_v19 = vrot.slane %v2184_v9, 4  ;;  %v2193_v21 = vshll.u32 %v6684_v4, 16  ;;  %v6721_v9 = vld [vmem:[%s6500_s25 + $0x68] sm:$0x1] }
  0x4c   : > { %v396_v14 = vor.u32 %v395_v6, %v391_v5  ;;  %v387_v29 = vrot.slane %v386_v11, 4  ;;  %v2189_v31 = vrot.slane %v2187_v13, 5  ;;  %v2197_v35 = vshrl.u32 %v6684_v4, 16 }
  0x4d   : > { %v2182_v25 = vsel %vm6526_vm4, %v2177_v10, %v2181_v56  ;;  %v2195_v42 = vrot.slane %v2193_v21, 5  ;;  %v2203_v43 = vshll.u32 %v6690_v12, 16  ;;  %v404_v48 = vshrl.u32 %v6694_v24, 16 }
  0x4e   : > { %v5251_v38 = vcombine.low %v2172_v17, %v2182_v25  ;;  %v397_v39 = vrot.slane %v396_v14, 4  ;;  %v392_v44 = vsel %vm6526_vm4, %v387_v29, %v391_v5  ;;  %v2190_v45 = vor.u32 %v2189_v31, %v2186_v19  ;;  %v6725_v19 = vld [vmem:[%s6500_s25 + $0x60] sm:$0xf] }
  0x4f   : > { %v2199_v47 = vrot.slane %v2197_v35, 4  ;;  %v2205_v50 = vrot.slane %v2203_v43, 5  ;;  %v407_v51 = vshll.u32 %v6694_v24, 16  ;;  %v413_v52 = vshll.u32 %v6700_v37, 16  ;;  %v6731_v35 = vld [vmem:[%s6500_s25 + $0x64] sm:$0xf] }
  0x50   : > { %5859 = vmatmul.mubr.msk.bf16.gmra.mrb[8].mxu0 %vm669_vm3, %v5251_v38  ;;  %v402_v49 = vsel %vm6526_vm4, %v397_v39, %v401_v18  ;;  %v2191_v56 = vrot.slane %v2190_v45, 4  ;;  %v406_v58 = vrot.slane %v404_v48, 4  ;;  %v417_v2 = vshrl.u32 %v6700_v37, 16 }
  0x51   : > { %v5025_v55 = vcombine.low %v392_v44, %v402_v49  ;;  %v2200_v57 = vor.u32 %v2199_v47, %v2195_v42  ;;  %v409_v61 = vrot.slane %v407_v51, 5  ;;  %v415_v0 = vrot.slane %v413_v52, 5 }
  0x52   : > { %v423_v5 = vshll.u32 %v223_v26, 16  ;;  %v2196_v6 = vsel %vm6526_vm4, %v2191_v56, %v2195_v42  ;;  %v2208_v17 = vshrl.u32 %v5218_v53, 16  ;;  %v2211_v10 = vshll.u32 %v5218_v53, 16 }
  0x53   : > { %5726 = vmatprep.mubr.msk.bf16.mxu1 %vm669_vm3, %v5025_v55  ;;  %v2201_v7 = vrot.slane %v2200_v57, 4  ;;  %v410_v11 = vor.u32 %v409_v61, %v406_v58  ;;  %v419_v13 = vrot.slane %v417_v2, 4  ;;  %v2217_v18 = vshll.u32 %v6714_v59, 16  ;;  %v5278_v58 = vld [vmem:[%s6500_s25 + $0xc] sm:$0xe] }
  0x54   : > { %v425_v14 = vrot.slane %v423_v5, 5  ;;  %v2210_v25 = vrot.slane %v2208_v17, 4  ;;  %v2213_v29 = vrot.slane %v2211_v10, 5  ;;  %v2221_v31 = vshrl.u32 %v6714_v59, 16 }
  0x55   : > { %v2206_v21 = vsel %vm6526_vm4, %v2201_v7, %v2205_v50  ;;  %v411_v39 = vrot.slane %v410_v11, 4  ;;  %v420_v42 = vor.u32 %v419_v13, %v415_v0  ;;  %v2219_v43 = vrot.slane %v2217_v18, 5  ;;  %v224_v50 = vld [vmem:[%s6500_s25 + $0x68] sm:$0x1] }
  0x56   : > { %v5252_v38 = vcombine.low %v2196_v6, %v2206_v21  ;;  %v2214_v44 = vor.u32 %v2213_v29, %v2210_v25  ;;  %v2223_v45 = vrot.slane %v2221_v31, 4  ;;  %v2227_v47 = vshll.u32 %v6721_v9, 16  ;;  %v6759_v29 = vld [vmem:[%s6500_s25 + $0x70] sm:$0xf] }
  0x57   : > { %v428_v26 = vshrl.u32 %v6725_v19, 16  ;;  %v416_v48 = vsel %vm6526_vm4, %v411_v39, %v415_v0  ;;  %v421_v49 = vrot.slane %v420_v42, 4  ;;  %v431_v51 = vshll.u32 %v6725_v19, 16  ;;  %v6746_v0 = vld [vmem:[%s6500_s25 + $0x6c] sm:$0xf] }
  0x58   : > { %5862 = vmatprep.mubr.msk.bf16.mxu0 %vm669_vm3, %v5252_v38  ;;  %v437_v52 = vshll.u32 %v6731_v35, 16  ;;  %v2215_v53 = vrot.slane %v2214_v44, 4  ;;  %v2224_v55 = vor.u32 %v2223_v45, %v2219_v43  ;;  %v2229_v56 = vrot.slane %v2227_v47, 5 }
  0x59   : > { %v430_v57 = vrot.slane %v428_v26, 4  ;;  %v426_v61 = vsel %vm6526_vm4, %v421_v49, %v425_v14  ;;  %v433_v2 = vrot.slane %v431_v51, 5  ;;  %v441_v6 = vshrl.u32 %v6731_v35, 16  ;;  %v225_v26 = vld [vmem:[%s6500_s25 + $0x74] sm:$0x1] }
  0x5a   : > { %v439_v5 = vrot.slane %v437_v52, 5  ;;  %v5026_v7 = vcombine.low %v416_v48, %v426_v61  ;;  %v2220_v17 = vsel %vm6526_vm4, %v2215_v53, %v2219_v43  ;;  %v2225_v10 = vrot.slane %v2224_v55, 4  ;;  %v5279_v48 = vld [vmem:[%s6500_s25 + $0x18] sm:$0xe] }
  0x5b   : > { %v447_v11 = vshll.u32 %v224_v50, 16  ;;  %v434_v14 = vor.u32 %v433_v2, %v430_v57  ;;  %v443_v18 = vrot.slane %v441_v6, 4  ;;  %v5294_v21 = vrot.slane %v5278_v58, 9  ;;  %v6778_v53 = vld [vmem:[%s6500_s25 + $0x78] sm:$0xf] }
  0x5c   : > { %v2785_v25 = vrot.slane %v2783_v62, 4  ;;  %5727 = vmatmul.mubr.msk.bf16.gmra.mrb[12].mxu1 %vm669_vm3, %v5026_v7  ;;  %v2230_v31 = vsel %vm6526_vm4, %v2225_v10, %v2229_v56  ;;  %v452_v39 = vshrl.u32 %v6746_v0, 16  ;;  %v455_v42 = vshll.u32 %v6746_v0, 16  ;;  %v226_v57 = vld [vmem:[%s6500_s25 + $0x80] sm:$0x1] }
  0x5d   : > { %v449_v38 = vrot.slane %v447_v11, 5  ;;  %v5253_v43 = vcombine.low %v2220_v17, %v2230_v31  ;;  %v435_v44 = vrot.slane %v434_v14, 4  ;;  %v444_v45 = vor.u32 %v443_v18, %v439_v5  ;;  %v5280_v10 = vld [vmem:[%s6500_s25 + $0x24] sm:$0xe] }
  0x5e   : > { %v2784_v47 = vsel %vm6752_vm7, %v5294_v21, %v2783_v62  ;;  %v2787_v49 = vsel %vm6752_vm7, %v2785_v25, %v2786_v63  ;;  %v454_v50 = vrot.slane %v452_v39, 4  ;;  %v457_v51 = vrot.slane %v455_v42, 5  ;;  %v6804_v39 = vld [vmem:[%s6500_s25 + $0x84] sm:$0xf] }
  0x5f   : > { %v461_v52 = vshll.u32 %v6759_v29, 16  ;;  %5863 = vmatmul.mubr.msk.bf16.gmra.mrb[12].mxu0 %vm669_vm3, %v5253_v43  ;;  %v440_v15 = vsel %vm6526_vm4, %v435_v44, %v439_v5  ;;  %v445_v62 = vrot.slane %v444_v45, 4  ;;  %v5311_v55 = vcombine.low %v2784_v47, %v2787_v49  ;;  %v6812_v43 = vld [vmem:[%s6500_s25 + $0x88] sm:$0xf] }
  0x60   : > { %v465_v56 = vshrl.u32 %v6759_v29, 16  ;;  %v458_v63 = vor.u32 %v457_v51, %v454_v50  ;;  %v471_v61 = vshll.u32 %v225_v26, 16  ;;  %v5295_v2 = vrot.slane %v5279_v48, 9 }
  0x61   : > { %v463_v58 = vrot.slane %v461_v52, 5  ;;  %v450_v6 = vsel %vm6526_vm4, %v445_v62, %v449_v38  ;;  %5884 = vmatprep.mubr.msk.bf16.mxu0 %vm669_vm3, %v5311_v55  ;;  %v2794_v5 = vsel %vm6752_vm7, %v6569_v30, %v2793_v28  ;;  %v476_v17 = vshrl.u32 %v6778_v53, 16  ;;  %v227_v52 = vld [vmem:[%s6500_s25 + $0x8c] sm:$0x1] }
  0x62   : > { %v467_v7 = vrot.slane %v465_v56, 4  ;;  %v5027_v11 = vcombine.low %v440_v15, %v450_v6  ;;  %v459_v14 = vrot.slane %v458_v63, 4  ;;  %v473_v18 = vrot.slane %v471_v61, 5 }
  0x63   : > { %v2791_v21 = vsel %vm6752_vm7, %v5295_v2, %v2790_v22  ;;  %v478_v38 = vrot.slane %v476_v17, 4  ;;  %v479_v1 = vshll.u32 %v6778_v53, 16  ;;  %v485_v30 = vshll.u32 %v6785_v16, 16  ;;  %v6817_v22 = vld [vmem:[%s8323_s1 + $0xe] sm:$0x3] }
  0x64   : > { %v468_v25 = vor.u32 %v467_v7, %v463_v58  ;;  %v5312_v31 = vcombine.low %v2791_v21, %v2794_v5  ;;  %5730 = vmatprep.mubr.msk.bf16.mxu1 %vm669_vm3, %v5027_v11  ;;  %v464_v28 = vsel %vm6526_vm4, %v459_v14, %v463_v58  ;;  %v489_v60 = vshrl.u32 %v6785_v16, 16  ;;  %v6836_v5 = vld [vmem:[%s6500_s25 + $0x90] sm:$0xf] }
  0x65   : > { %v495_v42 = vshll.u32 %v226_v57, 16  ;;  %v481_v45 = vrot.slane %v479_v1, 5  ;;  %v5296_v47 = vrot.slane %v5280_v10, 9  ;;  %v2797_v26 = vrot.slane %v6576_v46, 5  ;;  %v5281_v57 = vld [vmem:[%s6500_s25 + $0x30] sm:$0xe] }
  0x66   : > { %v469_v44 = vrot.slane %v468_v25, 4  ;;  %v487_v48 = vrot.slane %v485_v30, 5  ;;  %v491_v49 = vrot.slane %v489_v60, 4  ;;  %v2800_v51 = vrot.slane %v6585_v54, 5  ;;  %v6848_v30 = vld [vmem:[%s6500_s25 + $0x94] sm:$0xf] }
  0x67   : > { %v497_v50 = vrot.slane %v495_v42, 5  ;;  %5885 = vmatmul.mubr.msk.bf16.vlgmr.msra.gmra.mrb[0].mxu0 %vm669_vm3, %v5312_v31  ;;  %v482_v62 = vor.u32 %v481_v45, %v478_v38  ;;  %v2798_v55 = vsel %vm6752_vm7, %v5296_v47, %v2797_v26  ;;  %v2799_v56 = vrot.slane %v2797_v26, 4  ;;  %v228_v60 = vld [vmem:[%s6500_s25 + $0x98] sm:$0x1]  ;;  %v5282_v26 = vld [vmem:[%s6500_s25 + $0x3c] sm:$0xe] }
  0x68   : > { %v474_v15 = vsel %vm6526_vm4, %v469_v44, %v473_v18  ;;  %5917 = vmatpush3.bf16.msra.mxu0 %v6536_v41  ;;  %v492_v46 = vor.u32 %v491_v49, %v487_v48  ;;  %v500_v58 = vshrl.u32 %v6804_v39, 16  ;;  %v503_v54 = vshll.u32 %v6804_v39, 16 }
  0x69   : > { %v5028_v63 = vcombine.low %v464_v28, %v474_v15  ;;  %v483_v61 = vrot.slane %v482_v62, 4  ;;  %v2801_v2 = vsel %vm6752_vm7, %v2799_v56, %v2800_v51  ;;  %v509_v6 = vshll.u32 %v6812_v43, 16  ;;  %6284 = vmatprep.subr.msk.bf16.mxu0 %vm718_vm0, %v6817_v22 }
  0x6a   : > { %v513_v7 = vshrl.u32 %v6812_v43, 16  ;;  %v493_v41 = vrot.slane %v492_v46, 4  ;;  %v5313_v17 = vcombine.low %v2798_v55, %v2801_v2  ;;  %v502_v10 = vrot.slane %v500_v58, 4  ;;  %v6868_v46 = vld [vmem:[%s6500_s25 + $0xa0] sm:$0xf] }
  0x6b   : > { %5731 = vmatmul.mubr.msk.bf16.gmra.mrb[16].mxu1 %vm669_vm3, %v5028_v63  ;;  %v505_v11 = vrot.slane %v503_v54, 5  ;;  %v488_v14 = vsel %vm6526_vm4, %v483_v61, %v487_v48  ;;  %v511_v18 = vrot.slane %v509_v6, 5  ;;  %v519_v25 = vshll.u32 %v227_v52, 16  ;;  %v6857_v52 = vld [vmem:[%s6500_s25 + $0x9c] sm:$0xf] }
  0x6c   : > { %v515_v21 = vrot.slane %v513_v7, 4  ;;  %v498_v31 = vsel %vm6526_vm4, %v493_v41, %v497_v50  ;;  %5888 = vmatprep.mubr.msk.bf16.mxu0 %vm669_vm3, %v5313_v17  ;;  %v5297_v1 = vrot.slane %v5281_v57, 9  ;;  %v2804_v28 = vrot.slane %v6605_v33, 5 }
  0x6d   : > { %v506_v38 = vor.u32 %v505_v11, %v502_v10  ;;  %v5029_v42 = vcombine.low %v488_v14, %v498_v31  ;;  %v521_v45 = vrot.slane %v519_v25, 5  ;;  %v2807_v47 = vrot.slane %v6613_v40, 5  ;;  %v229_v10 = vld [vmem:[%s6500_s25 + $0xa4] sm:$0x1]  ;;  %v5283_v11 = vld [vmem:[%s6500_s25 + $0x48] sm:$0xe] }
  0x6e   : > { %v516_v44 = vor.u32 %v515_v21, %v511_v18  ;;  %v2805_v49 = vsel %vm6752_vm7, %v5297_v1, %v2804_v28  ;;  %v2806_v50 = vrot.slane %v2804_v28, 4  ;;  %v524_v51 = vshrl.u32 %v6836_v5, 16 }
  0x6f   : > { %v507_v48 = vrot.slane %v506_v38, 4  ;;  %5734 = vmatprep.mubr.msk.bf16.mxu1 %vm669_vm3, %v5029_v42  ;;  %v527_v15 = vshll.u32 %v6836_v5, 16  ;;  %v533_v62 = vshll.u32 %v6848_v30, 16  ;;  %v537_v40 = vshrl.u32 %v6848_v30, 16 }
  0x70   : > { %v517_v33 = vrot.slane %v516_v44, 4  ;;  %v2808_v56 = vsel %vm6752_vm7, %v2806_v50, %v2807_v47  ;;  %v526_v57 = vrot.slane %v524_v51, 4  ;;  %v543_v63 = vshll.u32 %v228_v60, 16 }
  0x71   : > { %v512_v55 = vsel %vm6526_vm4, %v507_v48, %v511_v18  ;;  %v5314_v54 = vcombine.low %v2805_v49, %v2808_v56  ;;  %v529_v61 = vrot.slane %v527_v15, 5  ;;  %v535_v2 = vrot.slane %v533_v62, 5  ;;  %v6894_v56 = vld [vmem:[%s6500_s25 + $0xac] sm:$0xf] }
  0x72   : > { %v522_v58 = vsel %vm6526_vm4, %v517_v33, %v521_v45  ;;  %v539_v7 = vrot.slane %v537_v40, 4  ;;  %v545_v41 = vrot.slane %v543_v63, 5  ;;  %v5298_v17 = vrot.slane %v5282_v26, 9  ;;  %v6889_v33 = vld [vmem:[%s6500_s25 + $0xa8] sm:$0xf] }
  0x73   : > { %v5030_v6 = vcombine.low %v512_v55, %v522_v58  ;;  %5889 = vmatmul.mubr.msk.bf16.gmra.mrb[4].mxu0 %vm669_vm3, %v5314_v54  ;;  %v530_v14 = vor.u32 %v529_v61, %v526_v57  ;;  %v2811_v18 = vrot.slane %v6630_v20, 5  ;;  %v2814_v21 = vrot.slane %v6635_v34, 5  ;;  %v230_v61 = vld [vmem:[%s6500_s25 + $0xb0] sm:$0x1] }
  0x74   : > { %v548_v25 = vshrl.u32 %v6857_v52, 16  ;;  %v540_v31 = vor.u32 %v539_v7, %v535_v2  ;;  %v551_v38 = vshll.u32 %v6857_v52, 16  ;;  %v557_v1 = vshll.u32 %v6868_v46, 16 }
  0x75   : > { %5735 = vmatmul.mubr.msk.bf16.gmra.mrb[20].mxu1 %vm669_vm3, %v5030_v6  ;;  %v561_v28 = vshrl.u32 %v6868_v46, 16  ;;  %v531_v60 = vrot.slane %v530_v14, 4  ;;  %v2812_v42 = vsel %vm6752_vm7, %v5298_v17, %v2811_v18  ;;  %v2813_v20 = vrot.slane %v2811_v18, 4  ;;  %v6909_v14 = vld [vmem:[%s6500_s25 + $0xb4] sm:$0xf] }
  0x76   : > { %v550_v44 = vrot.slane %v548_v25, 4  ;;  %v541_v34 = vrot.slane %v540_v31, 4  ;;  %v553_v45 = vrot.slane %v551_v38, 5  ;;  %v559_v47 = vrot.slane %v557_v1, 5 }
  0x77   : > { %v563_v26 = vrot.slane %v561_v28, 4  ;;  %v536_v48 = vsel %vm6526_vm4, %v531_v60, %v535_v2  ;;  %v2815_v49 = vsel %vm6752_vm7, %v2813_v20, %v2814_v21  ;;  %v567_v50 = vshll.u32 %v229_v10, 16  ;;  %v5284_v2 = vld [vmem:[%s6500_s25 + $0x54] sm:$0xe] }
  0x78   : > { %v5299_v51 = vrot.slane %v5283_v11, 9  ;;  %v546_v15 = vsel %vm6526_vm4, %v541_v34, %v545_v41  ;;  %v5315_v62 = vcombine.low %v2812_v42, %v2815_v49  ;;  %v554_v40 = vor.u32 %v553_v45, %v550_v44  ;;  %v6918_v42 = vld [vmem:[%s6500_s25 + $0xb8] sm:$0xf]  ;;  %v231_v49 = vld [vmem:[%s6500_s25 + $0xbc] sm:$0x1] }
  0x79   : > { %v564_v55 = vor.u32 %v563_v26, %v559_v47  ;;  %v5031_v57 = vcombine.low %v536_v48, %v546_v15  ;;  %v569_v63 = vrot.slane %v567_v50, 5  ;;  %v2818_v58 = vrot.slane %v6653_v8, 5 }
  0x7a   : > { %v2821_v54 = vrot.slane %v6661_v23, 5  ;;  %5892 = vmatprep.mubr.msk.bf16.mxu0 %vm669_vm3, %v5315_v62  ;;  %v555_v6 = vrot.slane %v554_v40, 4  ;;  %v572_v41 = vshrl.u32 %v6889_v33, 16  ;;  %v575_v17 = vshll.u32 %v6889_v33, 16 }
  0x7b   : > { %v565_v7 = vrot.slane %v564_v55, 4  ;;  %5738 = vmatprep.mubr.msk.bf16.mxu1 %vm669_vm3, %v5031_v57  ;;  %v2819_v10 = vsel %vm6752_vm7, %v5299_v51, %v2818_v58  ;;  %v2820_v11 = vrot.slane %v2818_v58, 4  ;;  %v581_v8 = vshll.u32 %v6894_v56, 16  ;;  %v5285_v55 = vld [vmem:[%s6500_s25 + $0x60] sm:$0xe] }
  0x7c   : > { %v585_v23 = vshrl.u32 %v6894_v56, 16  ;;  %v560_v18 = vsel %vm6526_vm4, %v555_v6, %v559_v47  ;;  %v574_v25 = vrot.slane %v572_v41, 4  ;;  %v577_v31 = vrot.slane %v575_v17, 5  ;;  %v5286_v6 = vld [vmem:[%s6500_s25 + $0x6c] sm:$0xe] }
  0x7d   : > { %v570_v21 = vsel %vm6526_vm4, %v565_v7, %v569_v63  ;;  %v2822_v1 = vsel %vm6752_vm7, %v2820_v11, %v2821_v54  ;;  %v583_v28 = vrot.slane %v581_v8, 5  ;;  %v591_v34 = vshll.u32 %v230_v61, 16  ;;  %v5222_v11 = vld [vmem:[%s6500_s25 + $0x70] sm:$0xf]  ;;  %v5223_v8 = vld [vmem:[%s6500_s25 + $0x74] sm:$0x1] }
  0x7e   : > { %v5032_v38 = vcombine.low %v560_v18, %v570_v21  ;;  %v587_v60 = vrot.slane %v585_v23, 4  ;;  %v5316_v20 = vcombine.low %v2819_v10, %v2822_v1  ;;  %v578_v44 = vor.u32 %v577_v31, %v574_v25 }
  0x7f   : > { %v5300_v45 = vrot.slane %v5284_v2, 9  ;;  %v2825_v26 = vrot.slane %v6684_v4, 5  ;;  %v2828_v48 = vrot.slane %v6690_v12, 5  ;;  %v596_v50 = vshrl.u32 %v6909_v14, 16 }
  0x80   : > { %5739 = vmatmul.mubr.msk.bf16.gmra.mrb[24].mxu1 %vm669_vm3, %v5032_v38  ;;  %v588_v47 = vor.u32 %v587_v60, %v583_v28  ;;  %5893 = vmatmul.mubr.msk.bf16.gmra.mrb[8].mxu0 %vm669_vm3, %v5316_v20  ;;  %v579_v51 = vrot.slane %v578_v44, 4  ;;  %v593_v15 = vrot.slane %v591_v34, 5  ;;  %v599_v62 = vshll.u32 %v6909_v14, 16 }
  0x81   : > { %v605_v40 = vshll.u32 %v6918_v42, 16  ;;  %v2826_v4 = vsel %vm6752_vm7, %v5300_v45, %v2825_v26  ;;  %v2827_v12 = vrot.slane %v2825_v26, 4  ;;  %v598_v63 = vrot.slane %v596_v50, 4 }
  0x82   : > { %v589_v57 = vrot.slane %v588_v47, 4  ;;  %v584_v58 = vsel %vm6526_vm4, %v579_v51, %v583_v28  ;;  %v601_v54 = vrot.slane %v599_v62, 5  ;;  %v609_v2 = vshrl.u32 %v6918_v42, 16  ;;  %v5287_v47 = vld [vmem:[%s6500_s25 + $0x78] sm:$0xe] }
  0x83   : > { %v607_v61 = vrot.slane %v605_v40, 5  ;;  %v2829_v41 = vsel %vm6752_vm7, %v2827_v12, %v2828_v48  ;;  %v615_v17 = vshll.u32 %v231_v49, 16  ;;  %v5301_v10 = vrot.slane %v5285_v55, 9  ;;  %v6380_v51 = vld [vmem:[%s6500_s25] sm:$0xf] }
  0x84   : > { %v594_v7 = vsel %vm6526_vm4, %v589_v57, %v593_v15  ;;  %v5317_v18 = vcombine.low %v2826_v4, %v2829_v41  ;;  %v602_v21 = vor.u32 %v601_v54, %v598_v63  ;;  %v611_v25 = vrot.slane %v609_v2, 4  ;;  %v6956_v15 = vld [vmem:[%s6500_s25 + $0x4] sm:$0xf]  ;;  %v6960_v40 = vld [vmem:[%s6500_s25 + $0x7c] sm:$0xf] }
  0x85   : > { %v5033_v23 = vcombine.low %v584_v58, %v594_v7  ;;  %v617_v31 = vrot.slane %v615_v17, 5  ;;  %v2832_v38 = vrot.slane %v6714_v59, 5  ;;  %v2835_v1 = vrot.slane %v6721_v9, 5  ;;  %v6963_v55 = vld [vmem:[%s6500_s25 + $0x80] sm:$0x1] }
  0x86   : > { %v5302_v28 = vrot.slane %v5286_v6, 9  ;;  %5896 = vmatprep.mubr.msk.bf16.mxu0 %vm669_vm3, %v5317_v18  ;;  %v603_v60 = vrot.slane %v602_v21, 4  ;;  %v612_v20 = vor.u32 %v611_v25, %v607_v61  ;;  %v2839_v44 = vrot.slane %v5222_v11, 5  ;;  %v5228_v57 = vld [vmem:[%s6500_s25 + $0x88] sm:$0xf] }
  0x87   : > { %5742 = vmatprep.mubr.msk.bf16.mxu1 %vm669_vm3, %v5033_v23  ;;  %v2842_v34 = vrot.slane %v5223_v8, 5  ;;  %v2833_v45 = vsel %vm6752_vm7, %v5301_v10, %v2832_v38  ;;  %v2834_v59 = vrot.slane %v2832_v38, 4  ;;  %v5051_v62 = vcombine.low %v6380_v51, %v6956_v15  ;;  %v5229_v54 = vld [vmem:[%s6500_s25 + $0x8c] sm:$0x1]  ;;  %v5231_v17 = vld [vmem:[%s6500_s25 + $0x94] sm:$0xf] }
  0x88   : > { %v608_v9 = vsel %vm6526_vm4, %v603_v60, %v607_v61  ;;  %v613_v26 = vrot.slane %v612_v20, 4  ;;  %v2840_v48 = vsel %vm6752_vm7, %v5302_v28, %v2839_v44  ;;  %v2841_v49 = vrot.slane %v2839_v44, 4  ;;  %v5288_v61 = vld [vmem:[%s6500_s25 + $0x84] sm:$0xe]  ;;  %v5289_v23 = vld [vmem:[%s6500_s25 + $0x90] sm:$0xe] }
  0x89   : > { %v2836_v50 = vsel %vm6752_vm7, %v2834_v59, %v2835_v1  ;;  %v5303_v58 = vrot.slane %v5287_v47, 9  ;;  %v2846_v7 = vrot.slane %v6960_v40, 5  ;;  %v2849_v41 = vrot.slane %v6963_v55, 5  ;;  %v5232_v25 = vld [vmem:[%s6500_s25 + $0x98] sm:$0x1] }
  0x8a   : > { %v618_v4 = vsel %vm6526_vm4, %v613_v26, %v617_v31  ;;  %v5318_v12 = vcombine.low %v2833_v45, %v2836_v50  ;;  %v2843_v63 = vsel %vm6752_vm7, %v2841_v49, %v2842_v34  ;;  %v5304_v10 = vrot.slane %v5288_v61, 9  ;;  %v5234_v31 = vld [vmem:[%s6500_s25 + $0xa0] sm:$0xf]  ;;  %v5235_v60 = vld [vmem:[%s6500_s25 + $0xa4] sm:$0x1] }
  0x8b   : > { %v5034_v2 = vcombine.low %v608_v9, %v618_v4  ;;  %v5319_v6 = vcombine.low %v2840_v48, %v2843_v63  ;;  %v2853_v11 = vrot.slane %v5228_v57, 5  ;;  %v2856_v8 = vrot.slane %v5229_v54, 5  ;;  %v5290_v20 = vld [vmem:[%s6500_s25 + $0x9c] sm:$0xe]  ;;  %v6382_v44 = vld [vmem:[%s6500_s25 + $0xc] sm:$0xf] }
  0x8c   : > { %5897 = vmatmul.mubr.msk.bf16.gmra.mrb[12].mxu0 %vm669_vm3, %v5318_v12  ;;  %v2847_v18 = vsel %vm6752_vm7, %v5303_v58, %v2846_v7  ;;  %v2848_v21 = vrot.slane %v2846_v7, 4  ;;  %v2860_v28 = vrot.slane %v5231_v17, 5  ;;  %v6990_v34 = vld [vmem:[%s6500_s25 + $0x10] sm:$0xf]  ;;  %v6384_v47 = vld [vmem:[%s6500_s25 + $0x18] sm:$0xf] }
  0x8d   : > { %5743 = vmatmul.mubr.msk.bf16.gmra.mrb[28].mxu1 %vm669_vm3, %v5034_v2  ;;  %5900 = vmatprep.mubr.msk.bf16.mxu0 %vm669_vm3, %v5319_v6  ;;  %v2854_v38 = vsel %vm6752_vm7, %v5304_v10, %v2853_v11  ;;  %v2855_v1 = vrot.slane %v2853_v11, 4  ;;  %v5052_v45 = vcombine.low %v6382_v44, %v6990_v34  ;;  %v6997_v9 = vld [vmem:[%s6500_s25 + $0x1c] sm:$0xf]  ;;  %v5305_v48 = vrot.slane %v5289_v23, 9  ;;  %v5237_v57 = vld [vmem:[%s6500_s25 + $0xac] sm:$0xf] }
  0x8e   : > { %5748 = vmatprep.mubr.msk.bf16.mxu1 %vm669_vm3, %v5051_v62  ;;  %v2850_v59 = vsel %vm6752_vm7, %v2848_v21, %v2849_v41  ;;  %v5053_v26 = vcombine.low %v6384_v47, %v6997_v9  ;;  %v2862_v51 = vrot.slane %v2860_v28, 4  ;;  %v2863_v62 = vrot.slane %v5232_v25, 5  ;;  %v6386_v54 = vld [vmem:[%s8323_s1 + $0x4] sm:$0x3]  ;;  %v5240_v2 = vld [vmem:[%s6500_s25 + $0xb8] sm:$0xf] }
  0x8f   : > { %v5320_v49 = vcombine.low %v2847_v18, %v2850_v59  ;;  %v2857_v50 = vsel %vm6752_vm7, %v2855_v1, %v2856_v8  ;;  %v5306_v12 = vrot.slane %v5290_v20, 9  ;;  %v2867_v63 = vrot.slane %v5234_v31, 5  ;;  %v7012_v7 = vld [vmem:[%s8323_s1 + $0x6] sm:$0x3]  ;;  %v5238_v10 = vld [vmem:[%s6500_s25 + $0xb0] sm:$0x1] }
  0x90   : > { %v5321_v4 = vcombine.low %v2854_v38, %v2857_v50  ;;  %v2870_v58 = vrot.slane %v5235_v60, 5  ;;  %v1437_v61 = vsel %vm718_vm0, %v6386_v54, 0  ;;  %v2861_v41 = vsel %vm6752_vm7, %v5305_v48, %v2860_v28  ;;  %v5291_v11 = vld [vmem:[%s6500_s25 + $0xa8] sm:$0xe]  ;;  %v5241_v25 = vld [vmem:[%s6500_s25 + $0xbc] sm:$0x1] }
  0x91   : > { %v2869_v6 = vrot.slane %v2867_v63, 4  ;;  %v2864_v17 = vsel %vm6752_vm7, %v2862_v51, %v2863_v62  ;;  %v2874_v8 = vrot.slane %v5237_v57, 5  ;;  %v2868_v23 = vsel %vm6752_vm7, %v5306_v12, %v2867_v63  ;;  %v5292_v31 = vld [vmem:[%s6500_s25 + $0xb4] sm:$0xe]  ;;  %v6387_v38 = vld [vmem:[%s6500_s25 + $0x24] sm:$0xf] }
  0x92   : > { %v2881_v21 = vrot.slane %v5240_v2, 5  ;;  %v7033_v1 = vld [vmem:[%s6500_s25 + $0x28] sm:$0xf]  ;;  %v5322_v60 = vcombine.low %v2861_v41, %v2864_v17  ;;  %v5307_v44 = vrot.slane %v5291_v11, 9  ;;  %v2877_v59 = vrot.slane %v5238_v10, 5 }
  0x93   : > { %v2871_v18 = vsel %vm6752_vm7, %v2869_v6, %v2870_v58  ;;  %v5054_v28 = vcombine.low %v6387_v38, %v7033_v1  ;;  %v6389_v47 = vld [vmem:[%s6500_s25 + $0x30] sm:$0xf]  ;;  %v2884_v51 = vrot.slane %v5241_v25, 5  ;;  %v5243_v62 = vld [vmem:[%s6500_s25 + $0xc4] sm:$0xf]  ;;  %v2269_v25 = vshrl.u32 %v6960_v40, 16 }
  0x94   : > { %5901 = vmatmul.mubr.msk.bf16.gmra.mrb[16].mxu0 %vm669_vm3, %v5320_v49  ;;  %v5323_v20 = vcombine.low %v2868_v23, %v2871_v18  ;;  %v5308_v49 = vrot.slane %v5292_v31, 9  ;;  %v2883_v50 = vrot.slane %v2881_v21, 4  ;;  %v2875_v57 = vsel %vm6752_vm7, %v5307_v44, %v2874_v8  ;;  %v5293_v12 = vld [vmem:[%s6500_s25 + $0xc0] sm:$0xe]  ;;  %v6391_v41 = vld [vmem:[%s6500_s25 + $0x3c] sm:$0xf] }
  0x95   : > { %5749 = vmatmul.mubr.msk.bf16.vlgmr.msra.gmra.mrb[0].mxu1 %vm669_vm3, %v5052_v45  ;;  %5904 = vmatprep.mubr.msk.bf16.mxu0 %vm669_vm3, %v5321_v4  ;;  %v2876_v45 = vrot.slane %v2874_v8, 4  ;;  %v2888_v63 = vrot.slane %v5243_v62, 5  ;;  %v5309_v6 = vrot.slane %v5293_v12, 9  ;;  %v7058_v17 = vld [vmem:[%s6500_s25 + $0x40] sm:$0xf]  ;;  %v5057_v18 = vcombine.low %v6665_v27, %v6668_v36  ;;  %v6343_v62 = vld [vmem:[%s6500_s25 + $0x24] sm:$0xff]  }
  0x96   : > { %5781 = vmatpush3.bf16.msra.mxu1 %v1437_v61  ;;  %5752 = vmatprep.mubr.msk.bf16.mxu1 %vm669_vm3, %v5053_v26  ;;  %v7038_v26 = vld [vmem:[%s6500_s25 + $0x34] sm:$0xf]  ;;  %v2882_v58 = vsel %vm6752_vm7, %v5308_v49, %v2881_v21  ;;  %v2885_v54 = vsel %vm6752_vm7, %v2883_v50, %v2884_v51  ;;  %v5244_v61 = vld [vmem:[%s6500_s25 + $0xc8] sm:$0x1]  ;;  %v5056_v10 = vcombine.low %v6391_v41, %v7058_v17  ;;  %v2265_v21 = vshll.u32 %v6960_v40, 16 }
  0x97   : > { %6279 = vmatprep.subr.msk.bf16.mxu1 %vm718_vm0, %v7012_v7  ;;  %v5055_v48 = vcombine.low %v6389_v47, %v7038_v26  ;;  %v2878_v4 = vsel %vm6752_vm7, %v2876_v45, %v2877_v59  ;;  %v5325_v11 = vcombine.low %v2882_v58, %v2885_v54  ;;  %v2890_v8 = vrot.slane %v2888_v63, 4  ;;  %v1175_v45 = vld [vmem:[%s6500_s25] sm:$0xe]  ;;  %v1176_v59 = vld [vmem:[%s6500_s25 + $0xc] sm:$0xe] }
  0x98   : > { %v5324_v2 = vcombine.low %v2875_v57, %v2878_v4  ;;  %v2891_v23 = vrot.slane %v5244_v61, 5  ;;  %v2889_v31 = vsel %vm6752_vm7, %v5309_v6, %v2888_v63  ;;  %v7073_v27 = vrot.slane %v2265_v21, 5  ;;  %v1179_v41 = vld [vmem:[%s6500_s25 + $0x30] sm:$0xe] }
  0x99   : > { %v2271_v36 = vrot.slane %v2269_v25, 4  ;;  %v5059_v44 = vcombine.low %v6725_v19, %v6731_v35  ;;  %v2275_v47 = vshll.u32 %v6963_v55, 16  ;;  %v5083_v19 = vrot.slane %v1175_v45, 9 }
  0x9a   : > { %v2892_v38 = vsel %vm6752_vm7, %v2890_v8, %v2891_v23  ;;  %8344 = vst [vmem:[#allocation3_spill] sm:$0xff] %v7073_v27  ;;  %v5084_v35 = vrot.slane %v1176_v59, 9  ;;  %v1242_v4 = vrot.slane %v6997_v9, 5  ;;  %v1249_v12 = vrot.slane %v7033_v1, 5  ;;  %v1180_v8 = vld [vmem:[%s6500_s25 + $0x3c] sm:$0xe] }
  0x9b   : > { %v5326_v40 = vcombine.low %v2889_v31, %v2892_v38  ;;  %v2272_v49 = vor.u32 %v2271_v36, %v7073_v27  ;;  %v7093_v51 = vrot.slane %v2275_v47, 5  ;;  %v5060_v58 = vcombine.low %v6746_v0, %v6759_v29  ;;  %v1181_v31 = vld [vmem:[%s6500_s25 + $0x48] sm:$0xe]  ;;  %v6397_v59 = vld [vmem:[%s6500_s25 + $0x38] sm:$0x1] }
  0x9c   : > { %5905 = vmatmul.mubr.msk.bf16.gmra.mrb[20].mxu0 %vm669_vm3, %v5322_v60  ;;  %v5058_v60 = vcombine.low %v6694_v24, %v6700_v37  ;;  %v6394_v24 = vld [vmem:[%s6500_s25 + $0x14] sm:$0x1]  ;;  %v4077_v54 = vsel %vm718_vm0, %v6817_v22, 0  ;;  %v5061_v61 = vcombine.low %v6778_v53, %v6785_v16  ;;  %v5062_v6 = vcombine.low %v6804_v39, %v6812_v43  ;;  %v6395_v16 = vld [vmem:[%s6500_s25 + $0x20] sm:$0x1] }
  0x9d   : > { %5753 = vmatmul.mubr.msk.bf16.gmra.mrb[4].mxu1 %vm669_vm3, %v5054_v28  ;;  %5908 = vmatprep.mubr.msk.bf16.mxu0 %vm669_vm3, %v5323_v20  ;;  %v1235_v28 = vrot.slane %v6990_v34, 5  ;;  %v6341_v20 = vld [vmem:[%s6500_s25 + $0x18] sm:$0xff]   ;;  %v6393_v34 = vld [vmem:[%s6500_s25 + $0x8] sm:$0x1]  ;;  %v1238_v37 = vrot.slane %v6394_v24, 5  ;;  %8345 = vst [vmem:[#allocation4_spill] sm:$0xff] %v7093_v51  ;;  %v5063_v9 = vcombine.low %v6836_v5, %v6848_v30 }
  0x9e   : > { %5756 = vmatprep.mubr.msk.bf16.mxu1 %vm669_vm3, %v5055_v48  ;;  %v1228_v48 = vrot.slane %v6956_v15, 5  ;;  %v1231_v50 = vrot.slane %v6393_v34, 5  ;;  %v1177_v15 = vld [vmem:[%s6500_s25 + $0x18] sm:$0xe]  ;;  %v7098_v63 = vrot.slane %v2272_v49, 4  ;;  %v1245_v22 = vrot.slane %v6395_v16, 5 }
  0x9f   : > { %v1237_v55 = vrot.slane %v1235_v28, 4  ;;  %v5085_v1 = vrot.slane %v1177_v15, 9  ;;  %v7120_v29 = vsel %vm6752_vm7, %v5084_v35, %v1235_v28  ;;  %v1251_v25 = vrot.slane %v1249_v12, 4  ;;  %v5408_v24 = vld [vmem:[%s6500_s25 + $0x18] sm:$0xf] }
  0xa0   : > { %v1230_v57 = vrot.slane %v1228_v48, 4  ;;  %8346 = vst [vmem:[#allocation5_spill] sm:$0xff] %v7098_v63  ;;  %v7116_v0 = vsel %vm6752_vm7, %v5083_v19, %v1228_v48  ;;  %v1259_v47 = vrot.slane %v6397_v59, 5  ;;  %v7157_v49 = vsel %vm718_vm0, %v7012_v7, 0  ;;  %v5409_v7 = vld [vmem:[%s6500_s25 + $0x1c] sm:$0xf] }
  0xa1   : > { %v7124_v53 = vsel %vm6752_vm7, %v1237_v55, %v1238_v37  ;;  %v7161_v34 = vsel %vm6752_vm7, %v5085_v1, %v1242_v4  ;;  %v6347_v37 = vld [vmem:[%s6500_s25 + $0x3c] sm:$0xff]   ;;  %v5088_v35 = vrot.slane %v1180_v8, 9  ;;  %v6398_v55 = vld [vmem:[%s6500_s25 + $0x44] sm:$0x1]  ;;  %v3598_v8 = vshll.u32 %v5408_v24, 16 }
  0xa2   : > { %v7135_v23 = vsel %vm6752_vm7, %v1230_v57, %v1231_v50  ;;  %v1182_v50 = vld [vmem:[%s6500_s25 + $0x54] sm:$0xe]  ;;  %v1266_v15 = vrot.slane %v6398_v55, 5  ;;  %v5412_v39 = vld [vmem:[%s6500_s25 + $0x28] sm:$0xf] }
  0xa3   : > { %v6405_v5 = vld [vmem:[%s6500_s25 + $0x70] sm:$0xf] }
  0xa4   : > { %5909 = vmatmul.mubr.msk.bf16.gmra.mrb[24].mxu0 %vm669_vm3, %v5324_v2  ;;  %v1178_v2 = vld [vmem:[%s6500_s25 + $0x24] sm:$0xe]  ;;  %v1291_v30 = vrot.slane %v6405_v5, 5 }
  0xa5   : > { %5757 = vmatmul.mubr.msk.bf16.gmra.mrb[8].mxu1 %vm669_vm3, %v5056_v10  ;;  %5912 = vmatprep.mubr.msk.bf16.mxu0 %vm669_vm3, %v5325_v11  ;;  %v1256_v10 = vrot.slane %v7038_v26, 5  ;;  %v6345_v11 = vld [vmem:[%s6500_s25 + $0x30] sm:$0xff]   ;;  %v5086_v21 = vrot.slane %v1178_v2, 9 }
  0xa6   : > { %5760 = vmatprep.mubr.msk.bf16.mxu1 %vm669_vm3, %v5057_v18  ;;  %v7131_v26 = vld [vmem:[%s8323_s1 + $0x10] sm:$0x3]  ;;  %v1244_v18 = vrot.slane %v1242_v4, 4  ;;  %v1293_v48 = vrot.slane %v1291_v30, 4 }
  0xa7   : > { %v1258_v45 = vrot.slane %v1256_v10, 4  ;;  %v7168_v19 = vsel %vm6752_vm7, %v5086_v21, %v1249_v12  ;;  %v3608_v21 = vshrl.u32 %v5409_v7, 16 }
  0xa8   : > { %v7177_v4 = vsel %vm6752_vm7, %v1244_v18, %v1245_v22  ;;  %v3595_v22 = vshrl.u32 %v5408_v24, 16  ;;  %v3604_v18 = vshll.u32 %v5409_v7, 16  ;;  %v5411_v24 = vld [vmem:[%s6500_s25 + $0x24] sm:$0xf] }
  0xa9   : > { %v7190_v1 = vsel %vm6752_vm7, %v1258_v45, %v1259_v47 }
  0xaa   : > { %v3597_v43 = vrot.slane %v3595_v22, 4  ;;  %v7232_v7 = vrot.slane %v3604_v18, 5  ;;  %v3622_v22 = vshll.u32 %v5411_v24, 16  ;;  %v3632_v18 = vshrl.u32 %v5412_v39, 16 }
  0xac   : > { %5913 = vmatmul.mubr.msk.bf16.gmra.mrb[28].mxu0 %vm669_vm3, %v5326_v40  ;;  %v6396_v40 = vld [vmem:[%s6500_s25 + $0x2c] sm:$0x1]  ;;  %v3624_v27 = vrot.slane %v3622_v22, 5 }
  0xad   : > { %5761 = vmatmul.mubr.msk.bf16.gmra.mrb[12].mxu1 %vm669_vm3, %v5058_v60  ;;  %5918 = vmatprep.mubr.msk.bf16.mxu0 %vm669_vm3, %v6341_v20  ;;  %v1252_v28 = vrot.slane %v6396_v40, 5  ;;  %v1263_v60 = vrot.slane %v7058_v17, 5  ;;  %v6401_v40 = vld [vmem:[%s6500_s25 + $0x50] sm:$0x1]  ;;  %v6406_v17 = vld [vmem:[%s6500_s25 + $0x74] sm:$0x1] }
  0xae   : > { %5764 = vmatprep.mubr.msk.bf16.mxu1 %vm669_vm3, %v5059_v44  ;;  %v5087_v44 = vrot.slane %v1179_v41, 9  ;;  %v5090_v41 = vrot.slane %v1182_v50, 9  ;;  %v1183_v50 = vld [vmem:[%s6500_s25 + $0x60] sm:$0xe]  ;;  %v5413_v20 = vld [vmem:[%s6500_s25 + $0x2c] sm:$0x1] }
  0xaf   : > { %v1265_v12 = vrot.slane %v1263_v60, 4  ;;  %v7203_v45 = vsel %vm6752_vm7, %v5088_v35, %v1263_v60  ;;  %v6402_v35 = vld [vmem:[%s6500_s25 + $0x5c] sm:$0x1] }
  0xb0   : > { %v7186_v2 = vsel %vm6752_vm7, %v5087_v44, %v1256_v10  ;;  %v1280_v55 = vrot.slane %v6402_v35, 5  ;;  %v1184_v35 = vld [vmem:[%s6500_s25 + $0x6c] sm:$0xe] }
  0xb1   : > { %v7207_v59 = vsel %vm6752_vm7, %v1265_v12, %v1266_v15  ;;  %v6403_v15 = vld [vmem:[%s6500_s25 + $0x64] sm:$0xf]  ;;  %v3610_v12 = vrot.slane %v3608_v21, 4  ;;  %v5092_v5 = vrot.slane %v1184_v35, 9 }
  0xb2   : > { %v6353_v21 = vld [vmem:[%s6500_s25 + $0x60] sm:$0xff]  }
  0xb4   : > { %5919 = vmatmul.mubr.msk.bf16.vlgmr.msra.gmra.mrb[0].mxu0 %vm669_vm3, %v6343_v62  ;;  %v6399_v62 = vld [vmem:[%s6500_s25 + $0x4c] sm:$0xf] }
  0xb5   : > { %5765 = vmatmul.mubr.msk.bf16.gmra.mrb[16].mxu1 %vm669_vm3, %v5060_v58  ;;  %5951 = vmatpush3.bf16.msra.mxu0 %v4077_v54  ;;  %v1270_v57 = vrot.slane %v6399_v62, 5  ;;  %v7181_v58 = vsel %vm6752_vm7, %v1251_v25, %v1252_v28  ;;  %v5089_v54 = vrot.slane %v1181_v31, 9  ;;  %v1273_v28 = vrot.slane %v6401_v40, 5 }
  0xb6   : > { %5768 = vmatprep.mubr.msk.bf16.mxu1 %vm669_vm3, %v5061_v61  ;;  %5922 = vmatprep.mubr.msk.bf16.mxu0 %vm669_vm3, %v6345_v11  ;;  %v6349_v61 = vld [vmem:[%s6500_s25 + $0x48] sm:$0xff]   ;;  %v6400_v11 = vld [vmem:[%s6500_s25 + $0x58] sm:$0xf]  ;;  %v1284_v62 = vrot.slane %v6403_v15, 5  ;;  %v5415_v15 = vld [vmem:[%s6500_s25 + $0x34] sm:$0xf] }
  0xb7   : > { %6285 = vmatprep.subr.msk.bf16.mxu0 %vm718_vm0, %v7131_v26  ;;  %v1277_v16 = vrot.slane %v6400_v11, 5  ;;  %v1272_v31 = vrot.slane %v1270_v57, 4  ;;  %v7211_v47 = vsel %vm6752_vm7, %v5089_v54, %v1270_v57  ;;  %v5410_v57 = vld [vmem:[%s6500_s25 + $0x20] sm:$0x1]  ;;  %v5414_v54 = vld [vmem:[%s6500_s25 + $0x30] sm:$0xf] }
  0xb8   : > { %v5091_v11 = vrot.slane %v1183_v50, 9  ;;  %v3646_v50 = vshll.u32 %v5414_v54, 16  ;;  %v3614_v25 = vshll.u32 %v5410_v57, 16  ;;  %v3652_v36 = vshll.u32 %v5415_v15, 16 }
  0xb9   : > { %v7222_v60 = vsel %vm6752_vm7, %v5090_v41, %v1277_v16  ;;  %v7238_v41 = vsel %vm6752_vm7, %v1272_v31, %v1273_v28  ;;  %v1286_v31 = vrot.slane %v1284_v62, 4  ;;  %v3643_v28 = vshrl.u32 %v5414_v54, 16 }
  0xba   : > { %v7280_v35 = vrot.slane %v3652_v36, 5 }
  0xbc   : > { %5923 = vmatmul.mubr.msk.bf16.gmra.mrb[4].mxu0 %vm669_vm3, %v6347_v37  ;;  %v1279_v37 = vrot.slane %v1277_v16, 4  ;;  %v6404_v16 = vld [vmem:[%s6500_s25 + $0x68] sm:$0x1] }
  0xbd   : > { %5769 = vmatmul.mubr.msk.bf16.gmra.mrb[20].mxu1 %vm669_vm3, %v5062_v6  ;;  %5926 = vmatprep.mubr.msk.bf16.mxu0 %vm669_vm3, %v6349_v61  ;;  %v3600_v6 = vrot.slane %v3598_v8, 5  ;;  %v6351_v61 = vld [vmem:[%s6500_s25 + $0x54] sm:$0xff]   ;;  %v1287_v40 = vrot.slane %v6404_v16, 5  ;;  %v3628_v8 = vshll.u32 %v5412_v39, 16  ;;  %v3611_v16 = vor.u32 %v3610_v12, %v7232_v7 }
  0xbe   : > { %5772 = vmatprep.mubr.msk.bf16.mxu1 %vm669_vm3, %v5063_v9  ;;  %v3619_v9 = vshrl.u32 %v5411_v24, 16  ;;  %v7247_v44 = vsel %vm6752_vm7, %v1279_v37, %v1280_v55  ;;  %v1294_v24 = vrot.slane %v6406_v17, 5  ;;  %v3656_v39 = vshrl.u32 %v5415_v15, 16 }
  0xbf   : > { %v3601_v10 = vor.u32 %v3600_v6, %v3597_v43  ;;  %v7253_v37 = vrot.slane %v3628_v8, 5  ;;  %v3634_v55 = vrot.slane %v3632_v18, 4  ;;  %v8347_v43 = vcombine.low %v6857_v52, %v6868_v46  ;;  %v6407_v8 = vld [vmem:[%s6500_s25 + $0x7c] sm:$0xf]  ;;  %v7289_v18 = vld [vmem:[%s6500_s25 + $0x38] sm:$0x1] }
  0xc0   : > { %v3621_v38 = vrot.slane %v3619_v9, 4  ;;  %v7262_v17 = vsel %vm6752_vm7, %v5091_v11, %v1284_v62  ;;  %v7266_v57 = vsel %vm6752_vm7, %v1286_v31, %v1287_v40  ;;  %v3645_v6 = vrot.slane %v3643_v28, 4  ;;  %8349 = vst [vmem:[#allocation6_spill] sm:$0xff] %v7289_v18 }
  0xc1   : > { %v3648_v12 = vrot.slane %v3646_v50, 5  ;;  %v8348_v52 = vcombine.low %v6889_v33, %v6894_v56  ;;  %v3602_v46 = vrot.slane %v3601_v10, 4  ;;  %v3612_v54 = vrot.slane %v3611_v16, 4  ;;  %v6355_v33 = vld [vmem:[%s6500_s25 + $0x6c] sm:$0xff]   ;;  %v1186_v16 = vld [vmem:[%s6500_s25 + $0x84] sm:$0xe] }
  0xc2   : > { %v3638_v62 = vshll.u32 %v5413_v20, 16  ;;  %v7274_v11 = vsel %vm6752_vm7, %v5092_v5, %v1291_v30  ;;  %v7278_v40 = vsel %vm6752_vm7, %v1293_v48, %v1294_v24  ;;  %v3658_v9 = vrot.slane %v3656_v39, 4  ;;  %v6356_v48 = vld [vmem:[%s6500_s25 + $0x78] sm:$0xff]  }
  0xc3   : > { %v3625_v10 = vor.u32 %v3624_v27, %v3621_v38  ;;  %v3635_v20 = vor.u32 %v3634_v55, %v7253_v37  ;;  %v1298_v30 = vrot.slane %v6407_v8, 5  ;;  %v3649_v38 = vor.u32 %v3648_v12, %v3645_v6  ;;  %v5417_v5 = vld [vmem:[%s6500_s25 + $0x3c] sm:$0xf] }
  0xc4   : > { %5927 = vmatmul.mubr.msk.bf16.gmra.mrb[8].mxu0 %vm669_vm3, %v6351_v61  ;;  %v3616_v61 = vrot.slane %v3614_v25, 5  ;;  %v1185_v25 = vld [vmem:[%s6500_s25 + $0x78] sm:$0xe]  ;;  %v7305_v50 = vrot.slane %v3638_v62, 5  ;;  %v3659_v39 = vor.u32 %v3658_v9, %v7280_v35  ;;  %v3662_v55 = vshll.u32 %v7289_v18, 16 }
  0xc5   : > { %5773 = vmatmul.mubr.msk.bf16.gmra.mrb[24].mxu1 %vm669_vm3, %v8347_v43  ;;  %5930 = vmatprep.mubr.msk.bf16.mxu0 %vm669_vm3, %v6353_v21  ;;  %v3607_v21 = vsel %vm6526_vm4, %v3602_v46, %v7232_v7  ;;  %v5093_v24 = vrot.slane %v1185_v25, 9  ;;  %v6408_v43 = vld [vmem:[%s6500_s25 + $0x88] sm:$0xf]  ;;  %v7313_v7 = vld [vmem:[%s6500_s25 + $0x40] sm:$0xf]  ;;  %v3626_v12 = vrot.slane %v3625_v10, 4  ;;  %v8351_v62 = vcombine.low %v6909_v14, %v6918_v42 }
  0xc6   : > { %5776 = vmatprep.mubr.msk.bf16.mxu1 %vm669_vm3, %v8348_v52  ;;  %v3617_v31 = vsel %vm6526_vm4, %v3612_v54, %v3616_v61  ;;  %v1305_v6 = vrot.slane %v6408_v43, 5  ;;  %8350 = vst [vmem:[#allocation7_spill] sm:$0xff] %v7313_v7  ;;  %v3636_v52 = vrot.slane %v3635_v20, 4  ;;  %v1300_v46 = vrot.slane %v1298_v30, 4  ;;  %v6409_v54 = vld [vmem:[%s6500_s25 + $0x80] sm:$0x1] }
  0xc7   : > { %v1301_v61 = vrot.slane %v6409_v54, 5  ;;  %v3650_v9 = vrot.slane %v3649_v38, 4  ;;  %v5094_v25 = vrot.slane %v1186_v16, 9  ;;  %v3667_v8 = vshrl.u32 %v5417_v5, 16  ;;  %v6357_v10 = vld [vmem:[%s6500_s25 + $0x84] sm:$0xff]  }
  0xc8   : > { %v3670_v43 = vshll.u32 %v5417_v5, 16  ;;  %v7327_v20 = vcombine.low %v3607_v21, %v3617_v31  ;;  %v7331_v14 = vsel %vm718_vm0, %v7131_v26, 0  ;;  %v3680_v38 = vshrl.u32 %v7313_v7, 16  ;;  %v6358_v21 = vld [vmem:[%s6500_s25 + $0x90] sm:$0xff]   ;;  %v6414_v18 = vld [vmem:[%s6500_s25 + $0xa0] sm:$0xf] }
  0xc9   : > { %v3660_v16 = vrot.slane %v3659_v39, 4  ;;  %v3664_v5 = vrot.slane %v3662_v55, 5  ;;  %v1307_v54 = vrot.slane %v1305_v6, 4  ;;  %v3631_v31 = vsel %vm6526_vm4, %v3626_v12, %v7253_v37 }
  0xca   : > { %v3641_v26 = vsel %vm6526_vm4, %v3636_v52, %v7305_v50  ;;  %v7346_v39 = vsel %vm6752_vm7, %v5093_v24, %v1298_v30  ;;  %v7350_v55 = vsel %vm6752_vm7, %v1300_v46, %v1301_v61  ;;  %v3655_v37 = vsel %vm6526_vm4, %v3650_v9, %v7280_v35  ;;  %v5423_v30 = vld [vmem:[%s6500_s25 + $0x54] sm:$0xf]  ;;  %v7367_v24 = vld [vmem:[%s6500_s25 + $0x58] sm:$0xf]  ;;  %v7372_v61 = vld [vmem:[%s6500_s25 + $0x90] sm:$0xe] }
  0xcb   : > { %v7363_v12 = vsel %vm6752_vm7, %v5094_v25, %v1305_v6  ;;  %v3669_v50 = vrot.slane %v3667_v8, 4  ;;  %v3672_v52 = vrot.slane %v3670_v43, 5  ;;  %v3682_v46 = vrot.slane %v3680_v38, 4 }
  0xcc   : > { %5931 = vmatmul.mubr.msk.bf16.gmra.mrb[12].mxu0 %vm669_vm3, %v6355_v33  ;;  %v8352_v33 = vcombine.low %v7116_v0, %v7135_v23  ;;  %v6410_v0 = vld [vmem:[%s6500_s25 + $0x8c] sm:$0x1]  ;;  %v3665_v36 = vsel %vm6526_vm4, %v3660_v16, %v3664_v5  ;;  %v3715_v25 = vshrl.u32 %v5423_v30, 16  ;;  %v3718_v8 = vshll.u32 %v5423_v30, 16 }
  0xcd   : > { %5777 = vmatmul.mubr.msk.bf16.gmra.mrb[28].mxu1 %vm669_vm3, %v8351_v62  ;;  %5934 = vmatprep.mubr.msk.bf16.mxu0 %vm669_vm3, %v6356_v48  ;;  %v3676_v48 = vshll.u32 %v7313_v7, 16  ;;  %v1308_v23 = vrot.slane %v6410_v0, 5  ;;  %v5420_v62 = vld [vmem:[%s6500_s25 + $0x48] sm:$0xf]  ;;  %v7356_v0 = vld [vmem:[%s6500_s25 + $0x4c] sm:$0xf]  ;;  %v8354_v38 = vcombine.low %v7120_v29, %v7124_v53  ;;  %v7390_v16 = vcombine.low %v3631_v31, %v3641_v26 }
  0xce   : > { %5782 = vmatprep.mubr.msk.bf16.mxu1 %vm669_vm3, %v8352_v33  ;;  %v7353_v33 = vld [vmem:[%s6500_s25 + $0x44] sm:$0x1]  ;;  %v3691_v27 = vshrl.u32 %v5420_v62, 16  ;;  %v3694_v15 = vshll.u32 %v5420_v62, 16  ;;  %v3700_v6 = vshll.u32 %v7356_v0, 16  ;;  %v3704_v9 = vshrl.u32 %v7356_v0, 16 }
  0xcf   : > { %8353 = vst [vmem:[#allocation8_spill] sm:$0xff] %v7353_v33  ;;  %v7369_v28 = vrot.slane %v3676_v48, 5  ;;  %v7378_v35 = vsel %vm6752_vm7, %v1307_v54, %v1308_v23  ;;  %v3724_v43 = vshll.u32 %v7367_v24, 16  ;;  %v3728_v48 = vshrl.u32 %v7367_v24, 16  ;;  %v5426_v31 = vld [vmem:[%s6500_s25 + $0x60] sm:$0xf] }
  0xd0   : > { %v3686_v5 = vshll.u32 %v7353_v33, 16  ;;  %v5095_v54 = vrot.slane %v7372_v61, 9  ;;  %v8355_v23 = vcombine.low %v7161_v34, %v7177_v4  ;;  %v7401_v29 = vcombine.low %v3655_v37, %v3665_v36  ;;  %v6359_v26 = vld [vmem:[%s6500_s25 + $0x9c] sm:$0xff]   ;;  %v6360_v30 = vld [vmem:[%s6500_s25 + $0xa8] sm:$0xff]  }
  0xd1   : > { %v3673_v53 = vor.u32 %v3672_v52, %v3669_v50  ;;  %v3693_v62 = vrot.slane %v3691_v27, 4  ;;  %v7412_v34 = vrot.slane %v3700_v6, 5  ;;  %v3706_v4 = vrot.slane %v3704_v9, 4  ;;  %v6411_v36 = vld [vmem:[%s8323_s1 + $0x8] sm:$0x3] }
  0xd2   : > { %v3717_v27 = vrot.slane %v3715_v25, 4  ;;  %v3720_v37 = vrot.slane %v3718_v8, 5  ;;  %v7421_v50 = vrot.slane %v3724_v43, 5  ;;  %v3730_v52 = vrot.slane %v3728_v48, 4  ;;  %v6412_v6 = vld [vmem:[%s6500_s25 + $0x94] sm:$0xf] }
  0xd3   : > { %v7427_v9 = vld [vmem:[%s6500_s25 + $0x64] sm:$0xf]  ;;  %v3739_v61 = vshrl.u32 %v5426_v31, 16  ;;  %v7429_v22 = vrot.slane %v3673_v53, 4  ;;  %v1319_v25 = vrot.slane %v6414_v18, 5  ;;  %v3707_v43 = vor.u32 %v3706_v4, %v7412_v34 }
  0xd4   : > { %5935 = vmatmul.mubr.msk.bf16.gmra.mrb[16].mxu0 %vm669_vm3, %v6357_v10  ;;  %8356 = vst [vmem:[#allocation9_spill] sm:$0xff] %v7427_v9  ;;  %v3742_v10 = vshll.u32 %v5426_v31, 16  ;;  %v3721_v31 = vor.u32 %v3720_v37, %v3717_v27  ;;  %v3731_v53 = vor.u32 %v3730_v52, %v7421_v50  ;;  %v8357_v18 = vcombine.low %v7168_v19, %v7181_v58  ;;  %v6361_v37 = vld [vmem:[%s6500_s25 + $0xb4] sm:$0xff]  }
  0xd5   : > { %5783 = vmatmul.mubr.msk.bf16.vlgmr.msra.gmra.mrb[0].mxu1 %vm669_vm3, %v8354_v38  ;;  %5938 = vmatprep.mubr.msk.bf16.mxu0 %vm669_vm3, %v6358_v21  ;;  %v3696_v21 = vrot.slane %v3694_v15, 5  ;;  %v7410_v38 = vld [vmem:[%s6500_s25 + $0x50] sm:$0x1]  ;;  %v7419_v15 = vld [vmem:[%s6500_s25 + $0x5c] sm:$0x1]  ;;  %v8358_v27 = vcombine.low %v7186_v2, %v7190_v1  ;;  %v1321_v52 = vrot.slane %v1319_v25, 4 }
  0xd6   : > { %5815 = vmatpush3.bf16.msra.mxu1 %v7157_v49  ;;  %5786 = vmatprep.mubr.msk.bf16.mxu1 %vm669_vm3, %v8355_v23  ;;  %v3683_v49 = vor.u32 %v3682_v46, %v7369_v28  ;;  %v7423_v46 = vrot.slane %v3686_v5, 5  ;;  %v1312_v23 = vrot.slane %v6412_v6, 5  ;;  %v3710_v48 = vshll.u32 %v7410_v38, 16  ;;  %v1188_v5 = vld [vmem:[%s6500_s25 + $0x9c] sm:$0xe] }
  0xd7   : > { %6281 = vmatprep.subr.msk.bf16.mxu1 %vm718_vm0, %v6411_v36  ;;  %v6413_v36 = vld [vmem:[%s6500_s25 + $0x98] sm:$0x1]  ;;  %v3697_v7 = vor.u32 %v3696_v21, %v3693_v62  ;;  %v3734_v6 = vshll.u32 %v7419_v15, 16  ;;  %v3752_v62 = vshrl.u32 %v7427_v9, 16  ;;  %v3744_v4 = vrot.slane %v3742_v10, 5 }
  0xd8   : > { %v1315_v33 = vrot.slane %v6413_v36, 5  ;;  %v3684_v8 = vrot.slane %v3683_v49, 4  ;;  %v3748_v36 = vshll.u32 %v7427_v9, 16  ;;  %v7448_v21 = vsel %vm6752_vm7, %v5095_v54, %v1312_v23  ;;  %v7459_v2 = vld [vmem:[%s6500_s25 + $0x68] sm:$0x1] }
  0xd9   : > { %v3741_v49 = vrot.slane %v3739_v61, 4  ;;  %v3698_v19 = vrot.slane %v3697_v7, 4  ;;  %v5096_v58 = vrot.slane %v1188_v5, 9  ;;  %v3708_v3 = vrot.slane %v3707_v43, 4  ;;  %8359 = vst [vmem:[#allocation10_spill] sm:$0xff] %v7459_v2  ;;  %v6362_v5 = vld [vmem:[%s6500_s25 + $0xc0] sm:$0xff]  }
  0xda   : > { %v3712_v54 = vrot.slane %v3710_v48, 5  ;;  %v3736_v63 = vrot.slane %v3734_v6, 5  ;;  %v1326_v61 = vrot.slane %v6894_v56, 5  ;;  %v3722_v10 = vrot.slane %v3721_v31, 4  ;;  %v1190_v31 = vld [vmem:[%s6500_s25 + $0xb4] sm:$0xe] }
  0xdb   : > { %v3732_v51 = vrot.slane %v3731_v53, 4  ;;  %v7461_v1 = vrot.slane %v3748_v36, 5  ;;  %v3754_v7 = vrot.slane %v3752_v62, 4  ;;  %v3679_v43 = vsel %vm6526_vm4, %v7429_v22, %v7369_v28  ;;  %v6416_v62 = vld [vmem:[%s6500_s25 + $0xb0] sm:$0x1] }
  0xdc   : > { %5939 = vmatmul.mubr.msk.bf16.gmra.mrb[20].mxu0 %vm669_vm3, %v6359_v26  ;;  %v1314_v26 = vrot.slane %v1312_v23, 4  ;;  %v1189_v23 = vld [vmem:[%s6500_s25 + $0xa8] sm:$0xe]  ;;  %v3689_v48 = vsel %vm6526_vm4, %v3684_v8, %v7423_v46  ;;  %v3745_v6 = vor.u32 %v3744_v4, %v3741_v49  ;;  %v3703_v53 = vsel %vm6526_vm4, %v3698_v19, %v7412_v34  ;;  %v5429_v46 = vld [vmem:[%s6500_s25 + $0x6c] sm:$0xf] }
  0xdd   : > { %5787 = vmatmul.mubr.msk.bf16.gmra.mrb[4].mxu1 %vm669_vm3, %v8357_v18  ;;  %5942 = vmatprep.mubr.msk.bf16.mxu0 %vm669_vm3, %v6360_v30  ;;  %v6415_v18 = vld [vmem:[%s6500_s25 + $0xa4] sm:$0x1]  ;;  %v7481_v36 = vsel %vm6752_vm7, %v5096_v58, %v1319_v25  ;;  %v5097_v28 = vrot.slane %v1189_v23, 9  ;;  %v1328_v8 = vrot.slane %v1326_v61, 4  ;;  %v3758_v49 = vshll.u32 %v7459_v2, 16 }
  0xde   : > { %5790 = vmatprep.mubr.msk.bf16.mxu1 %vm669_vm3, %v8358_v27  ;;  %v1322_v30 = vrot.slane %v6415_v18, 5  ;;  %v7473_v56 = vsel %vm6752_vm7, %v1314_v26, %v1315_v33  ;;  %v3713_v33 = vsel %vm6526_vm4, %v3708_v3, %v3712_v54  ;;  %v1329_v26 = vrot.slane %v6416_v62, 5  ;;  %v5432_v18 = vld [vmem:[%s6500_s25 + $0x78] sm:$0xf]  ;;  %v7536_v54 = vld [vmem:[%s6500_s25 + $0xbc] sm:$0x1] }
  0xdf   : > { %v3727_v34 = vsel %vm6526_vm4, %v3722_v10, %v7421_v50  ;;  %v3737_v25 = vsel %vm6526_vm4, %v3732_v51, %v3736_v63  ;;  %v3755_v4 = vor.u32 %v3754_v7, %v7461_v1  ;;  %v5098_v27 = vrot.slane %v1190_v31, 9  ;;  %v7510_v51 = vld [vmem:[%s6500_s25 + $0x70] sm:$0xf]  ;;  %v7540_v10 = vld [vmem:[%s6500_s25 + $0x7c] sm:$0xf] }
  0xe0   : > { %v7485_v22 = vsel %vm6752_vm7, %v1321_v52, %v1322_v30  ;;  %v8361_v3 = vcombine.low %v7203_v45, %v7207_v59  ;;  %v7506_v19 = vrot.slane %v3745_v6, 4  ;;  %v1333_v50 = vrot.slane %v6918_v42, 5  ;;  %8362 = vst [vmem:[#allocation12_spill] sm:$0xff] %v7510_v51  ;;  %8364 = vst [vmem:[#allocation13_spill] sm:$0xff] %v7540_v10  ;;  %v5435_v7 = vld [vmem:[%s6500_s25 + $0x84] sm:$0xf] }
  0xe1   : > { %8360 = vst [vmem:[#allocation11_spill] sm:$0xff] %v7485_v22  ;;  %v3763_v63 = vshrl.u32 %v5429_v46, 16  ;;  %v8363_v45 = vcombine.low %v7211_v47, %v7238_v41  ;;  %v7518_v58 = vcombine.low %v3703_v53, %v3713_v33  ;;  %v7524_v42 = vsel %vm6752_vm7, %v5097_v28, %v1326_v61  ;;  %v6363_v61 = vld [vmem:[%s6500_s25 + $0xcc] sm:$0xff]   ;;  %v7552_v31 = vld [vmem:[%s6500_s25 + $0x88] sm:$0xf] }
  0xe2   : > { %v7527_v30 = vcombine.low %v3727_v34, %v3737_v25  ;;  %v7531_v47 = vsel %vm6752_vm7, %v1328_v8, %v1329_v26  ;;  %v7533_v41 = vrot.slane %v3758_v49, 5  ;;  %v3772_v6 = vshll.u32 %v7510_v51, 16  ;;  %8365 = vst [vmem:[#allocation14_spill] sm:$0xff] %v7552_v31  ;;  %v5438_v62 = vld [vmem:[%s6500_s25 + $0x90] sm:$0xf] }
  0xe3   : > { %v7558_v28 = vrot.slane %v1333_v50, 4  ;;  %v7560_v33 = vrot.slane %v3763_v63, 4  ;;  %v3776_v8 = vshrl.u32 %v7510_v51, 16  ;;  %v3787_v26 = vshrl.u32 %v5432_v18, 16  ;;  %v7567_v25 = vld [vmem:[%s6500_s25 + $0x94] sm:$0xf] }
  0xe4   : > { %5943 = vmatmul.mubr.msk.bf16.gmra.mrb[24].mxu0 %vm669_vm3, %v6361_v37  ;;  %v7504_v37 = vcombine.low %v3679_v43, %v3689_v48  ;;  %v7548_v43 = vsel %vm6752_vm7, %v5098_v27, %v1333_v50  ;;  %v3766_v48 = vshll.u32 %v5429_v46, 16  ;;  %v3790_v49 = vshll.u32 %v5432_v18, 16  ;;  %8366 = vst [vmem:[#allocation15_spill] sm:$0xff] %v7567_v25  ;;  %v7605_v2 = vld [vmem:[%s6500_s25 + $0x8c] sm:$0x1] }
  0xe5   : > { %5791 = vmatmul.mubr.msk.bf16.gmra.mrb[8].mxu1 %vm669_vm3, %v8361_v3  ;;  %5946 = vmatprep.mubr.msk.bf16.mxu0 %vm669_vm3, %v6362_v5  ;;  %v7544_v5 = vrot.slane %v3755_v4, 4  ;;  %v3796_v46 = vshll.u32 %v7540_v10, 16  ;;  %v3800_v34 = vshrl.u32 %v7540_v10, 16  ;;  %v3811_v4 = vshrl.u32 %v5435_v7, 16 }
  0xe6   : > { %5794 = vmatprep.mubr.msk.bf16.mxu1 %vm669_vm3, %v8363_v45  ;;  %v3814_v27 = vshll.u32 %v5435_v7, 16  ;;  %v3820_v3 = vshll.u32 %v7552_v31, 16  ;;  %v3824_v50 = vshrl.u32 %v7552_v31, 16  ;;  %v7577_v45 = vld [vmem:[%s6500_s25 + $0x74] sm:$0x1]  ;;  %v3768_v18 = vrot.slane %v3766_v48, 5 }
  0xe7   : > { %v3835_v52 = vshrl.u32 %v5438_v62, 16  ;;  %v3838_v53 = vshll.u32 %v5438_v62, 16  ;;  %v8367_v7 = vcombine.low %v7222_v60, %v7247_v44  ;;  %v3778_v59 = vrot.slane %v3776_v8, 4  ;;  %v5441_v48 = vld [vmem:[%s6500_s25 + $0x9c] sm:$0xf] }
  0xe8   : > { %v3844_v63 = vshll.u32 %v7567_v25, 16  ;;  %v3848_v23 = vshrl.u32 %v7567_v25, 16  ;;  %v8368_v62 = vcombine.low %v7262_v17, %v7266_v57  ;;  %v7595_v44 = vld [vmem:[%s6500_s25 + $0x80] sm:$0x1]  ;;  %v3789_v60 = vrot.slane %v3787_v26, 4 }
  0xe9   : > { %8369 = vst [vmem:[#allocation16_spill] sm:$0xff] %v7595_v44  ;;  %v3813_v31 = vrot.slane %v3811_v4, 4  ;;  %v3816_v8 = vrot.slane %v3814_v27, 5  ;;  %v7599_v10 = vrot.slane %v3820_v3, 5  ;;  %v3826_v51 = vrot.slane %v3824_v50, 4 }
  0xea   : > { %v7602_v25 = vld [vmem:[%s6500_s25 + $0xa0] sm:$0xf]  ;;  %v3837_v17 = vrot.slane %v3835_v52, 4  ;;  %v3840_v57 = vrot.slane %v3838_v53, 5  ;;  %v3862_v9 = vshll.u32 %v5441_v48, 16  ;;  %v3769_v26 = vor.u32 %v3768_v18, %v7560_v33 }
  0xeb   : > { %v3806_v27 = vshll.u32 %v7595_v44, 16  ;;  %v7614_v3 = vld [vmem:[%s6500_s25 + $0x98] sm:$0x1]  ;;  %v3868_v50 = vshll.u32 %v7602_v25, 16  ;;  %v3872_v52 = vshrl.u32 %v7602_v25, 16  ;;  %v3817_v22 = vor.u32 %v3816_v8, %v3813_v31 }
  0xec   : > { %5947 = vmatmul.mubr.msk.bf16.gmra.mrb[28].mxu0 %vm669_vm3, %v6363_v61  ;;  %v7585_v61 = vrot.slane %v3772_v6, 5  ;;  %v3802_v6 = vrot.slane %v3800_v34, 4  ;;  %v3850_v34 = vrot.slane %v3848_v23, 4  ;;  %v3830_v33 = vshll.u32 %v7605_v2, 16 }
  0xed   : > { %5795 = vmatmul.mubr.msk.bf16.gmra.mrb[12].mxu1 %vm669_vm3, %v8367_v7  ;;  %5952 = vmatprep.mubr.msk.bf16.mxu0 %vm669_vm3, %v7327_v20  ;;  %v3792_v7 = vrot.slane %v3790_v49, 5  ;;  %v7597_v20 = vrot.slane %v3796_v46, 5  ;;  %v3782_v49 = vshll.u32 %v7577_v45, 16  ;;  %v7609_v46 = vrot.slane %v3844_v63, 5 }
  0xee   : > { %5798 = vmatprep.mubr.msk.bf16.mxu1 %vm669_vm3, %v8368_v62  ;;  %v3859_v62 = vshrl.u32 %v5441_v48, 16  ;;  %v3779_v4 = vor.u32 %v3778_v59, %v7585_v61  ;;  %v3827_v23 = vor.u32 %v3826_v51, %v7599_v10  ;;  %v3841_v59 = vor.u32 %v3840_v57, %v3837_v17  ;;  %v7647_v57 = vld [vmem:[%s6500_s25 + $0xa4] sm:$0x1] }
  0xef   : > { %v3793_v53 = vor.u32 %v3792_v7, %v3789_v60  ;;  %v3803_v48 = vor.u32 %v3802_v6, %v7597_v20  ;;  %v3864_v18 = vrot.slane %v3862_v9, 5  ;;  %v8370_v44 = vcombine.low %v7274_v11, %v7278_v40 }
  0xf0   : > { %v3861_v63 = vrot.slane %v3859_v62, 4  ;;  %v8371_v31 = vrot.slane %v7536_v54, 5  ;;  %v3784_v51 = vrot.slane %v3782_v49, 5  ;;  %v3851_v60 = vor.u32 %v3850_v34, %v7609_v46  ;;  %v7650_v34 = vld [vmem:[%s6500_s25 + $0xac] sm:$0xf] }
  0xf1   : > { %v3854_v9 = vshll.u32 %v7614_v3, 16  ;;  %v8372_v11 = vcombine.low %v7346_v39, %v7350_v55  ;;  %v3770_v40 = vrot.slane %v3769_v26, 4  ;;  %v7643_v54 = vrot.slane %v3868_v50, 5 }
  0xf2   : > { %v3794_v7 = vrot.slane %v3793_v53, 4  ;;  %v3804_v6 = vrot.slane %v3803_v48, 4  ;;  %v3808_v8 = vrot.slane %v3806_v27, 5  ;;  %v3832_v17 = vrot.slane %v3830_v33, 5  ;;  %v7660_v48 = vld [vmem:[%s6500_s25 + $0xb0] sm:$0x1] }
  0xf3   : > { %v3818_v39 = vrot.slane %v3817_v22, 4  ;;  %v3828_v55 = vrot.slane %v3827_v23, 4  ;;  %v3842_v62 = vrot.slane %v3841_v59, 4  ;;  %v3865_v49 = vor.u32 %v3864_v18, %v3861_v63 }
  0xf4   : > { %5953 = vmatmul.mubr.msk.bf16.vlgmr.msra.gmra.mrb[0].mxu0 %vm669_vm3, %v7390_v16  ;;  %v7633_v16 = vsel %vm6752_vm7, %v7558_v28, %v8371_v31  ;;  %v3874_v28 = vrot.slane %v3872_v52, 4  ;;  %v3856_v26 = vrot.slane %v3854_v9, 5  ;;  %v3775_v52 = vsel %vm6526_vm4, %v3770_v40, %v7585_v61 }
  0xf5   : > { %5799 = vmatmul.mubr.msk.bf16.gmra.mrb[16].mxu1 %vm669_vm3, %v8370_v44  ;;  %5985 = vmatpush3.bf16.msra.mxu0 %v7331_v14  ;;  %v3780_v14 = vrot.slane %v3779_v4, 4  ;;  %v5444_v44 = vld [vmem:[%s6500_s25 + $0xa8] sm:$0xf]  ;;  %v3878_v22 = vshll.u32 %v7647_v57, 16  ;;  %v3799_v33 = vsel %vm6526_vm4, %v3794_v7, %v7597_v20  ;;  %v3809_v23 = vsel %vm6526_vm4, %v3804_v6, %v3808_v8 }
  0xf6   : > { %5802 = vmatprep.mubr.msk.bf16.mxu1 %vm669_vm3, %v8372_v11  ;;  %5956 = vmatprep.mubr.msk.bf16.mxu0 %vm669_vm3, %v7401_v29  ;;  %v3852_v29 = vrot.slane %v3851_v60, 4  ;;  %v3883_v4 = vshrl.u32 %v5444_v44, 16  ;;  %v3886_v50 = vshll.u32 %v5444_v44, 16  ;;  %v3875_v53 = vor.u32 %v3874_v28, %v7643_v54  ;;  %v5493_v11 = vld [vmem:[%s6500_s25 + $0x48] sm:$0xe] }
  0xf7   : > { %v3785_v27 = vsel %vm6526_vm4, %v3780_v14, %v3784_v51  ;;  %v3892_v59 = vshll.u32 %v7650_v34, 16  ;;  %v3896_v61 = vshrl.u32 %v7650_v34, 16  ;;  %v3823_v63 = vsel %vm6526_vm4, %v3818_v39, %v7599_v10  ;;  %v7725_v39 = vld [vmem:[%s6500_s25 + $0xb8] sm:$0xf] }
  0xf8   : > { %v3833_v18 = vsel %vm6526_vm4, %v3828_v55, %v3832_v17  ;;  %v3847_v20 = vsel %vm6526_vm4, %v3842_v62, %v7609_v46  ;;  %v3866_v31 = vrot.slane %v3865_v49, 4  ;;  %v8373_v51 = vcombine.low %v7363_v12, %v7378_v35 }
  0xf9   : > { %v3885_v10 = vrot.slane %v3883_v4, 4  ;;  %v3888_v60 = vrot.slane %v3886_v50, 5  ;;  %v3902_v9 = vshll.u32 %v7660_v48, 16  ;;  %v8374_v46 = vcombine.low %v7448_v21, %v7473_v56  ;;  %v5447_v21 = vld [vmem:[%s6500_s25 + $0xb4] sm:$0xf] }
  0xfa   : > { %v5114_v12 = vcombine.low %v7524_v42, %v7531_v47  ;;  %v8375_v35 = vsel %vm6526_vm4, %v7544_v5, %v7533_v41  ;;  %v3876_v14 = vrot.slane %v3875_v53, 4  ;;  %v3880_v28 = vrot.slane %v3878_v22, 5  ;;  %v5495_v4 = vld [vmem:[%s6500_s25 + $0x60] sm:$0xe]  ;;  %v5496_v53 = vld [vmem:[%s6500_s25 + $0x6c] sm:$0xe] }
  0xfb   : > { %v5115_v56 = vcombine.low %v7548_v43, %v7633_v16  ;;  %v7708_v44 = vcombine.low %v3775_v52, %v3785_v27  ;;  %v7710_v42 = vrot.slane %v3892_v59, 5  ;;  %v3898_v47 = vrot.slane %v3896_v61, 4  ;;  %v8384_v16 = vld [vmem:[#allocation4_spill] sm:$0xff] }
  0xfc   : > { %5957 = vmatmul.mubr.msk.bf16.gmra.mrb[4].mxu0 %vm669_vm3, %v7504_v37  ;;  %v3857_v37 = vsel %vm6526_vm4, %v3852_v29, %v3856_v26  ;;  %v7712_v41 = vcombine.low %v3799_v33, %v3809_v23  ;;  %v7714_v5 = vcombine.low %v3823_v63, %v3833_v18  ;;  %v3871_v6 = vsel %vm6526_vm4, %v3866_v31, %v7643_v54  ;;  %v8377_v23 = vld [vmem:[#allocation11_spill] sm:$0xff]  ;;  %v5450_v63 = vld [vmem:[%s6500_s25 + $0xc0] sm:$0xf]  ;;  %v8379_v18 = vld [vmem:[#allocation9_spill] sm:$0xff] }
  0xfd   : > { %5803 = vmatmul.mubr.msk.bf16.gmra.mrb[20].mxu1 %vm669_vm3, %v8373_v51  ;;  %5960 = vmatprep.mubr.msk.bf16.mxu0 %vm669_vm3, %v7518_v58  ;;  %v8376_v58 = vsel %vm6526_vm4, %v7506_v19, %v7461_v1  ;;  %v7716_v7 = vcombine.low %v3847_v20, %v3857_v37  ;;  %v5509_v1 = vrot.slane %v5493_v11, 9  ;;  %v5494_v19 = vld [vmem:[%s6500_s25 + $0x54] sm:$0xe]  ;;  %v3889_v8 = vor.u32 %v3888_v60, %v3885_v10  ;;  %v8380_v31 = vld [vmem:[#allocation10_spill] sm:$0xff] }
  0xfe   : > { %5806 = vmatprep.mubr.msk.bf16.mxu1 %vm669_vm3, %v8374_v46  ;;  %v5463_v40 = vcombine.low %v8376_v58, %v8375_v35  ;;  %v7722_v17 = vrot.slane %v3902_v9, 5  ;;  %v3907_v55 = vshrl.u32 %v5447_v21, 16  ;;  %v3881_v62 = vsel %vm6526_vm4, %v3876_v14, %v3880_v28  ;;  %v8381_v9 = vld [vmem:[#allocation12_spill] sm:$0xff]  ;;  %v7774_v35 = vld [vmem:[%s6500_s25 + $0xbc] sm:$0x1] }
  0xff   : > { %v3910_v49 = vshll.u32 %v5447_v21, 16  ;;  %v4366_v29 = vrot.slane %v7356_v0, 5  ;;  %v4369_v26 = vrot.slane %v7410_v38, 5  ;;  %v3899_v50 = vor.u32 %v3898_v47, %v7710_v42  ;;  %v7777_v58 = vld [vmem:[%s6500_s25 + $0xc4] sm:$0xf] }
 0x100   : > { %v5510_v52 = vrot.slane %v5494_v19, 9  ;;  %v4373_v54 = vrot.slane %v7367_v24, 5  ;;  %v4376_v27 = vrot.slane %v7419_v15, 5  ;;  %v3916_v22 = vshll.u32 %v7725_v39, 16  ;;  %v5497_v19 = vld [vmem:[%s6500_s25 + $0x78] sm:$0xe] }
 0x101   : > { %v3920_v33 = vshrl.u32 %v7725_v39, 16  ;;  %v7742_v0 = vsel %vm6752_vm7, %v5509_v1, %v4366_v29  ;;  %v4368_v38 = vrot.slane %v4366_v29, 4  ;;  %v8378_v59 = vcombine.low %v7481_v36, %v8377_v23  ;;  %v8382_v23 = vld [vmem:[#allocation13_spill] sm:$0xff] }
 0x102   : > { %v7749_v24 = vcombine.low %v3871_v6, %v3881_v62  ;;  %v7753_v15 = vsel %vm6752_vm7, %v5510_v52, %v4373_v54  ;;  %v5511_v61 = vrot.slane %v5495_v4, 9  ;;  %v4380_v20 = vrot.slane %v8379_v18, 5  ;;  %v6364_v6 = vld [vmem:[%s6500_s25 + $0xc] sm:$0xff]  }
 0x103   : > { %v7759_v36 = vsel %vm6752_vm7, %v4368_v38, %v4369_v26  ;;  %v4383_v51 = vrot.slane %v8380_v31, 5  ;;  %v5512_v37 = vrot.slane %v5496_v53, 9  ;;  %v4387_v11 = vrot.slane %v8381_v9, 5 }
 0x104   : > { %5961 = vmatmul.mubr.msk.bf16.gmra.mrb[8].mxu0 %vm669_vm3, %v7527_v30  ;;  %v4375_v30 = vrot.slane %v4373_v54, 4  ;;  %v5526_v10 = vcombine.low %v7742_v0, %v7759_v36  ;;  %v4390_v46 = vrot.slane %v7577_v45, 5  ;;  %v7783_v14 = vsel %vm6752_vm7, %v5511_v61, %v4380_v20 }
 0x105   : > { %5807 = vmatmul.mubr.msk.bf16.gmra.mrb[24].mxu1 %vm669_vm3, %v8378_v59  ;;  %5964 = vmatprep.mubr.msk.bf16.mxu0 %vm669_vm3, %v5463_v40  ;;  %v4382_v28 = vrot.slane %v4380_v20, 4  ;;  %v7785_v21 = vrot.slane %v3907_v55, 4  ;;  %v3931_v47 = vshrl.u32 %v5450_v63, 16  ;;  %v7789_v45 = vsel %vm6752_vm7, %v5512_v37, %v4387_v11  ;;  %v5224_v55 = vld [vmem:[%s6500_s25 + $0x78] sm:$0xf]  ;;  %v8383_v59 = vld [vmem:[#allocation16_spill] sm:$0xff] }
 0x106   : > { %5810 = vmatprep.mubr.msk.bf16.mxu1 %vm669_vm3, %v5114_v12  ;;  %v7767_v60 = vsel %vm6752_vm7, %v4375_v30, %v4376_v27  ;;  %v7771_v12 = vrot.slane %v3889_v8, 4  ;;  %v4389_v1 = vrot.slane %v4387_v11, 4  ;;  %v7793_v8 = vrot.slane %v3899_v50, 4 }
 0x107   : > { %v5527_v40 = vcombine.low %v7753_v15, %v7767_v60  ;;  %v7795_v62 = vrot.slane %v3910_v49, 5  ;;  %v3934_v29 = vshll.u32 %v5450_v63, 16  ;;  %v7799_v26 = vsel %vm6752_vm7, %v4382_v28, %v4383_v51  ;;  %v8386_v28 = vld [vmem:[#allocation14_spill] sm:$0xff] }
 0x108   : > { %v7802_v4 = vrot.slane %v3916_v22, 5  ;;  %v7804_v52 = vrot.slane %v3920_v33, 4  ;;  %v5528_v54 = vcombine.low %v7783_v14, %v7799_v26  ;;  %v7810_v27 = vsel %vm6752_vm7, %v4389_v1, %v4390_v46  ;;  %v5498_v33 = vld [vmem:[%s6500_s25 + $0x84] sm:$0xe]  ;;  %v6365_v1 = vld [vmem:[%s6500_s25 + $0x18] sm:$0xff]  }
 0x109   : > { %v3926_v49 = vshll.u32 %v7774_v35, 16  ;;  %v3940_v50 = vshll.u32 %v7777_v58, 16  ;;  %v5529_v53 = vcombine.low %v7789_v45, %v7810_v27  ;;  %v5513_v22 = vrot.slane %v5497_v19, 9  ;;  %v6427_v60 = vld [vmem:[%s6500_s25 + $0xa0] sm:$0xf] }
 0x10a   : > { %v3933_v38 = vrot.slane %v3931_v47, 4  ;;  %v4397_v30 = vrot.slane %v8383_v59, 5  ;;  %v2256_v61 = vshrl.u32 %v5224_v55, 16  ;;  %v3936_v63 = vrot.slane %v3934_v29, 5  ;;  %v5453_v29 = vld [vmem:[%s6500_s25 + $0xcc] sm:$0xf] }
 0x10b   : > { %v3944_v18 = vshrl.u32 %v7777_v58, 16  ;;  %v2259_v43 = vshll.u32 %v5224_v55, 16  ;;  %v5514_v37 = vrot.slane %v5498_v33, 9  ;;  %v3895_v9 = vsel %vm6526_vm4, %v7771_v12, %v7710_v42  ;;  %v7853_v55 = vld [vmem:[%s6500_s25 + $0xd0] sm:$0xf] }
 0x10c   : > { %5965 = vmatmul.mubr.msk.bf16.gmra.mrb[12].mxu0 %vm669_vm3, %v7708_v44  ;;  %v4394_v44 = vrot.slane %v8382_v23, 5  ;;  %v2258_v51 = vrot.slane %v2256_v61, 4  ;;  %v3913_v11 = vor.u32 %v7795_v62, %v7785_v21  ;;  %v4401_v47 = vrot.slane %v8386_v28, 5  ;;  %v6366_v21 = vld [vmem:[%s6500_s25 + $0x24] sm:$0xff]   ;;  %v6431_v27 = vld [vmem:[%s6500_s25 + $0xac] sm:$0xf] }
 0x10d   : > { %5811 = vmatmul.mubr.msk.bf16.gmra.mrb[28].mxu1 %vm669_vm3, %v5115_v56  ;;  %5968 = vmatprep.mubr.msk.bf16.mxu0 %vm669_vm3, %v7712_v41  ;;  %v8385_v56 = vld [vmem:[#allocation5_spill] sm:$0xff]  ;;  %v2261_v46 = vrot.slane %v2259_v43, 5  ;;  %v3905_v19 = vsel %vm6526_vm4, %v7793_v8, %v7722_v17  ;;  %v4404_v12 = vrot.slane %v7605_v2, 5  ;;  %v7861_v62 = vrot.slane %v3940_v50, 5  ;;  %v5499_v8 = vld [vmem:[%s6500_s25 + $0x90] sm:$0xe] }
 0x10e   : > { %5816 = vmatprep.mubr.msk.bf16.mxu1 %vm669_vm3, %v6364_v6  ;;  %v2278_v41 = vsel %vm6526_vm4, %v8385_v56, %v8384_v16  ;;  %v7835_v20 = vsel %vm6752_vm7, %v5513_v22, %v4394_v44  ;;  %v4396_v31 = vrot.slane %v4394_v44, 4  ;;  %v3923_v6 = vor.u32 %v7804_v52, %v7802_v4  ;;  %v7867_v52 = vld [vmem:[%s6500_s25 + $0xc8] sm:$0x1]  ;;  %v8388_v16 = vld [vmem:[#allocation2_spill] sm:$0xff] }
 0x10f   : > { %v3946_v22 = vrot.slane %v3944_v18, 4  ;;  %v2262_v17 = vor.u32 %v2261_v46, %v2258_v51  ;;  %v3928_v23 = vrot.slane %v3926_v49, 5  ;;  %v3937_v44 = vor.u32 %v3936_v63, %v3933_v38  ;;  %v8389_v51 = vld [vmem:[#allocation3_spill] sm:$0xff] }
 0x110   : > { %v7857_v42 = vsel %vm6752_vm7, %v4396_v31, %v4397_v30  ;;  %v7871_v59 = vsel %vm6752_vm7, %v5514_v37, %v4401_v47  ;;  %v4403_v30 = vrot.slane %v4401_v47, 4  ;;  %v3955_v2 = vshrl.u32 %v5453_v29, 16 }
 0x111   : > { %v5530_v33 = vcombine.low %v7835_v20, %v7857_v42  ;;  %v3958_v50 = vshll.u32 %v5453_v29, 16  ;;  %v3964_v61 = vshll.u32 %v7853_v55, 16  ;;  %v2263_v18 = vrot.slane %v2262_v17, 4  ;;  %v6367_v29 = vld [vmem:[%s6500_s25 + $0x30] sm:$0xff]  }
 0x112   : > { %v3968_v49 = vshrl.u32 %v7853_v55, 16  ;;  %v7882_v38 = vsel %vm6752_vm7, %v4403_v30, %v4404_v12  ;;  %v5515_v63 = vrot.slane %v5499_v8, 9  ;;  %v3947_v56 = vor.u32 %v3946_v22, %v7861_v62 }
 0x113   : > { %v3950_v31 = vshll.u32 %v7867_v52, 16  ;;  %v5531_v37 = vcombine.low %v7871_v59, %v7882_v38  ;;  %v5469_v46 = vcombine.low %v3895_v9, %v3905_v19  ;;  %v3914_v28 = vrot.slane %v3913_v11, 4  ;;  %v5500_v11 = vld [vmem:[%s6500_s25 + $0x9c] sm:$0xe] }
 0x114   : > { %5969 = vmatmul.mubr.msk.bf16.gmra.mrb[16].mxu0 %vm669_vm3, %v7714_v5  ;;  %v8387_v5 = vld [vmem:[#allocation15_spill] sm:$0xff]  ;;  %v3924_v47 = vrot.slane %v3923_v6, 4  ;;  %v3938_v12 = vrot.slane %v3937_v44, 4  ;;  %v4411_v8 = vrot.slane %v7614_v3, 5  ;;  %v3957_v30 = vrot.slane %v3955_v2, 4  ;;  %v6368_v19 = vld [vmem:[%s6500_s25 + $0x3c] sm:$0xff]  }
 0x115   : > { %5817 = vmatmul.mubr.msk.bf16.vlgmr.msra.gmra.mrb[0].mxu1 %vm669_vm3, %v6365_v1  ;;  %5972 = vmatprep.mubr.msk.bf16.mxu0 %vm669_vm3, %v7716_v7  ;;  %v4408_v43 = vrot.slane %v8387_v5, 5  ;;  %v2268_v7 = vsel %vm6526_vm4, %v2263_v18, %v8389_v51  ;;  %v3960_v18 = vrot.slane %v3958_v50, 5  ;;  %v7905_v5 = vrot.slane %v3964_v61, 5 }
 0x116   : > { %6019 = vmatpush3.bf16.msra.mxu1 %v8388_v16  ;;  %5820 = vmatprep.mubr.msk.bf16.mxu1 %vm669_vm3, %v6366_v21  ;;  %v7894_v1 = vcombine.low %v2268_v7, %v2278_v41  ;;  %v7898_v21 = vld [vmem:[%s6500_s25 + $0xd4] sm:$0x1]  ;;  %v3970_v9 = vrot.slane %v3968_v49, 4  ;;  %v3948_v41 = vrot.slane %v3947_v56, 4  ;;  %v3952_v6 = vrot.slane %v3950_v31, 5 }
 0x117   : > { %v7902_v22 = vsel %vm6752_vm7, %v5515_v63, %v4408_v43  ;;  %v4410_v17 = vrot.slane %v4408_v43, 4  ;;  %v3919_v63 = vsel %vm6526_vm4, %v3914_v28, %v7802_v4  ;;  %v3929_v2 = vsel %vm6526_vm4, %v3924_v47, %v3928_v23  ;;  %v6418_v16 = vld [vmem:[%s6500_s25 + $0x1c] sm:$0xf]  ;;  %v5501_v28 = vld [vmem:[%s6500_s25 + $0xa8] sm:$0xe] }
 0x118   : > { %v3974_v50 = vshll.u32 %v7898_v21, 16  ;;  %v5516_v61 = vrot.slane %v5500_v11, 9  ;;  %v4415_v49 = vrot.slane %v7602_v25, 5  ;;  %v3943_v4 = vsel %vm6526_vm4, %v3938_v12, %v7861_v62  ;;  %v5489_v62 = vld [vmem:[%s6500_s25 + $0x18] sm:$0xe]  ;;  %v6369_v47 = vld [vmem:[%s6500_s25 + $0x48] sm:$0xff]  }
 0x119   : > { %v7911_v44 = vsel %vm6752_vm7, %v4410_v17, %v4411_v8  ;;  %v3971_v43 = vor.u32 %v3970_v9, %v7905_v5  ;;  %v4418_v23 = vrot.slane %v7647_v57, 5  ;;  %v3953_v25 = vsel %vm6526_vm4, %v3948_v41, %v3952_v6  ;;  %v6419_v11 = vld [vmem:[%s6500_s25 + $0x20] sm:$0x1] }
 0x11a   : > { %v5532_v3 = vcombine.low %v7902_v22, %v7911_v44  ;;  %v4338_v56 = vrot.slane %v6418_v16, 5  ;;  %v7937_v31 = vsel %vm6752_vm7, %v5516_v61, %v4415_v49  ;;  %v4417_v51 = vrot.slane %v4415_v49, 4  ;;  %v5502_v49 = vld [vmem:[%s6500_s25 + $0xb4] sm:$0xe] }
 0x11b   : > { %v5470_v7 = vcombine.low %v3919_v63, %v3929_v2  ;;  %v3972_v17 = vrot.slane %v3971_v43, 4  ;;  %v5517_v41 = vrot.slane %v5501_v28, 9  ;;  %v4422_v6 = vrot.slane %v7650_v34, 5  ;;  %v5490_v2 = vld [vmem:[%s6500_s25 + $0x24] sm:$0xe] }
 0x11c   : > { %5973 = vmatmul.mubr.msk.bf16.gmra.mrb[20].mxu0 %vm669_vm3, %v7749_v24  ;;  %v3961_v24 = vor.u32 %v3960_v18, %v3957_v30  ;;  %v7942_v57 = vsel %vm6752_vm7, %v4417_v51, %v4418_v23  ;;  %v6370_v30 = vld [vmem:[%s6500_s25 + $0x54] sm:$0xff]   ;;  %v5505_v18 = vrot.slane %v5489_v62, 9  ;;  %v4340_v9 = vrot.slane %v4338_v56, 4  ;;  %v6422_v28 = vld [vmem:[%s6500_s25 + $0x2c] sm:$0x1] }
 0x11d   : > { %5821 = vmatmul.mubr.msk.bf16.gmra.mrb[4].mxu1 %vm669_vm3, %v6367_v29  ;;  %5976 = vmatprep.mubr.msk.bf16.mxu0 %vm669_vm3, %v5469_v46  ;;  %v3976_v46 = vrot.slane %v3974_v50, 5  ;;  %v5471_v29 = vcombine.low %v3943_v4, %v3953_v25  ;;  %v5533_v8 = vcombine.low %v7937_v31, %v7942_v57  ;;  %v4425_v63 = vrot.slane %v7660_v48, 5  ;;  %v6420_v50 = vld [vmem:[%s6500_s25 + $0x28] sm:$0xf]  ;;  %v5491_v25 = vld [vmem:[%s6500_s25 + $0x30] sm:$0xe] }
 0x11e   : > { %5824 = vmatprep.mubr.msk.bf16.mxu1 %vm669_vm3, %v6368_v19  ;;  %v3962_v12 = vrot.slane %v3961_v24, 4  ;;  %v4341_v19 = vrot.slane %v6419_v11, 5  ;;  %v4345_v61 = vrot.slane %v6420_v50, 5  ;;  %v7965_v48 = vsel %vm6752_vm7, %v5517_v41, %v4422_v6  ;;  %v6372_v11 = vld [vmem:[%s6500_s25 + $0x6c] sm:$0xff]   ;;  %v8390_v41 = vld [vmem:[#allocation6_spill] sm:$0xff] }
 0x11f   : > { %v3977_v34 = vsel %vm6526_vm4, %v3972_v17, %v3976_v46  ;;  %v4424_v24 = vrot.slane %v4422_v6, 4  ;;  %v4339_v43 = vsel %vm6752_vm7, %v5505_v18, %v4338_v56  ;;  %v5506_v51 = vrot.slane %v5490_v2, 9  ;;  %v5503_v50 = vld [vmem:[%s6500_s25 + $0xc0] sm:$0xe]  ;;  %v6436_v31 = vld [vmem:[%s6500_s25 + $0xc8] sm:$0x1] }
 0x120   : > { %v3967_v4 = vsel %vm6526_vm4, %v3962_v12, %v7905_v5  ;;  %v4342_v23 = vsel %vm6752_vm7, %v4340_v9, %v4341_v19  ;;  %v6421_v5 = vld [vmem:[%s6500_s25 + $0x34] sm:$0xf]  ;;  %v6371_v12 = vld [vmem:[%s6500_s25 + $0x60] sm:$0xff]   ;;  %v5507_v18 = vrot.slane %v5491_v25, 9  ;;  %v4432_v9 = vrot.slane %v7774_v35, 5 }
 0x121   : > { %v4352_v16 = vrot.slane %v6421_v5, 5  ;;  %v7976_v62 = vsel %vm6752_vm7, %v4424_v24, %v4425_v63  ;;  %v5472_v46 = vcombine.low %v3967_v4, %v3977_v34  ;;  %v5522_v17 = vcombine.low %v4339_v43, %v4342_v23  ;;  %v5492_v24 = vld [vmem:[%s6500_s25 + $0x3c] sm:$0xe] }
 0x122   : > { %v5534_v56 = vcombine.low %v7965_v48, %v7976_v62  ;;  %v4355_v6 = vrot.slane %v8390_v41, 5  ;;  %v4346_v35 = vsel %vm6752_vm7, %v5506_v51, %v4345_v61  ;;  %v5519_v5 = vrot.slane %v5503_v50, 9 }
 0x123   : > { %v4354_v19 = vrot.slane %v4352_v16, 4  ;;  %v4353_v23 = vsel %vm6752_vm7, %v5507_v18, %v4352_v16  ;;  %v4439_v51 = vrot.slane %v7867_v52, 5  ;;  %v2419_v57 = vshll.u32 %v6436_v31, 16 }
 0x124   : > { %5977 = vmatmul.mubr.msk.bf16.gmra.mrb[24].mxu0 %vm669_vm3, %v5470_v7  ;;  %v5518_v7 = vrot.slane %v5502_v49, 9 }
 0x125   : > { %5825 = vmatmul.mubr.msk.bf16.gmra.mrb[8].mxu1 %vm669_vm3, %v6369_v47  ;;  %5980 = vmatprep.mubr.msk.bf16.mxu0 %vm669_vm3, %v5471_v29  ;;  %v4348_v47 = vrot.slane %v6422_v28, 5  ;;  %v4429_v29 = vrot.slane %v7725_v39, 5  ;;  %v8391_v39 = vld [vmem:[#allocation7_spill] sm:$0xff]  ;;  %v4356_v25 = vsel %vm6752_vm7, %v4354_v19, %v4355_v6  ;;  %v5508_v28 = vrot.slane %v5492_v24, 9 }
 0x126   : > { %5828 = vmatprep.mubr.msk.bf16.mxu1 %vm669_vm3, %v6370_v30  ;;  %v4347_v30 = vrot.slane %v4345_v61, 4  ;;  %v4359_v49 = vrot.slane %v8391_v39, 5  ;;  %v4436_v61 = vrot.slane %v7777_v58, 5  ;;  %v6423_v39 = vld [vmem:[%s6500_s25 + $0x70] sm:$0xf]  ;;  %v4443_v24 = vrot.slane %v7853_v55, 5 }
 0x127   : > { %v7988_v63 = vsel %vm6752_vm7, %v5518_v7, %v4429_v29  ;;  %v4431_v2 = vrot.slane %v4429_v29, 4  ;;  %v5221_v7 = vld [vmem:[%s6500_s25 + $0x6c] sm:$0xf]  ;;  %v8392_v29 = vld [vmem:[#allocation8_spill] sm:$0xff] }
 0x128   : > { %v4349_v34 = vsel %vm6752_vm7, %v4347_v30, %v4348_v47  ;;  %v4361_v47 = vrot.slane %v4359_v49, 4  ;;  %v6373_v30 = vld [vmem:[%s6500_s25 + $0x78] sm:$0xff]   ;;  %v8019_v16 = vsel %vm6752_vm7, %v5519_v5, %v4436_v61  ;;  %v4438_v18 = vrot.slane %v4436_v61, 4 }
 0x129   : > { %v7995_v4 = vsel %vm6752_vm7, %v4431_v2, %v4432_v9  ;;  %v5524_v9 = vcombine.low %v4353_v23, %v4356_v25  ;;  %v2232_v19 = vshrl.u32 %v5221_v7, 16  ;;  %v2235_v41 = vshll.u32 %v5221_v7, 16 }
 0x12a   : > { %v5535_v43 = vcombine.low %v7988_v63, %v7995_v4  ;;  %v8024_v58 = vsel %vm6752_vm7, %v4438_v18, %v4439_v51  ;;  %v4360_v6 = vsel %vm6752_vm7, %v5508_v28, %v4359_v49  ;;  %v4446_v49 = vrot.slane %v7898_v21, 5  ;;  %v6375_v51 = vld [vmem:[%s6500_s25 + $0x90] sm:$0xff]   ;;  %v6376_v21 = vld [vmem:[%s6500_s25 + $0x9c] sm:$0xff]  }
 0x12b   : > { %v5536_v50 = vcombine.low %v8019_v16, %v8024_v58  ;;  %v2234_v23 = vrot.slane %v2232_v19, 4  ;;  %v2237_v25 = vrot.slane %v2235_v41, 5  ;;  %v4445_v7 = vrot.slane %v4443_v24, 4 }
 0x12c   : > { %5981 = vmatmul.mubr.msk.bf16.gmra.mrb[28].mxu0 %vm669_vm3, %v5472_v46  ;;  %v5523_v46 = vcombine.low %v4346_v35, %v4349_v34  ;;  %v2241_v35 = vshll.u32 %v6423_v39, 16  ;;  %v2245_v34 = vshrl.u32 %v6423_v39, 16 }
 0x12d   : > { %5829 = vmatmul.mubr.msk.bf16.gmra.mrb[12].mxu1 %vm669_vm3, %v6371_v12  ;;  %5986 = vmatprep.mubr.msk.bf16.mxu0 %vm669_vm3, %v5522_v17  ;;  %v4362_v12 = vrot.slane %v8392_v29, 5  ;;  %v5504_v17 = vld [vmem:[%s6500_s25 + $0xcc] sm:$0xe]  ;;  %v8046_v55 = vsel %vm6752_vm7, %v4445_v7, %v4446_v49 }
 0x12e   : > { %5832 = vmatprep.mubr.msk.bf16.mxu1 %vm669_vm3, %v6372_v11  ;;  %v6374_v11 = vld [vmem:[%s6500_s25 + $0x84] sm:$0xff]   ;;  %v5520_v52 = vrot.slane %v5504_v17, 9  ;;  %v2247_v28 = vrot.slane %v2245_v34, 4  ;;  %v6424_v17 = vld [vmem:[%s6500_s25 + $0x74] sm:$0x1] }
 0x12f   : > { %v4363_v2 = vsel %vm6752_vm7, %v4361_v47, %v4362_v12  ;;  %v5227_v47 = vld [vmem:[%s6500_s25 + $0x84] sm:$0xf]  ;;  %v2238_v12 = vor.u32 %v2237_v25, %v2234_v23  ;;  %v6378_v34 = vld [vmem:[%s6500_s25 + $0xb4] sm:$0xff]  }
 0x130   : > { %v8041_v5 = vsel %vm6752_vm7, %v5520_v52, %v4443_v24  ;;  %v5525_v61 = vcombine.low %v4360_v6, %v4363_v2  ;;  %v2283_v18 = vshll.u32 %v5227_v47, 16  ;;  %v5230_v6 = vld [vmem:[%s6500_s25 + $0x90] sm:$0xf]  ;;  %v6377_v2 = vld [vmem:[%s6500_s25 + $0xa8] sm:$0xff]  }
 0x131   : > { %v5537_v29 = vcombine.low %v8041_v5, %v8046_v55  ;;  %v2239_v52 = vrot.slane %v2238_v12, 4  ;;  %v2304_v23 = vshrl.u32 %v5230_v6, 16  ;;  %v2307_v25 = vshll.u32 %v5230_v6, 16 }
 0x132   : > { %v2337_v12 = vshll.u32 %v6427_v60, 16 }
 0x133   : > { %v2309_v14 = vrot.slane %v2307_v25, 5  ;;  %v6430_v25 = vld [vmem:[%s6500_s25 + $0xa4] sm:$0x1] }
 0x134   : > { %5987 = vmatmul.mubr.msk.bf16.vlgmr.msra.gmra.mrb[0].mxu0 %vm669_vm3, %v5523_v46  ;;  %v2243_v46 = vrot.slane %v2241_v35, 5  ;;  %v5233_v35 = vld [vmem:[%s6500_s25 + $0x9c] sm:$0xf]  ;;  %v8088_v6 = vrot.slane %v2337_v12, 5 }
 0x135   : > { %5833 = vmatmul.mubr.msk.bf16.gmra.mrb[16].mxu1 %vm669_vm3, %v6373_v30  ;;  %5990 = vmatprep.mubr.msk.bf16.mxu0 %vm669_vm3, %v5524_v9  ;;  %v2251_v30 = vshll.u32 %v6424_v17, 16  ;;  %v2280_v9 = vshrl.u32 %v5227_v47, 16  ;;  %v2331_v47 = vshll.u32 %v5233_v35, 16  ;;  %v6428_v17 = vld [vmem:[%s6500_s25 + $0x8c] sm:$0x1] }
 0x136   : > { %5836 = vmatprep.mubr.msk.bf16.mxu1 %vm669_vm3, %v6374_v11  ;;  %v2248_v13 = vor.u32 %v2247_v28, %v2243_v46  ;;  %v6425_v11 = vld [vmem:[%s6500_s25 + $0x88] sm:$0xf]  ;;  %v2244_v7 = vsel %vm6526_vm4, %v2239_v52, %v2243_v46 }
 0x137   : > { %v2289_v19 = vshll.u32 %v6425_v11, 16  ;;  %v2293_v41 = vshrl.u32 %v6425_v11, 16  ;;  %v2253_v0 = vrot.slane %v2251_v30, 5  ;;  %v2282_v36 = vrot.slane %v2280_v9, 4 }
 0x138   : > { %v2249_v39 = vrot.slane %v2248_v13, 4  ;;  %v2299_v30 = vshll.u32 %v6428_v17, 16  ;;  %v2306_v9 = vrot.slane %v2304_v23, 4  ;;  %v2333_v11 = vrot.slane %v2331_v47, 5 }
 0x139   : > { %v8065_v24 = vrot.slane %v2289_v19, 5  ;;  %v2295_v49 = vrot.slane %v2293_v41, 4  ;;  %v6379_v19 = vld [vmem:[%s6500_s25 + $0xc0] sm:$0xff]  }
 0x13a   : > { %v2254_v46 = vsel %vm6526_vm4, %v2249_v39, %v2253_v0  ;;  %v5236_v39 = vld [vmem:[%s6500_s25 + $0xa8] sm:$0xf] }
 0x13b   : > { %v2296_v13 = vor.u32 %v2295_v49, %v8065_v24  ;;  %v5254_v41 = vcombine.low %v2244_v7, %v2254_v46  ;;  %v2347_v7 = vshll.u32 %v6430_v25, 16  ;;  %v2355_v45 = vshll.u32 %v5236_v39, 16 }
 0x13c   : > { %5991 = vmatmul.mubr.msk.bf16.gmra.mrb[4].mxu0 %vm669_vm3, %v5525_v61  ;;  %v6426_v61 = vld [vmem:[%s6500_s25 + $0x94] sm:$0xf] }
 0x13d   : > { %5837 = vmatmul.mubr.msk.bf16.gmra.mrb[20].mxu1 %vm669_vm3, %v6375_v51  ;;  %5994 = vmatprep.mubr.msk.bf16.mxu0 %vm669_vm3, %v5526_v10  ;;  %v2285_v10 = vrot.slane %v2283_v18, 5  ;;  %v2313_v51 = vshll.u32 %v6426_v61, 16  ;;  %v2317_v28 = vshrl.u32 %v6426_v61, 16  ;;  %v2297_v0 = vrot.slane %v2296_v13, 4 }
 0x13e   : > { %5840 = vmatprep.mubr.msk.bf16.mxu1 %vm669_vm3, %v6376_v21  ;;  %v2328_v21 = vshrl.u32 %v5233_v35, 16  ;;  %v6429_v35 = vld [vmem:[%s6500_s25 + $0x98] sm:$0x1]  ;;  %v2352_v61 = vshrl.u32 %v5236_v39, 16  ;;  %v5242_v39 = vld [vmem:[%s6500_s25 + $0xc0] sm:$0xf] }
 0x13f   : > { %v2286_v15 = vor.u32 %v2285_v10, %v2282_v36  ;;  %v8085_v26 = vrot.slane %v2313_v51, 5  ;;  %v2301_v36 = vrot.slane %v2299_v30, 5  ;;  %v2310_v10 = vor.u32 %v2309_v14, %v2306_v9  ;;  %v5239_v51 = vld [vmem:[%s6500_s25 + $0xb4] sm:$0xf] }
 0x140   : > { %v2330_v18 = vrot.slane %v2328_v21, 4  ;;  %v2365_v21 = vshrl.u32 %v6431_v27, 16  ;;  %v2376_v20 = vshrl.u32 %v5239_v51, 16  ;;  %v2379_v42 = vshll.u32 %v5239_v51, 16 }
 0x141   : > { %v2287_v52 = vrot.slane %v2286_v15, 4  ;;  %v2302_v46 = vsel %vm6526_vm4, %v2297_v0, %v2301_v36  ;;  %v2311_v15 = vrot.slane %v2310_v10, 4  ;;  %v2349_v30 = vrot.slane %v2347_v7, 5 }
 0x142   : > { %v2334_v23 = vor.u32 %v2333_v11, %v2330_v18  ;;  %v2354_v9 = vrot.slane %v2352_v61, 4  ;;  %v2367_v11 = vrot.slane %v2365_v21, 4  ;;  %v6435_v61 = vld [vmem:[%s6500_s25 + $0xbc] sm:$0x1] }
 0x143   : > { %v2292_v47 = vsel %vm6526_vm4, %v2287_v52, %v8065_v24  ;;  %v2316_v0 = vsel %vm6526_vm4, %v2311_v15, %v8085_v26  ;;  %v2395_v22 = vshll.u32 %v6435_v61, 16 }
 0x144   : > { %5995 = vmatmul.mubr.msk.bf16.gmra.mrb[8].mxu0 %vm669_vm3, %v5527_v40  ;;  %v2341_v40 = vshrl.u32 %v6427_v60, 16  ;;  %v2335_v17 = vrot.slane %v2334_v23, 4  ;;  %v5256_v24 = vcombine.low %v2292_v47, %v2302_v46 }
 0x145   : > { %5841 = vmatmul.mubr.msk.bf16.gmra.mrb[24].mxu1 %vm669_vm3, %v6377_v2  ;;  %5998 = vmatprep.mubr.msk.bf16.mxu0 %vm669_vm3, %v5528_v54  ;;  %v2319_v54 = vrot.slane %v2317_v28, 4 }
 0x146   : > { %5844 = vmatprep.mubr.msk.bf16.mxu1 %vm669_vm3, %v6378_v34  ;;  %v2343_v2 = vrot.slane %v2341_v40, 4  ;;  %v2323_v34 = vshll.u32 %v6429_v35, 16  ;;  %v2340_v10 = vsel %vm6526_vm4, %v2335_v17, %v8088_v6  ;;  %v2421_v17 = vrot.slane %v2419_v57, 5 }
 0x147   : > { %v2320_v49 = vor.u32 %v2319_v54, %v8085_v26  ;;  %v2357_v54 = vrot.slane %v2355_v45, 5  ;;  %v6433_v26 = vld [vmem:[%s6500_s25 + $0xb0] sm:$0x1] }
 0x148   : > { %v2344_v28 = vor.u32 %v2343_v2, %v8088_v6  ;;  %v2325_v60 = vrot.slane %v2323_v34, 5  ;;  %v2371_v35 = vshll.u32 %v6433_v26, 16  ;;  %v2400_v34 = vshrl.u32 %v5242_v39, 16 }
 0x149   : > { %v2321_v13 = vrot.slane %v2320_v49, 4  ;;  %v2358_v38 = vor.u32 %v2357_v54, %v2354_v9  ;;  %v2403_v6 = vshll.u32 %v5242_v39, 16  ;;  %v6434_v49 = vld [vmem:[%s6500_s25 + $0xc4] sm:$0xf] }
 0x14a   : > { %v2345_v14 = vrot.slane %v2344_v28, 4  ;;  %v2409_v23 = vshll.u32 %v6434_v49, 16  ;;  %v2413_v25 = vshrl.u32 %v6434_v49, 16  ;;  %v2373_v45 = vrot.slane %v2371_v35, 5 }
 0x14b   : > { %v2326_v36 = vsel %vm6526_vm4, %v2321_v13, %v2325_v60  ;;  %v2359_v51 = vrot.slane %v2358_v38, 4  ;;  %v2397_v60 = vrot.slane %v2395_v22, 5 }
 0x14c   : > { %5999 = vmatmul.mubr.msk.bf16.gmra.mrb[12].mxu0 %vm669_vm3, %v5529_v53  ;;  %v2361_v53 = vshll.u32 %v6431_v27, 16  ;;  %v2350_v59 = vsel %vm6526_vm4, %v2345_v14, %v2349_v30  ;;  %v5257_v44 = vcombine.low %v2316_v0, %v2326_v36  ;;  %v2402_v27 = vrot.slane %v2400_v34, 4 }
 0x14d   : > { %5845 = vmatmul.mubr.msk.bf16.gmra.mrb[28].mxu1 %vm669_vm3, %v6379_v19  ;;  %6002 = vmatprep.mubr.msk.bf16.mxu0 %vm669_vm3, %v5530_v33  ;;  %v6432_v33 = vld [vmem:[%s6500_s25 + $0xb8] sm:$0xf]  ;;  %v2378_v19 = vrot.slane %v2376_v20, 4  ;;  %v2411_v21 = vrot.slane %v2409_v23, 5  ;;  %v2415_v47 = vrot.slane %v2413_v25, 4 }
 0x14e   : > { %5866 = vmatprep.mubr.msk.bf16.mxu1 %vm669_vm3, %v5254_v41  ;;  %v2385_v12 = vshll.u32 %v6432_v33, 16  ;;  %v2389_v40 = vshrl.u32 %v6432_v33, 16  ;;  %v2363_v18 = vrot.slane %v2361_v53, 5  ;;  %v2381_v41 = vrot.slane %v2379_v42, 5 }
 0x14f   : > { %v2405_v53 = vrot.slane %v2403_v6, 5 }
 0x150   : > { %v2387_v52 = vrot.slane %v2385_v12, 5  ;;  %v2391_v2 = vrot.slane %v2389_v40, 4  ;;  %v2364_v20 = vsel %vm6526_vm4, %v2359_v51, %v2363_v18  ;;  %v2416_v12 = vor.u32 %v2415_v47, %v2411_v21 }
 0x151   : > { %v2406_v33 = vor.u32 %v2405_v53, %v2402_v27 }
 0x152   : > { %v2392_v7 = vor.u32 %v2391_v2, %v2387_v52  ;;  %v2417_v13 = vrot.slane %v2416_v12, 4 }
 0x153   : > { %v2407_v40 = vrot.slane %v2406_v33, 4 }
 0x154   : > { %6003 = vmatmul.mubr.msk.bf16.gmra.mrb[16].mxu0 %vm669_vm3, %v5531_v37  ;;  %v2368_v37 = vor.u32 %v2367_v11, %v2363_v18  ;;  %v2393_v15 = vrot.slane %v2392_v7, 4  ;;  %v2422_v9 = vsel %vm6526_vm4, %v2417_v13, %v2421_v17 }
 0x155   : > { %5867 = vmatmul.mubr.msk.bf16.vlgmr.msra.gmra.mrb[16].mxu1 %vm669_vm3, %v7894_v1  ;;  %6006 = vmatprep.mubr.msk.bf16.mxu0 %vm669_vm3, %v5532_v3  ;;  %v2382_v1 = vor.u32 %v2381_v41, %v2378_v19  ;;  %v5258_v3 = vcombine.low %v2340_v10, %v2350_v59  ;;  %v2412_v30 = vsel %vm6526_vm4, %v2407_v40, %v2411_v21 }
 0x156   : > { %5870 = vmatprep.mubr.msk.bf16.mxu1 %vm669_vm3, %v5256_v24  ;;  %v2369_v28 = vrot.slane %v2368_v37, 4  ;;  %v2398_v48 = vsel %vm6526_vm4, %v2393_v15, %v2397_v60  ;;  %v5261_v14 = vcombine.low %v2412_v30, %v2422_v9 }
 0x157   : > { %v2383_v46 = vrot.slane %v2382_v1, 4 }
 0x158   : > { %v2374_v42 = vsel %vm6526_vm4, %v2369_v28, %v2373_v45 }
 0x159   : > { %v5259_v62 = vcombine.low %v2364_v20, %v2374_v42 }
 0x15c   : > { %6007 = vmatmul.mubr.msk.bf16.gmra.mrb[20].mxu0 %vm669_vm3, %v5533_v8  ;;  %v2388_v8 = vsel %vm6526_vm4, %v2383_v46, %v2387_v52 }
 0x15d   : > { %5871 = vmatmul.mubr.msk.bf16.gmra.mrb[20].mxu1 %vm669_vm3, %v5257_v44  ;;  %6010 = vmatprep.mubr.msk.bf16.mxu0 %vm669_vm3, %v5534_v56  ;;  %v5260_v56 = vcombine.low %v2388_v8, %v2398_v48 }
 0x15e   : > { %5874 = vmatprep.mubr.msk.bf16.mxu1 %vm669_vm3, %v5258_v3 }
 0x164   : > { %6011 = vmatmul.mubr.msk.bf16.gmra.mrb[24].mxu0 %vm669_vm3, %v5535_v43 }
 0x165   : > { %5875 = vmatmul.mubr.msk.bf16.gmra.mrb[24].mxu1 %vm669_vm3, %v5259_v62  ;;  %6014 = vmatprep.mubr.msk.bf16.mxu0 %vm669_vm3, %v5536_v50 }
 0x166   : > { %5878 = vmatprep.mubr.msk.bf16.mxu1 %vm669_vm3, %v5260_v56 }
 0x16c   : > { %6015 = vmatmul.mubr.msk.bf16.gmra.mrb[28].mxu0 %vm669_vm3, %v5537_v29 }
 0x16d   : > { %5879 = vmatmul.mubr.msk.bf16.gmra.mrb[28].mxu1 %vm669_vm3, %v5261_v14 }
 0x1e8   : > { %v5818_v63 = vpop.f32.mrb[0].mxu1 }
 0x1e9   : > { %v1832_v4 = vpop.f32.mrb[1].mxu1 }
 0x1ea   : > { %v5819_v43 = vpop.f32.mrb[2].mxu1 }
 0x1eb   : > { %v1835_v16 = vpop.f32.mrb[3].mxu1 }
 0x1f0   : > { %v5822_v58 = vpop.f32.mrb[4].mxu1 }
 0x1f1   : > { %v1848_v50 = vpop.f32.mrb[5].mxu1 }
 0x1f2   : > { %v5823_v54 = vpop.f32.mrb[6].mxu1 }
 0x1f3   : > { %v1851_v18 = vpop.f32.mrb[7].mxu1 }
 0x1f8   : > { %v5826_v11 = vpop.f32.mrb[8].mxu1 }
 0x1f9   : > { %v1864_v24 = vpop.f32.mrb[9].mxu1 }
 0x1fa   : > { %v5827_v32 = vpop.f32.mrb[10].mxu1 }
 0x1fb   : > { %v1867_v19 = vpop.f32.mrb[11].mxu1 }
 0x200   : > { %v5830_v41 = vpop.f32.mrb[12].mxu1 }
 0x201   : > { %v1880_v52 = vpop.f32.mrb[13].mxu1 }
 0x202   : > { %v8176_v2 = vpop.f32.mrb[14].mxu1 }
 0x203   : > { %v8178_v5 = vpop.f32.mrb[15].mxu1 }
 0x207   : > { %v5988_v55 = vpop.f32.mrb[0].mxu0 }
 0x208   : > { %v8180_v29 = vadd.f32 %v5988_v55, %v5818_v63  ;;  %v4583_v39 = vpop.f32.mrb[1].mxu0 }
 0x209   : > { %v8182_v0 = vadd.f32 %v4583_v39, %v1832_v4  ;;  %v5989_v36 = vpop.f32.mrb[2].mxu0 }
 0x20a   : > { %v8184_v10 = vadd.f32 %v5989_v36, %v5819_v43  ;;  %v4586_v59 = vpop.f32.mrb[3].mxu0  ;;  %v4782_v34 = vmul.f32 %v8180_v29, %v8180_v29 }
 0x20b   : > { %v8186_v38 = vadd.f32 %v4586_v59, %v1835_v16  ;;  %v4780_v37 = vmul.f32 %v8182_v0, %v8182_v0 }
 0x20c   : > { %v4783_v7 = vmul.f32 %v8184_v10, %v8184_v10 }
 0x20d   : > { %v4742_v26 = vadd.f32 %v8186_v38, %v8182_v0  ;;  %v4781_v35 = vmul.f32 %v8186_v38, %v8186_v38 }
 0x20f   : > { %v4743_v6 = vadd.f32 %v8180_v29, %v4742_v26  ;;  %v4812_v49 = vadd.f32 %v4781_v35, %v4780_v37  ;;  %v5992_v23 = vpop.f32.mrb[4].mxu0 }
 0x210   : > { %v8197_v25 = vadd.f32 %v5992_v23, %v5822_v58  ;;  %v4599_v1 = vpop.f32.mrb[5].mxu0 }
 0x211   : > { %v4813_v61 = vadd.f32 %v4812_v49, %v4782_v34  ;;  %v8201_v22 = vadd.f32 %v4599_v1, %v1848_v50  ;;  %v4744_v44 = vadd.f32 %v8184_v10, %v4743_v6  ;;  %v5993_v3 = vpop.f32.mrb[6].mxu0 }
 0x212   : > { %v8204_v51 = vadd.f32 %v5993_v3, %v5823_v54  ;;  %v4602_v28 = vpop.f32.mrb[7].mxu0  ;;  %v4786_v60 = vmul.f32 %v8197_v25, %v8197_v25 }
 0x213   : > { %v4745_v45 = vadd.f32 %v8201_v22, %v4744_v44  ;;  %v4784_v27 = vmul.f32 %v8201_v22, %v8201_v22  ;;  %v4814_v53 = vadd.f32 %v4813_v61, %v4783_v7  ;;  %v8209_v21 = vadd.f32 %v4602_v28, %v1851_v18 }
 0x214   : > { %v4787_v57 = vmul.f32 %v8204_v51, %v8204_v51 }
 0x215   : > { %v4815_v47 = vadd.f32 %v4814_v53, %v4784_v27  ;;  %v4746_v46 = vadd.f32 %v8209_v21, %v4745_v45  ;;  %v4785_v15 = vmul.f32 %v8209_v21, %v8209_v21 }
 0x217   : > { %v4747_v20 = vadd.f32 %v8197_v25, %v4746_v46  ;;  %v4816_v42 = vadd.f32 %v4815_v47, %v4785_v15  ;;  %v5996_v33 = vpop.f32.mrb[8].mxu0 }
 0x218   : > { %v8217_v12 = vadd.f32 %v5996_v33, %v5826_v11  ;;  %v4615_v31 = vpop.f32.mrb[9].mxu0 }
 0x219   : > { %v4817_v8 = vadd.f32 %v4816_v42, %v4786_v60  ;;  %v8221_v48 = vadd.f32 %v4615_v31, %v1864_v24  ;;  %v4748_v62 = vadd.f32 %v8204_v51, %v4747_v20  ;;  %v5997_v56 = vpop.f32.mrb[10].mxu0 }
 0x21a   : > { %v8224_v40 = vadd.f32 %v5997_v56, %v5827_v32  ;;  %v4618_v13 = vpop.f32.mrb[11].mxu0  ;;  %v4790_v16 = vmul.f32 %v8217_v12, %v8217_v12 }
 0x21b   : > { %v4749_v17 = vadd.f32 %v8221_v48, %v4748_v62  ;;  %v4788_v30 = vmul.f32 %v8221_v48, %v8221_v48  ;;  %v4818_v9 = vadd.f32 %v4817_v8, %v4787_v57  ;;  %v8229_v14 = vadd.f32 %v4618_v13, %v1867_v19 }
 0x21c   : > { %v4791_v24 = vmul.f32 %v8224_v40, %v8224_v40 }
 0x21d   : > { %v4819_v63 = vadd.f32 %v4818_v9, %v4788_v30  ;;  %v4750_v4 = vadd.f32 %v8229_v14, %v4749_v17  ;;  %v4789_v43 = vmul.f32 %v8229_v14, %v8229_v14 }
 0x21f   : > { %v4751_v58 = vadd.f32 %v8217_v12, %v4750_v4  ;;  %v4820_v50 = vadd.f32 %v4819_v63, %v4789_v43  ;;  %v6000_v54 = vpop.f32.mrb[12].mxu0 }
 0x220   : > { %v8237_v18 = vadd.f32 %v6000_v54, %v5830_v41  ;;  %v4631_v11 = vpop.f32.mrb[13].mxu0 }
 0x221   : > { %v4821_v32 = vadd.f32 %v4820_v50, %v4790_v16  ;;  %v8241_v19 = vadd.f32 %v4631_v11, %v1880_v52  ;;  %v4752_v55 = vadd.f32 %v8224_v40, %v4751_v58  ;;  %v6001_v39 = vpop.f32.mrb[14].mxu0 }
 0x222   : > { %v8245_v36 = vadd.f32 %v6001_v39, %v8176_v2  ;;  %v4634_v59 = vpop.f32.mrb[15].mxu0  ;;  %v4794_v2 = vmul.f32 %v8237_v18, %v8237_v18 }
 0x223   : > { %v4753_v37 = vadd.f32 %v8241_v19, %v4752_v55  ;;  %v4792_v41 = vmul.f32 %v8241_v19, %v8241_v19  ;;  %v4822_v26 = vadd.f32 %v4821_v32, %v4791_v24  ;;  %v8251_v35 = vadd.f32 %v4634_v59, %v8178_v5 }
 0x224   : > { %v4795_v44 = vmul.f32 %v8245_v36, %v8245_v36 }
 0x225   : > { %v4823_v34 = vadd.f32 %v4822_v26, %v4792_v41  ;;  %v4754_v52 = vadd.f32 %v8251_v35, %v4753_v37  ;;  %v4793_v6 = vmul.f32 %v8251_v35, %v8251_v35 }
 0x227   : > { %v4755_v49 = vadd.f32 %v8237_v18, %v4754_v52  ;;  %v4824_v23 = vadd.f32 %v4823_v34, %v4793_v6  ;;  %v6004_v1 = vpop.f32.mrb[16].mxu0 }
 0x228   : > { %v5868_v7 = vpop.f32.mrb[16].mxu1  ;;  %v4647_v61 = vpop.f32.mrb[17].mxu0 }
 0x229   : > { %v4825_v5 = vadd.f32 %v4824_v23, %v4794_v2  ;;  %v6036_v3 = vadd.f32 %v6004_v1, %v5868_v7  ;;  %v2622_v28 = vpop.f32.mrb[17].mxu1  ;;  %v4756_v45 = vadd.f32 %v8245_v36, %v4755_v49  ;;  %v6005_v27 = vpop.f32.mrb[18].mxu0 }
 0x22a   : > { %v6037_v53 = vadd.f32 %v4647_v61, %v2622_v28  ;;  %v5869_v47 = vpop.f32.mrb[18].mxu1  ;;  %v4650_v46 = vpop.f32.mrb[19].mxu0 }
 0x22b   : > { %v4826_v15 = vadd.f32 %v4825_v5, %v4795_v44  ;;  %v6038_v60 = vadd.f32 %v6005_v27, %v5869_v47  ;;  %v2625_v20 = vpop.f32.mrb[19].mxu1  ;;  %v6299_v42 = vpack.i.bf16 %v6036_v3, %v8180_v29  ;;  %v4798_v63 = vmul.f32 %v6036_v3, %v6036_v3 }
 0x22c   : > { %v4757_v33 = vadd.f32 %v6037_v53, %v4756_v45  ;;  %v4796_v31 = vmul.f32 %v6037_v53, %v6037_v53  ;;  %v6039_v57 = vadd.f32 %v4650_v46, %v2625_v20  ;;  %v6295_v8 = vpack.i.bf16 %v6037_v53, %v8182_v0 }
 0x22d   : > { %v6301_v62 = vpack.i.bf16 %v6038_v60, %v8184_v10  ;;  %v4799_v11 = vmul.f32 %v6038_v60, %v6038_v60 }
 0x22e   : > { %v4827_v56 = vadd.f32 %v4826_v15, %v4796_v31  ;;  %v4758_v13 = vadd.f32 %v6039_v57, %v4757_v33  ;;  %v4797_v17 = vmul.f32 %v6039_v57, %v6039_v57  ;;  %6296 = vxpose.xlu0.b32.start [1/16] (narrow) %v6295_v8, 8  ;;  %v6297_v30 = vpack.i.bf16 %v6039_v57, %v8186_v38 }
 0x22f   : > { %v6008_v9 = vpop.f32.mrb[20].mxu0 }
 0x230   : > { %v4759_v4 = vadd.f32 %v6036_v3, %v4758_v13  ;;  %v4828_v43 = vadd.f32 %v4827_v56, %v4797_v17  ;;  %v5872_v16 = vpop.f32.mrb[20].mxu1  ;;  %v4663_v58 = vpop.f32.mrb[21].mxu0 }
 0x231   : > { %v8266_v29 = vadd.f32 %v6008_v9, %v5872_v16  ;;  %v2638_v50 = vpop.f32.mrb[21].mxu1  ;;  %v6009_v54 = vpop.f32.mrb[22].mxu0 }
 0x232   : > { %v4829_v0 = vadd.f32 %v4828_v43, %v4798_v63  ;;  %v6041_v24 = vadd.f32 %v4663_v58, %v2638_v50  ;;  %v4760_v10 = vadd.f32 %v6038_v60, %v4759_v4  ;;  %6298 = vxpose.xlu0.b32.cont [2/16] (narrow) %v6297_v30, 8  ;;  %v5873_v32 = vpop.f32.mrb[22].mxu1  ;;  %v4666_v55 = vpop.f32.mrb[23].mxu0 }
 0x233   : > { %v8268_v39 = vadd.f32 %v6009_v54, %v5873_v32  ;;  %v2641_v38 = vpop.f32.mrb[23].mxu1  ;;  %v6307_v59 = vpack.i.bf16 %v8266_v29, %v8197_v25  ;;  %v4802_v61 = vmul.f32 %v8266_v29, %v8266_v29 }
 0x234   : > { %v4761_v37 = vadd.f32 %v6041_v24, %v4760_v10  ;;  %v4800_v41 = vmul.f32 %v6041_v24, %v6041_v24  ;;  %v4830_v26 = vadd.f32 %v4829_v0, %v4799_v11  ;;  %v6043_v34 = vadd.f32 %v4666_v55, %v2641_v38 }
 0x235   : > { %v6303_v52 = vpack.i.bf16 %v6041_v24, %v8201_v22  ;;  %v6309_v6 = vpack.i.bf16 %v8268_v39, %v8204_v51  ;;  %v4803_v53 = vmul.f32 %v8268_v39, %v8268_v39 }
 0x236   : > { %v4831_v2 = vadd.f32 %v4830_v26, %v4800_v41  ;;  %v4762_v49 = vadd.f32 %v6043_v34, %v4761_v37  ;;  %v4801_v23 = vmul.f32 %v6043_v34, %v6043_v34  ;;  %6300 = vxpose.xlu0.b32.cont [3/16] (narrow) %v6299_v42, 8  ;;  %v6305_v1 = vpack.i.bf16 %v6043_v34, %v8209_v21 }
 0x237   : > { %v6012_v7 = vpop.f32.mrb[24].mxu0 }
 0x238   : > { %v4763_v44 = vadd.f32 %v8266_v29, %v4762_v49  ;;  %v4832_v5 = vadd.f32 %v4831_v2, %v4801_v23  ;;  %v5876_v3 = vpop.f32.mrb[24].mxu1  ;;  %v4679_v28 = vpop.f32.mrb[25].mxu0 }
 0x239   : > { %v8279_v45 = vadd.f32 %v6012_v7, %v5876_v3  ;;  %v2654_v22 = vpop.f32.mrb[25].mxu1  ;;  %v6013_v27 = vpop.f32.mrb[26].mxu0 }
 0x23a   : > { %v4833_v47 = vadd.f32 %v4832_v5, %v4802_v61  ;;  %v6045_v46 = vadd.f32 %v4679_v28, %v2654_v22  ;;  %v4764_v21 = vadd.f32 %v8268_v39, %v4763_v44  ;;  %6302 = vxpose.xlu0.b32.cont [4/16] (narrow) %v6301_v62, 8  ;;  %v5877_v15 = vpop.f32.mrb[26].mxu1  ;;  %v4682_v60 = vpop.f32.mrb[27].mxu0 }
 0x23b   : > { %v8284_v20 = vadd.f32 %v6013_v27, %v5877_v15  ;;  %v2657_v42 = vpop.f32.mrb[27].mxu1  ;;  %v6315_v33 = vpack.i.bf16 %v8279_v45, %v8217_v12  ;;  %v4806_v43 = vmul.f32 %v8279_v45, %v8279_v45 }
 0x23c   : > { %v4765_v31 = vadd.f32 %v6045_v46, %v4764_v21  ;;  %v4804_v57 = vmul.f32 %v6045_v46, %v6045_v46  ;;  %v4834_v8 = vadd.f32 %v4833_v47, %v4803_v53  ;;  %v6047_v56 = vadd.f32 %v4682_v60, %v2657_v42 }
 0x23d   : > { %v6311_v13 = vpack.i.bf16 %v6045_v46, %v8221_v48  ;;  %v6317_v17 = vpack.i.bf16 %v8284_v20, %v8224_v40  ;;  %v4807_v40 = vmul.f32 %v8284_v20, %v8284_v20 }
 0x23e   : > { %v4835_v30 = vadd.f32 %v4834_v8, %v4804_v57  ;;  %v4766_v9 = vadd.f32 %v6047_v56, %v4765_v31  ;;  %v4805_v62 = vmul.f32 %v6047_v56, %v6047_v56  ;;  %6304 = vxpose.xlu0.b32.cont [5/16] (narrow) %v6303_v52, 8  ;;  %v6313_v63 = vpack.i.bf16 %v6047_v56, %v8229_v14 }
 0x23f   : > { %v6016_v4 = vpop.f32.mrb[28].mxu0 }
 0x240   : > { %v4767_v16 = vadd.f32 %v8279_v45, %v4766_v9  ;;  %v4836_v58 = vadd.f32 %v4835_v30, %v4805_v62  ;;  %v5880_v50 = vpop.f32.mrb[28].mxu1  ;;  %v4695_v54 = vpop.f32.mrb[29].mxu0 }
 0x241   : > { %v6048_v11 = vadd.f32 %v6016_v4, %v5880_v50  ;;  %v2670_v48 = vpop.f32.mrb[29].mxu1  ;;  %v6017_v0 = vpop.f32.mrb[30].mxu0 }
 0x242   : > { %v4837_v24 = vadd.f32 %v4836_v58, %v4806_v43  ;;  %v6049_v10 = vadd.f32 %v4695_v54, %v2670_v48  ;;  %v4768_v32 = vadd.f32 %v8284_v20, %v4767_v16  ;;  %6306 = vxpose.xlu0.b32.cont [6/16] (narrow) %v6305_v1, 8  ;;  %v5881_v14 = vpop.f32.mrb[30].mxu1  ;;  %v4698_v55 = vpop.f32.mrb[31].mxu0 }
 0x243   : > { %v6050_v38 = vadd.f32 %v6017_v0, %v5881_v14  ;;  %v2673_v37 = vpop.f32.mrb[31].mxu1  ;;  %v6323_v41 = vpack.i.bf16 %v6048_v11, %v8237_v18  ;;  %v4810_v5 = vmul.f32 %v6048_v11, %v6048_v11 }
 0x244   : > { %v4769_v26 = vadd.f32 %v6049_v10, %v4768_v32  ;;  %v4808_v34 = vmul.f32 %v6049_v10, %v6049_v10  ;;  %v4838_v52 = vadd.f32 %v4837_v24, %v4807_v40  ;;  %v6051_v2 = vadd.f32 %v4698_v55, %v2673_v37 }
 0x245   : > { %v6319_v49 = vpack.i.bf16 %v6049_v10, %v8241_v19  ;;  %v6325_v23 = vpack.i.bf16 %v6050_v38, %v8245_v36  ;;  %v4811_v28 = vmul.f32 %v6050_v38, %v6050_v38 }
 0x246   : > { %v4839_v7 = vadd.f32 %v4838_v52, %v4808_v34  ;;  %v4770_v61 = vadd.f32 %v6051_v2, %v4769_v26  ;;  %v4809_v44 = vmul.f32 %v6051_v2, %v6051_v2  ;;  %6308 = vxpose.xlu0.b32.cont [7/16] (narrow) %v6307_v59, 8  ;;  %v6321_v1 = vpack.i.bf16 %v6051_v2, %v8251_v35 }
 0x248   : > { %v4771_v18 = vadd.f32 %v6048_v11, %v4770_v61  ;;  %v4840_v3 = vadd.f32 %v4839_v7, %v4809_v44 }
 0x24a   : > { %v4772_v22 = vadd.f32 %v6050_v38, %v4771_v18  ;;  %v4841_v27 = vadd.f32 %v4840_v3, %v4810_v5  ;;  %6310 = vxpose.xlu0.b32.cont [8/16] (narrow) %v6309_v6, 8 }
 0x24c   : > { %v4773_v19 = vrot.slane %v4772_v22, 4  ;;  %v4842_v36 = vadd.f32 %v4841_v27, %v4811_v28 }
 0x24e   : > { %v4774_v53 = vadd.f32 %v4773_v19, %v4772_v22  ;;  %v4843_v47 = vrot.slane %v4842_v36, 4  ;;  %6312 = vxpose.xlu0.b32.cont [9/16] (narrow) %v6311_v13, 8 }
 0x250   : > { %v4775_v25 = vrot.slane %v4774_v53, 2  ;;  %v4844_v29 = vadd.f32 %v4843_v47, %v4842_v36 }
 0x252   : > { %v4776_v59 = vadd.f32 %v4775_v25, %v4774_v53  ;;  %v4845_v35 = vrot.slane %v4844_v29, 2  ;;  %6314 = vxpose.xlu0.b32.cont [10/16] (narrow) %v6313_v63, 8 }
 0x254   : > { %v4777_v46 = vrot.slane %v4776_v59, 1  ;;  %v4846_v21 = vadd.f32 %v4845_v35, %v4844_v29 }
 0x256   : > { %v4778_v51 = vadd.f32 %v4777_v46, %v4776_v59  ;;  %v4847_v39 = vrot.slane %v4846_v21, 1  ;;  %6316 = vxpose.xlu0.b32.cont [11/16] (narrow) %v6315_v33, 8 }
 0x258   : > { %4779 = vst [vmem:[%s181_s18] sm:$0x1] %v4778_v51  ;;  %v4848_v6 = vadd.f32 %v4847_v39, %v4846_v21 }
 0x25a   : > { %4849 = vst [vmem:[%s181_s18 + $0x1] sm:$0x1] %v4848_v6  ;;  %6318 = vxpose.xlu0.b32.cont [12/16] (narrow) %v6317_v17, 8 }
 0x25e   : > { %6320 = vxpose.xlu0.b32.cont [13/16] (narrow) %v6319_v49, 8 }
 0x262   : > { %6322 = vxpose.xlu0.b32.cont [14/16] (narrow) %v6321_v1, 8 }
 0x266   : > { %6324 = vxpose.xlu0.b32.cont [15/16] (narrow) %v6323_v41, 8 }
 0x26a   : > { %6326 = vxpose.xlu0.b32.end [16/16] (narrow) %v6325_v23, 8 }
 0x2ae   : > { %v6327_v15 = vpop.trf.xlu0 }
 0x2af   : > { %v6331_v60 = vunpack.i.h.bf16 %v6327_v15  ;;  %v6328_v20 = vunpack.i.l.bf16 %v6327_v15 }
 0x2b1   : > { %v5558_v42 = vpack.c.bf16 %v6331_v60, %v6328_v20 }
 0x2b3   : > { %4922 = vst [vmem:[%s177_s22] sm:$0xff] %v5558_v42 }
 0x2b4 PF: > { %s14_s12 = sadd.s32 1, %s6443_s12  }
 0x2b5   : > { %p11_p4 = scmp.ge.s32.totalorder %s14_s12, 4  }
 0x2b7   :  { %13 = sbr.rel (!%p11_p4) target bundleno = 1 (0x1), region = 80 }

</bundles_post_ra>
